<compile_context>
chip_gen: v5e
topology: v5e:2x2
jax: 0.10.0
libtpu: 0.0.40
codegen_flags: <defaults>
</compile_context>

<pallas_src>
from functools import partial

import jax
import jax.numpy as jnp
from jax.experimental import pallas as pl
from jax.experimental.pallas import tpu as pltpu

LANE = 128


def _round_up(x, m):
    return (x + m - 1) // m * m


# ---------------------------------------------------------------------------
# Fully fused forward kernel (one grid step == one image).
# ---------------------------------------------------------------------------
def _make_cifar_kernel(spatial_sizes, n_layers):
    """spatial_sizes: per-conv-layer input spatial size (H == W), e.g. (8, 4, 2)."""

    def kernel(*refs):
        x_ref = refs[0]                                   # (Hp0*Wp0, Cp) bf16
        conv_refs = refs[1:1 + 2 * n_layers]              # (w9, b) per layer
        fcw_ref = refs[1 + 2 * n_layers]                  # (OCp, NCp) f32
        fcb_ref = refs[2 + 2 * n_layers]                  # (1, NCp) f32
        o_ref = refs[3 + 2 * n_layers]                    # (1, 1, NCp) f32
        act_ref = refs[4 + 2 * n_layers]                  # (M_max, OCp) f32 scratch
        pad_refs = refs[5 + 2 * n_layers:]                # padded inter-layer bufs (bf16)

        # Halo rows of the inter-layer padded buffers must be zero.  Scratch
        # persists across grid steps (and is per-core under "parallel"), so
        # re-zero every step; the buffers are tiny.
        for p in pad_refs:
            p[...] = jnp.zeros_like(p)

        def conv3x3_bias_relu(src_ref, w_ref, b_ref, H):
            """3x3 conv (pad=1) as 9 shifted MXU matmuls; bias + ReLU -> act_ref[:M]."""
            W = H
            Wp = W + 2
            M = (H - 1) * Wp + W          # rows q = h*Wp + w of the conv output
            OCp = w_ref.shape[-1]
            acc = jnp.zeros((M, OCp), jnp.float32)
            for kh in range(3):
                for kw in range(3):
                    off = kh * Wp + kw
                    acc = acc + jnp.dot(src_ref[off:off + M, :],      # (M, Cp) bf16
                                        w_ref[kh * 3 + kw],           # (Cp, OCp) bf16
                                        preferred_element_type=jnp.float32)
            act_ref[0:M, :] = jnp.maximum(acc + b_ref[...], 0.0)

        def maxpool2x2_into(dst_ref, H):
            """2x2/2 max-pool of act_ref; scatter into the interior of dst_ref (bf16)."""
            W = H
            Wp = W + 2
            Ho, Wo = H // 2, W // 2
            Wp_n = Wo + 2                 # row pitch of the next padded buffer
            for ho in range(Ho):
                base = 2 * ho * Wp
                top = act_ref[base:base + W, :]            # conv row 2*ho,   w = 0..W-1
                bot = act_ref[base + Wp:base + Wp + W, :]  # conv row 2*ho+1, w = 0..W-1
                vmax = jnp.maximum(top, bot)               # (W, OCp)
                for wo in range(Wo):
                    p = jnp.maximum(vmax[2 * wo:2 * wo + 1, :],
                                    vmax[2 * wo + 1:2 * wo + 2, :])
                    r = (ho + 1) * Wp_n + (wo + 1)
                    dst_ref[r:r + 1, :] = p.astype(dst_ref.dtype)

        src = x_ref
        for li in range(n_layers):
            H = spatial_sizes[li]
            w_ref = conv_refs[2 * li]
            b_ref = conv_refs[2 * li + 1]
            conv3x3_bias_relu(src, w_ref, b_ref, H)
            if li < n_layers - 1:
                maxpool2x2_into(pad_refs[li], H)
                src = pad_refs[li]
            else:
                # Final layer: 2x2 spatial -> 1x1 after the pool; classifier fused.
                Wp = H + 2
                top = act_ref[0:2, :]                      # (0,0), (0,1)
                bot = act_ref[Wp:Wp + 2, :]                # (1,0), (1,1)
                vmax = jnp.maximum(top, bot)
                pooled = jnp.maximum(vmax[0:1, :], vmax[1:2, :])   # (1, OCp) f32
                logits = jnp.dot(pooled, fcw_ref[...],
                                 preferred_element_type=jnp.float32) + fcb_ref[...]
                o_ref[0] = logits.astype(o_ref.dtype)

    return kernel


# ---------------------------------------------------------------------------
# Parameters: PyTorch layout -> lane-dense packed layout.
# ---------------------------------------------------------------------------
def init_params(key, in_ch, conv_channels, n_channel, num_classes):
    """PyTorch-layout params (Conv2d weight (OC, C, 3, 3); Linear used as x @ W + b)."""
    params = {"convs": []}
    c_prev = in_ch
    for c_out in conv_channels:
        key, kw_, kb_ = jax.random.split(key, 3)
        w = 0.1 * jax.random.normal(kw_, (c_out, c_prev, 3, 3), jnp.float32)
        b = 0.1 * jax.random.normal(kb_, (c_out,), jnp.float32)
        params["convs"].append((w, b))
        c_prev = c_out
    assert c_prev == n_channel
    key, kw_, kb_ = jax.random.split(key, 3)
    params["fc_w"] = 0.1 * jax.random.normal(kw_, (n_channel, num_classes), jnp.float32)
    params["fc_b"] = 0.1 * jax.random.normal(kb_, (num_classes,), jnp.float32)
    return params


def pack_params(raw):
    """Repack PyTorch-layout params into lane-dense (128-padded) kernel layout."""
    packed = {"convs": []}
    for (w, b) in raw["convs"]:
        OC, C = w.shape[0], w.shape[1]
        Cp, OCp = _round_up(C, LANE), _round_up(OC, LANE)
        w9 = jnp.transpose(w, (2, 3, 1, 0)).reshape(9, C, OC)      # (kh*3+kw, C, OC)
        w9 = jnp.pad(w9, ((0, 0), (0, Cp - C), (0, OCp - OC))).astype(jnp.bfloat16)
        b2 = jnp.pad(b, (0, OCp - OC)).reshape(1, OCp).astype(jnp.float32)
        packed["convs"].append((w9, b2))
    K, NC = raw["fc_w"].shape
    Kp, NCp = _round_up(K, LANE), _round_up(NC, LANE)
    packed["fc_w"] = jnp.pad(raw["fc_w"], ((0, Kp - K), (0, NCp - NC))).astype(jnp.float32)
    packed["fc_b"] = jnp.pad(raw["fc_b"], (0, NCp - NC)).reshape(1, NCp).astype(jnp.float32)
    return packed


# ---------------------------------------------------------------------------
# Forward pass (matches CIFAR.forward: features -> flatten -> classifier).
# ---------------------------------------------------------------------------
def cifar_forward(packed, x, num_classes):
    """x: (N, C_in, H, W) f32 NCHW (PyTorch convention). Returns (N, num_classes)."""
    N, Cin, H, W = x.shape
    assert H == W, "square spatial expected"
    convs = packed["convs"]
    n_layers = len(convs)
    Cp = convs[0][0].shape[1]        # lane-padded in-channels of first conv
    OCp = convs[0][0].shape[2]       # all layers padded to the same 128 lanes
    for (w9, _) in convs:
        assert w9.shape[2] == OCp

    spatial = []
    h_sz = H
    for _ in range(n_layers):
        spatial.append(h_sz)
        h_sz //= 2
    # Features must end at 1x1 spatial so flatten size == n_channel (Linear input).
    assert spatial[-1] == 2 and h_sz == 1, "expected final 2x2 -> 1x1 spatial"

    # NCHW f32 -> channels-last, lane-padded, spatially padded, flattened, bf16.
    xe = jnp.transpose(x, (0, 2, 3, 1))
    xe = jnp.pad(xe, ((0, 0), (1, 1), (1, 1), (0, Cp - Cin))).astype(jnp.bfloat16)
    x_flat = xe.reshape(N, (H + 2) * (W + 2), Cp)

    fc_w, fc_b = packed["fc_w"], packed["fc_b"]
    NCp = fc_w.shape[-1]

    in_specs = [pl.BlockSpec((None, (H + 2) * (W + 2), Cp), lambda n: (n, 0, 0))]
    args = [x_flat]
    for (w9, b2) in convs:
        in_specs.append(pl.BlockSpec(w9.shape, lambda n: (0, 0, 0)))
        in_specs.append(pl.BlockSpec(b2.shape, lambda n: (0, 0)))
        args += [w9, b2]
    in_specs.append(pl.BlockSpec(fc_w.shape, lambda n: (0, 0)))
    in_specs.append(pl.BlockSpec(fc_b.shape, lambda n: (0, 0)))
    args += [fc_w, fc_b]

    m_max = max((hh - 1) * (hh + 2) + hh for hh in spatial)
    scratch = [pltpu.VMEM((m_max, OCp), jnp.float32)]          # per-layer activation
    for li in range(n_layers - 1):                              # padded staging buffers
        hn = spatial[li] // 2
        scratch.append(pltpu.VMEM(((hn + 2) * (hn + 2), OCp), jnp.bfloat16))

    kernel = _make_cifar_kernel(tuple(spatial), n_layers)
    out = pl.pallas_call(
        kernel,
        out_shape=jax.ShapeDtypeStruct((N, 1, NCp), jnp.float32),
        grid=(N,),
        in_specs=in_specs,
        out_specs=pl.BlockSpec((1, 1, NCp), lambda n: (n, 0, 0)),
        scratch_shapes=scratch,
        compiler_params=pltpu.CompilerParams(
            dimension_semantics=("parallel",)),
    )(*args)
    return out[:, 0, :num_classes]


# ---------------------------------------------------------------------------
# Pure-JAX reference (f32) of the PyTorch module for correctness checking.
# ---------------------------------------------------------------------------
def ref_forward(raw, x):
    h = x
    for (w, b) in raw["convs"]:
        h = jax.lax.conv_general_dilated(
            h, w, window_strides=(1, 1), padding=((1, 1), (1, 1)),
            dimension_numbers=("NCHW", "OIHW", "NCHW"))
        h = jnp.maximum(h + b[None, :, None, None], 0.0)
        h = jax.lax.reduce_window(h, -jnp.inf, jax.lax.max,
                                  (1, 1, 2, 2), (1, 1, 2, 2), "VALID")
    h = h.reshape(h.shape[0], -1)
    return h @ raw["fc_w"] + raw["fc_b"]


if __name__ == "__main__":
    key = jax.random.PRNGKey(0)
    key, kx, kp = jax.random.split(key, 3)

    # batch=2, in_channels=3, spatial 8x8; conv channels 3 -> 16 -> 32 -> 32
    # with three 2x2 pools (8->4->2->1); n_channel=32, num_classes=10.
    batch, in_ch, hw = 2, 3, 8
    conv_channels = (16, 32, 32)
    n_channel, num_classes = 32, 10

    x = jax.random.normal(kx, (batch, in_ch, hw, hw), jnp.float32)
    raw = init_params(kp, in_ch, conv_channels, n_channel, num_classes)
    packed = pack_params(raw)

    fwd = jax.jit(lambda p, xx: cifar_forward(p, xx, num_classes))
    out = jax.block_until_ready(fwd(packed, x))
    assert out.shape == (batch, num_classes), out.shape
    assert bool(jnp.all(jnp.isfinite(out)))

    ref = ref_forward(raw, x)
    err = float(jnp.max(jnp.abs(out - ref)))
    assert err < 1e-1, f"mismatch vs f32 reference: max abs err {err}"
    print("KERNEL_OK")
</pallas_src>

<mosaic_0001>
module attributes {stable_mosaic.version = 11 : i64} {
  func.func @kernel(%arg0: i32, %arg1: memref<1x100x128xbf16, #tpu.memory_space<vmem>>, %arg2: memref<9x128x128xbf16, #tpu.memory_space<vmem>>, %arg3: memref<1x128xf32, #tpu.memory_space<vmem>>, %arg4: memref<9x128x128xbf16, #tpu.memory_space<vmem>>, %arg5: memref<1x128xf32, #tpu.memory_space<vmem>>, %arg6: memref<9x128x128xbf16, #tpu.memory_space<vmem>>, %arg7: memref<1x128xf32, #tpu.memory_space<vmem>>, %arg8: memref<128x128xf32, #tpu.memory_space<vmem>>, %arg9: memref<1x128xf32, #tpu.memory_space<vmem>>, %arg10: memref<1x1x128xf32, #tpu.memory_space<vmem>>, %arg11: memref<78x128xf32, #tpu.memory_space<vmem>>, %arg12: memref<36x128xbf16, #tpu.memory_space<vmem>>, %arg13: memref<16x128xbf16, #tpu.memory_space<vmem>>) attributes {dimension_semantics = [#tpu.dimension_semantics<parallel>], iteration_bounds = array<i64: 2>, scalar_prefetch = 0 : i64, scratch_operands = 3 : i64, tpu.core_type = #tpu.core_type<tc>, window_params = [{transform_indices = @transform_0, window_bounds = array<i64: 1, 100, 128>}, {pipeline_mode = #tpu.pipeline_mode<synchronous>, transform_indices = @transform_1, window_bounds = array<i64: 9, 128, 128>}, {pipeline_mode = #tpu.pipeline_mode<synchronous>, transform_indices = @transform_2, window_bounds = array<i64: 1, 128>}, {pipeline_mode = #tpu.pipeline_mode<synchronous>, transform_indices = @transform_3, window_bounds = array<i64: 9, 128, 128>}, {pipeline_mode = #tpu.pipeline_mode<synchronous>, transform_indices = @transform_4, window_bounds = array<i64: 1, 128>}, {pipeline_mode = #tpu.pipeline_mode<synchronous>, transform_indices = @transform_5, window_bounds = array<i64: 9, 128, 128>}, {pipeline_mode = #tpu.pipeline_mode<synchronous>, transform_indices = @transform_6, window_bounds = array<i64: 1, 128>}, {pipeline_mode = #tpu.pipeline_mode<synchronous>, transform_indices = @transform_7, window_bounds = array<i64: 128, 128>}, {pipeline_mode = #tpu.pipeline_mode<synchronous>, transform_indices = @transform_8, window_bounds = array<i64: 1, 128>}, {transform_indices = @transform_9, window_bounds = array<i64: 1, 1, 128>}]} {
    %cst = arith.constant 0.000000e+00 : bf16
    %0 = vector.broadcast %cst : bf16 to vector<36x128xbf16>
    %c0 = arith.constant 0 : index
    %c0_0 = arith.constant 0 : index
    %1 = vector.load %arg12[%c0, %c0_0] : memref<36x128xbf16, #tpu.memory_space<vmem>>, vector<36x128xbf16>
    tpu.vector_store %arg12[%c0, %c0_0], %0 {strides = array<i32>} : memref<36x128xbf16, #tpu.memory_space<vmem>>, vector<36x128xbf16>,
    %cst_1 = arith.constant 0.000000e+00 : bf16
    %2 = vector.broadcast %cst_1 : bf16 to vector<16x128xbf16>
    %c0_2 = arith.constant 0 : index
    %c0_3 = arith.constant 0 : index
    %3 = vector.load %arg13[%c0_2, %c0_3] : memref<16x128xbf16, #tpu.memory_space<vmem>>, vector<16x128xbf16>
    tpu.vector_store %arg13[%c0_2, %c0_3], %2 {strides = array<i32>} : memref<16x128xbf16, #tpu.memory_space<vmem>>, vector<16x128xbf16>,
    %cst_4 = arith.constant 0.000000e+00 : f32
    %4 = vector.broadcast %cst_4 : f32 to vector<78x128xf32>
    %c0_5 = arith.constant 0 : index
    %c0_6 = arith.constant 0 : index
    %c0_7 = arith.constant 0 : index
    %5 = vector.load %arg1[%c0_5, %c0_6, %c0_7] : memref<1x100x128xbf16, #tpu.memory_space<vmem>>, vector<1x78x128xbf16>
    %6 = vector.shape_cast %5 : vector<1x78x128xbf16> to vector<78x128xbf16>
    %c0_8 = arith.constant 0 : index
    %c0_9 = arith.constant 0 : index
    %c0_10 = arith.constant 0 : index
    %7 = vector.load %arg2[%c0_8, %c0_9, %c0_10] : memref<9x128x128xbf16, #tpu.memory_space<vmem>>, vector<1x128x128xbf16>
    %8 = vector.shape_cast %7 : vector<1x128x128xbf16> to vector<128x128xbf16>
    %cst_11 = arith.constant dense<0.000000e+00> : vector<78x128xf32>
    %9 = tpu.matmul %6, %8, %cst_11 {dimension_numbers = #tpu.dot_dimension_numbers<[1], [0], [0], [1], [0, 0, 1, 1], [], []>} : vector<78x128xbf16>, vector<128x128xbf16>, vector<78x128xf32> -> vector<78x128xf32>
    %10 = arith.addf %4, %9 : vector<78x128xf32>
    %c0_12 = arith.constant 0 : index
    %c1 = arith.constant 1 : index
    %c0_13 = arith.constant 0 : index
    %11 = vector.load %arg1[%c0_12, %c1, %c0_13] : memref<1x100x128xbf16, #tpu.memory_space<vmem>>, vector<1x78x128xbf16>
    %12 = vector.shape_cast %11 : vector<1x78x128xbf16> to vector<78x128xbf16>
    %c1_14 = arith.constant 1 : index
    %c0_15 = arith.constant 0 : index
    %c0_16 = arith.constant 0 : index
    %13 = vector.load %arg2[%c1_14, %c0_15, %c0_16] : memref<9x128x128xbf16, #tpu.memory_space<vmem>>, vector<1x128x128xbf16>
    %14 = vector.shape_cast %13 : vector<1x128x128xbf16> to vector<128x128xbf16>
    %cst_17 = arith.constant dense<0.000000e+00> : vector<78x128xf32>
    %15 = tpu.matmul %12, %14, %cst_17 {dimension_numbers = #tpu.dot_dimension_numbers<[1], [0], [0], [1], [0, 0, 1, 1], [], []>} : vector<78x128xbf16>, vector<128x128xbf16>, vector<78x128xf32> -> vector<78x128xf32>
    %16 = arith.addf %10, %15 : vector<78x128xf32>
    %c0_18 = arith.constant 0 : index
    %c2 = arith.constant 2 : index
    %c0_19 = arith.constant 0 : index
    %17 = vector.load %arg1[%c0_18, %c2, %c0_19] : memref<1x100x128xbf16, #tpu.memory_space<vmem>>, vector<1x78x128xbf16>
    %18 = vector.shape_cast %17 : vector<1x78x128xbf16> to vector<78x128xbf16>
    %c2_20 = arith.constant 2 : index
    %c0_21 = arith.constant 0 : index
    %c0_22 = arith.constant 0 : index
    %19 = vector.load %arg2[%c2_20, %c0_21, %c0_22] : memref<9x128x128xbf16, #tpu.memory_space<vmem>>, vector<1x128x128xbf16>
    %20 = vector.shape_cast %19 : vector<1x128x128xbf16> to vector<128x128xbf16>
    %cst_23 = arith.constant dense<0.000000e+00> : vector<78x128xf32>
    %21 = tpu.matmul %18, %20, %cst_23 {dimension_numbers = #tpu.dot_dimension_numbers<[1], [0], [0], [1], [0, 0, 1, 1], [], []>} : vector<78x128xbf16>, vector<128x128xbf16>, vector<78x128xf32> -> vector<78x128xf32>
    %22 = arith.addf %16, %21 : vector<78x128xf32>
    %c0_24 = arith.constant 0 : index
    %c10 = arith.constant 10 : index
    %c0_25 = arith.constant 0 : index
    %23 = vector.load %arg1[%c0_24, %c10, %c0_25] : memref<1x100x128xbf16, #tpu.memory_space<vmem>>, vector<1x78x128xbf16>
    %24 = vector.shape_cast %23 : vector<1x78x128xbf16> to vector<78x128xbf16>
    %c3 = arith.constant 3 : index
    %c0_26 = arith.constant 0 : index
    %c0_27 = arith.constant 0 : index
    %25 = vector.load %arg2[%c3, %c0_26, %c0_27] : memref<9x128x128xbf16, #tpu.memory_space<vmem>>, vector<1x128x128xbf16>
    %26 = vector.shape_cast %25 : vector<1x128x128xbf16> to vector<128x128xbf16>
    %cst_28 = arith.constant dense<0.000000e+00> : vector<78x128xf32>
    %27 = tpu.matmul %24, %26, %cst_28 {dimension_numbers = #tpu.dot_dimension_numbers<[1], [0], [0], [1], [0, 0, 1, 1], [], []>} : vector<78x128xbf16>, vector<128x128xbf16>, vector<78x128xf32> -> vector<78x128xf32>
    %28 = arith.addf %22, %27 : vector<78x128xf32>
    %c0_29 = arith.constant 0 : index
    %c11 = arith.constant 11 : index
    %c0_30 = arith.constant 0 : index
    %29 = vector.load %arg1[%c0_29, %c11, %c0_30] : memref<1x100x128xbf16, #tpu.memory_space<vmem>>, vector<1x78x128xbf16>
    %30 = vector.shape_cast %29 : vector<1x78x128xbf16> to vector<78x128xbf16>
    %c4 = arith.constant 4 : index
    %c0_31 = arith.constant 0 : index
    %c0_32 = arith.constant 0 : index
    %31 = vector.load %arg2[%c4, %c0_31, %c0_32] : memref<9x128x128xbf16, #tpu.memory_space<vmem>>, vector<1x128x128xbf16>
    %32 = vector.shape_cast %31 : vector<1x128x128xbf16> to vector<128x128xbf16>
    %cst_33 = arith.constant dense<0.000000e+00> : vector<78x128xf32>
    %33 = tpu.matmul %30, %32, %cst_33 {dimension_numbers = #tpu.dot_dimension_numbers<[1], [0], [0], [1], [0, 0, 1, 1], [], []>} : vector<78x128xbf16>, vector<128x128xbf16>, vector<78x128xf32> -> vector<78x128xf32>
    %34 = arith.addf %28, %33 : vector<78x128xf32>
    %c0_34 = arith.constant 0 : index
    %c12 = arith.constant 12 : index
    %c0_35 = arith.constant 0 : index
    %35 = vector.load %arg1[%c0_34, %c12, %c0_35] : memref<1x100x128xbf16, #tpu.memory_space<vmem>>, vector<1x78x128xbf16>
    %36 = vector.shape_cast %35 : vector<1x78x128xbf16> to vector<78x128xbf16>
    %c5 = arith.constant 5 : index
    %c0_36 = arith.constant 0 : index
    %c0_37 = arith.constant 0 : index
    %37 = vector.load %arg2[%c5, %c0_36, %c0_37] : memref<9x128x128xbf16, #tpu.memory_space<vmem>>, vector<1x128x128xbf16>
    %38 = vector.shape_cast %37 : vector<1x128x128xbf16> to vector<128x128xbf16>
    %cst_38 = arith.constant dense<0.000000e+00> : vector<78x128xf32>
    %39 = tpu.matmul %36, %38, %cst_38 {dimension_numbers = #tpu.dot_dimension_numbers<[1], [0], [0], [1], [0, 0, 1, 1], [], []>} : vector<78x128xbf16>, vector<128x128xbf16>, vector<78x128xf32> -> vector<78x128xf32>
    %40 = arith.addf %34, %39 : vector<78x128xf32>
    %c0_39 = arith.constant 0 : index
    %c20 = arith.constant 20 : index
    %c0_40 = arith.constant 0 : index
    %41 = vector.load %arg1[%c0_39, %c20, %c0_40] : memref<1x100x128xbf16, #tpu.memory_space<vmem>>, vector<1x78x128xbf16>
    %42 = vector.shape_cast %41 : vector<1x78x128xbf16> to vector<78x128xbf16>
    %c6 = arith.constant 6 : index
    %c0_41 = arith.constant 0 : index
    %c0_42 = arith.constant 0 : index
    %43 = vector.load %arg2[%c6, %c0_41, %c0_42] : memref<9x128x128xbf16, #tpu.memory_space<vmem>>, vector<1x128x128xbf16>
    %44 = vector.shape_cast %43 : vector<1x128x128xbf16> to vector<128x128xbf16>
    %cst_43 = arith.constant dense<0.000000e+00> : vector<78x128xf32>
    %45 = tpu.matmul %42, %44, %cst_43 {dimension_numbers = #tpu.dot_dimension_numbers<[1], [0], [0], [1], [0, 0, 1, 1], [], []>} : vector<78x128xbf16>, vector<128x128xbf16>, vector<78x128xf32> -> vector<78x128xf32>
    %46 = arith.addf %40, %45 : vector<78x128xf32>
    %c0_44 = arith.constant 0 : index
    %c21 = arith.constant 21 : index
    %c0_45 = arith.constant 0 : index
    %47 = vector.load %arg1[%c0_44, %c21, %c0_45] : memref<1x100x128xbf16, #tpu.memory_space<vmem>>, vector<1x78x128xbf16>
    %48 = vector.shape_cast %47 : vector<1x78x128xbf16> to vector<78x128xbf16>
    %c7 = arith.constant 7 : index
    %c0_46 = arith.constant 0 : index
    %c0_47 = arith.constant 0 : index
    %49 = vector.load %arg2[%c7, %c0_46, %c0_47] : memref<9x128x128xbf16, #tpu.memory_space<vmem>>, vector<1x128x128xbf16>
    %50 = vector.shape_cast %49 : vector<1x128x128xbf16> to vector<128x128xbf16>
    %cst_48 = arith.constant dense<0.000000e+00> : vector<78x128xf32>
    %51 = tpu.matmul %48, %50, %cst_48 {dimension_numbers = #tpu.dot_dimension_numbers<[1], [0], [0], [1], [0, 0, 1, 1], [], []>} : vector<78x128xbf16>, vector<128x128xbf16>, vector<78x128xf32> -> vector<78x128xf32>
    %52 = arith.addf %46, %51 : vector<78x128xf32>
    %c0_49 = arith.constant 0 : index
    %c22 = arith.constant 22 : index
    %c0_50 = arith.constant 0 : index
    %53 = vector.load %arg1[%c0_49, %c22, %c0_50] : memref<1x100x128xbf16, #tpu.memory_space<vmem>>, vector<1x78x128xbf16>
    %54 = vector.shape_cast %53 : vector<1x78x128xbf16> to vector<78x128xbf16>
    %c8 = arith.constant 8 : index
    %c0_51 = arith.constant 0 : index
    %c0_52 = arith.constant 0 : index
    %55 = vector.load %arg2[%c8, %c0_51, %c0_52] : memref<9x128x128xbf16, #tpu.memory_space<vmem>>, vector<1x128x128xbf16>
    %56 = vector.shape_cast %55 : vector<1x128x128xbf16> to vector<128x128xbf16>
    %cst_53 = arith.constant dense<0.000000e+00> : vector<78x128xf32>
    %57 = tpu.matmul %54, %56, %cst_53 {dimension_numbers = #tpu.dot_dimension_numbers<[1], [0], [0], [1], [0, 0, 1, 1], [], []>} : vector<78x128xbf16>, vector<128x128xbf16>, vector<78x128xf32> -> vector<78x128xf32>
    %58 = arith.addf %52, %57 : vector<78x128xf32>
    %c0_54 = arith.constant 0 : index
    %c0_55 = arith.constant 0 : index
    %59 = vector.load %arg3[%c0_54, %c0_55] : memref<1x128xf32, #tpu.memory_space<vmem>>, vector<1x128xf32>
    %60 = vector.broadcast %59 : vector<1x128xf32> to vector<78x128xf32>
    %61 = arith.addf %58, %60 : vector<78x128xf32>
    %cst_56 = arith.constant 0.000000e+00 : f32
    %62 = vector.broadcast %cst_56 : f32 to vector<78x128xf32>
    %63 = arith.maximumf %61, %62 : vector<78x128xf32>
    %c0_57 = arith.constant 0 : index
    %c0_58 = arith.constant 0 : index
    %64 = vector.load %arg11[%c0_57, %c0_58] : memref<78x128xf32, #tpu.memory_space<vmem>>, vector<78x128xf32>
    tpu.vector_store %arg11[%c0_57, %c0_58], %63 {strides = array<i32>} : memref<78x128xf32, #tpu.memory_space<vmem>>, vector<78x128xf32>,
    %c0_59 = arith.constant 0 : index
    %c0_60 = arith.constant 0 : index
    %65 = vector.load %arg11[%c0_59, %c0_60] : memref<78x128xf32, #tpu.memory_space<vmem>>, vector<8x128xf32>
    %c10_61 = arith.constant 10 : index
    %c0_62 = arith.constant 0 : index
    %66 = vector.load %arg11[%c10_61, %c0_62] : memref<78x128xf32, #tpu.memory_space<vmem>>, vector<8x128xf32>
    %67 = arith.maximumf %65, %66 : vector<8x128xf32>
    %68 = vector.extract_strided_slice %67 {offsets = [0, 0], sizes = [1, 128], strides = [1, 1]} : vector<8x128xf32> to vector<1x128xf32>
    %69 = vector.extract_strided_slice %67 {offsets = [1, 0], sizes = [1, 128], strides = [1, 1]} : vector<8x128xf32> to vector<1x128xf32>
    %70 = arith.maximumf %68, %69 : vector<1x128xf32>
    %71 = arith.truncf %70 : vector<1x128xf32> to vector<1x128xbf16>
    %c7_63 = arith.constant 7 : index
    %c0_64 = arith.constant 0 : index
    %72 = vector.load %arg12[%c7_63, %c0_64] : memref<36x128xbf16, #tpu.memory_space<vmem>>, vector<1x128xbf16>
    tpu.vector_store %arg12[%c7_63, %c0_64], %71 {strides = array<i32>} : memref<36x128xbf16, #tpu.memory_space<vmem>>, vector<1x128xbf16>,
    %73 = vector.extract_strided_slice %67 {offsets = [2, 0], sizes = [1, 128], strides = [1, 1]} : vector<8x128xf32> to vector<1x128xf32>
    %74 = vector.extract_strided_slice %67 {offsets = [3, 0], sizes = [1, 128], strides = [1, 1]} : vector<8x128xf32> to vector<1x128xf32>
    %75 = arith.maximumf %73, %74 : vector<1x128xf32>
    %76 = arith.truncf %75 : vector<1x128xf32> to vector<1x128xbf16>
    %c8_65 = arith.constant 8 : index
    %c0_66 = arith.constant 0 : index
    %77 = vector.load %arg12[%c8_65, %c0_66] : memref<36x128xbf16, #tpu.memory_space<vmem>>, vector<1x128xbf16>
    tpu.vector_store %arg12[%c8_65, %c0_66], %76 {strides = array<i32>} : memref<36x128xbf16, #tpu.memory_space<vmem>>, vector<1x128xbf16>,
    %78 = vector.extract_strided_slice %67 {offsets = [4, 0], sizes = [1, 128], strides = [1, 1]} : vector<8x128xf32> to vector<1x128xf32>
    %79 = vector.extract_strided_slice %67 {offsets = [5, 0], sizes = [1, 128], strides = [1, 1]} : vector<8x128xf32> to vector<1x128xf32>
    %80 = arith.maximumf %78, %79 : vector<1x128xf32>
    %81 = arith.truncf %80 : vector<1x128xf32> to vector<1x128xbf16>
    %c9 = arith.constant 9 : index
    %c0_67 = arith.constant 0 : index
    %82 = vector.load %arg12[%c9, %c0_67] : memref<36x128xbf16, #tpu.memory_space<vmem>>, vector<1x128xbf16>
    tpu.vector_store %arg12[%c9, %c0_67], %81 {strides = array<i32>} : memref<36x128xbf16, #tpu.memory_space<vmem>>, vector<1x128xbf16>,
    %83 = vector.extract_strided_slice %67 {offsets = [6, 0], sizes = [1, 128], strides = [1, 1]} : vector<8x128xf32> to vector<1x128xf32>
    %84 = vector.extract_strided_slice %67 {offsets = [7, 0], sizes = [1, 128], strides = [1, 1]} : vector<8x128xf32> to vector<1x128xf32>
    %85 = arith.maximumf %83, %84 : vector<1x128xf32>
    %86 = arith.truncf %85 : vector<1x128xf32> to vector<1x128xbf16>
    %c10_68 = arith.constant 10 : index
    %c0_69 = arith.constant 0 : index
    %87 = vector.load %arg12[%c10_68, %c0_69] : memref<36x128xbf16, #tpu.memory_space<vmem>>, vector<1x128xbf16>
    tpu.vector_store %arg12[%c10_68, %c0_69], %86 {strides = array<i32>} : memref<36x128xbf16, #tpu.memory_space<vmem>>, vector<1x128xbf16>,
    %c20_70 = arith.constant 20 : index
    %c0_71 = arith.constant 0 : index
    %88 = vector.load %arg11[%c20_70, %c0_71] : memref<78x128xf32, #tpu.memory_space<vmem>>, vector<8x128xf32>
    %c30 = arith.constant 30 : index
    %c0_72 = arith.constant 0 : index
    %89 = vector.load %arg11[%c30, %c0_72] : memref<78x128xf32, #tpu.memory_space<vmem>>, vector<8x128xf32>
    %90 = arith.maximumf %88, %89 : vector<8x128xf32>
    %91 = vector.extract_strided_slice %90 {offsets = [0, 0], sizes = [1, 128], strides = [1, 1]} : vector<8x128xf32> to vector<1x128xf32>
    %92 = vector.extract_strided_slice %90 {offsets = [1, 0], sizes = [1, 128], strides = [1, 1]} : vector<8x128xf32> to vector<1x128xf32>
    %93 = arith.maximumf %91, %92 : vector<1x128xf32>
    %94 = arith.truncf %93 : vector<1x128xf32> to vector<1x128xbf16>
    %c13 = arith.constant 13 : index
    %c0_73 = arith.constant 0 : index
    %95 = vector.load %arg12[%c13, %c0_73] : memref<36x128xbf16, #tpu.memory_space<vmem>>, vector<1x128xbf16>
    tpu.vector_store %arg12[%c13, %c0_73], %94 {strides = array<i32>} : memref<36x128xbf16, #tpu.memory_space<vmem>>, vector<1x128xbf16>,
    %96 = vector.extract_strided_slice %90 {offsets = [2, 0], sizes = [1, 128], strides = [1, 1]} : vector<8x128xf32> to vector<1x128xf32>
    %97 = vector.extract_strided_slice %90 {offsets = [3, 0], sizes = [1, 128], strides = [1, 1]} : vector<8x128xf32> to vector<1x128xf32>
    %98 = arith.maximumf %96, %97 : vector<1x128xf32>
    %99 = arith.truncf %98 : vector<1x128xf32> to vector<1x128xbf16>
    %c14 = arith.constant 14 : index
    %c0_74 = arith.constant 0 : index
    %100 = vector.load %arg12[%c14, %c0_74] : memref<36x128xbf16, #tpu.memory_space<vmem>>, vector<1x128xbf16>
    tpu.vector_store %arg12[%c14, %c0_74], %99 {strides = array<i32>} : memref<36x128xbf16, #tpu.memory_space<vmem>>, vector<1x128xbf16>,
    %101 = vector.extract_strided_slice %90 {offsets = [4, 0], sizes = [1, 128], strides = [1, 1]} : vector<8x128xf32> to vector<1x128xf32>
    %102 = vector.extract_strided_slice %90 {offsets = [5, 0], sizes = [1, 128], strides = [1, 1]} : vector<8x128xf32> to vector<1x128xf32>
    %103 = arith.maximumf %101, %102 : vector<1x128xf32>
    %104 = arith.truncf %103 : vector<1x128xf32> to vector<1x128xbf16>
    %c15 = arith.constant 15 : index
    %c0_75 = arith.constant 0 : index
    %105 = vector.load %arg12[%c15, %c0_75] : memref<36x128xbf16, #tpu.memory_space<vmem>>, vector<1x128xbf16>
    tpu.vector_store %arg12[%c15, %c0_75], %104 {strides = array<i32>} : memref<36x128xbf16, #tpu.memory_space<vmem>>, vector<1x128xbf16>,
    %106 = vector.extract_strided_slice %90 {offsets = [6, 0], sizes = [1, 128], strides = [1, 1]} : vector<8x128xf32> to vector<1x128xf32>
    %107 = vector.extract_strided_slice %90 {offsets = [7, 0], sizes = [1, 128], strides = [1, 1]} : vector<8x128xf32> to vector<1x128xf32>
    %108 = arith.maximumf %106, %107 : vector<1x128xf32>
    %109 = arith.truncf %108 : vector<1x128xf32> to vector<1x128xbf16>
    %c16 = arith.constant 16 : index
    %c0_76 = arith.constant 0 : index
    %110 = vector.load %arg12[%c16, %c0_76] : memref<36x128xbf16, #tpu.memory_space<vmem>>, vector<1x128xbf16>
    tpu.vector_store %arg12[%c16, %c0_76], %109 {strides = array<i32>} : memref<36x128xbf16, #tpu.memory_space<vmem>>, vector<1x128xbf16>,
    %c40 = arith.constant 40 : index
    %c0_77 = arith.constant 0 : index
    %111 = vector.load %arg11[%c40, %c0_77] : memref<78x128xf32, #tpu.memory_space<vmem>>, vector<8x128xf32>
    %c50 = arith.constant 50 : index
    %c0_78 = arith.constant 0 : index
    %112 = vector.load %arg11[%c50, %c0_78] : memref<78x128xf32, #tpu.memory_space<vmem>>, vector<8x128xf32>
    %113 = arith.maximumf %111, %112 : vector<8x128xf32>
    %114 = vector.extract_strided_slice %113 {offsets = [0, 0], sizes = [1, 128], strides = [1, 1]} : vector<8x128xf32> to vector<1x128xf32>
    %115 = vector.extract_strided_slice %113 {offsets = [1, 0], sizes = [1, 128], strides = [1, 1]} : vector<8x128xf32> to vector<1x128xf32>
    %116 = arith.maximumf %114, %115 : vector<1x128xf32>
    %117 = arith.truncf %116 : vector<1x128xf32> to vector<1x128xbf16>
    %c19 = arith.constant 19 : index
    %c0_79 = arith.constant 0 : index
    %118 = vector.load %arg12[%c19, %c0_79] : memref<36x128xbf16, #tpu.memory_space<vmem>>, vector<1x128xbf16>
    tpu.vector_store %arg12[%c19, %c0_79], %117 {strides = array<i32>} : memref<36x128xbf16, #tpu.memory_space<vmem>>, vector<1x128xbf16>,
    %119 = vector.extract_strided_slice %113 {offsets = [2, 0], sizes = [1, 128], strides = [1, 1]} : vector<8x128xf32> to vector<1x128xf32>
    %120 = vector.extract_strided_slice %113 {offsets = [3, 0], sizes = [1, 128], strides = [1, 1]} : vector<8x128xf32> to vector<1x128xf32>
    %121 = arith.maximumf %119, %120 : vector<1x128xf32>
    %122 = arith.truncf %121 : vector<1x128xf32> to vector<1x128xbf16>
    %c20_80 = arith.constant 20 : index
    %c0_81 = arith.constant 0 : index
    %123 = vector.load %arg12[%c20_80, %c0_81] : memref<36x128xbf16, #tpu.memory_space<vmem>>, vector<1x128xbf16>
    tpu.vector_store %arg12[%c20_80, %c0_81], %122 {strides = array<i32>} : memref<36x128xbf16, #tpu.memory_space<vmem>>, vector<1x128xbf16>,
    %124 = vector.extract_strided_slice %113 {offsets = [4, 0], sizes = [1, 128], strides = [1, 1]} : vector<8x128xf32> to vector<1x128xf32>
    %125 = vector.extract_strided_slice %113 {offsets = [5, 0], sizes = [1, 128], strides = [1, 1]} : vector<8x128xf32> to vector<1x128xf32>
    %126 = arith.maximumf %124, %125 : vector<1x128xf32>
    %127 = arith.truncf %126 : vector<1x128xf32> to vector<1x128xbf16>
    %c21_82 = arith.constant 21 : index
    %c0_83 = arith.constant 0 : index
    %128 = vector.load %arg12[%c21_82, %c0_83] : memref<36x128xbf16, #tpu.memory_space<vmem>>, vector<1x128xbf16>
    tpu.vector_store %arg12[%c21_82, %c0_83], %127 {strides = array<i32>} : memref<36x128xbf16, #tpu.memory_space<vmem>>, vector<1x128xbf16>,
    %129 = vector.extract_strided_slice %113 {offsets = [6, 0], sizes = [1, 128], strides = [1, 1]} : vector<8x128xf32> to vector<1x128xf32>
    %130 = vector.extract_strided_slice %113 {offsets = [7, 0], sizes = [1, 128], strides = [1, 1]} : vector<8x128xf32> to vector<1x128xf32>
    %131 = arith.maximumf %129, %130 : vector<1x128xf32>
    %132 = arith.truncf %131 : vector<1x128xf32> to vector<1x128xbf16>
    %c22_84 = arith.constant 22 : index
    %c0_85 = arith.constant 0 : index
    %133 = vector.load %arg12[%c22_84, %c0_85] : memref<36x128xbf16, #tpu.memory_space<vmem>>, vector<1x128xbf16>
    tpu.vector_store %arg12[%c22_84, %c0_85], %132 {strides = array<i32>} : memref<36x128xbf16, #tpu.memory_space<vmem>>, vector<1x128xbf16>,
    %c60 = arith.constant 60 : index
    %c0_86 = arith.constant 0 : index
    %134 = vector.load %arg11[%c60, %c0_86] : memref<78x128xf32, #tpu.memory_space<vmem>>, vector<8x128xf32>
    %c70 = arith.constant 70 : index
    %c0_87 = arith.constant 0 : index
    %135 = vector.load %arg11[%c70, %c0_87] : memref<78x128xf32, #tpu.memory_space<vmem>>, vector<8x128xf32>
    %136 = arith.maximumf %134, %135 : vector<8x128xf32>
    %137 = vector.extract_strided_slice %136 {offsets = [0, 0], sizes = [1, 128], strides = [1, 1]} : vector<8x128xf32> to vector<1x128xf32>
    %138 = vector.extract_strided_slice %136 {offsets = [1, 0], sizes = [1, 128], strides = [1, 1]} : vector<8x128xf32> to vector<1x128xf32>
    %139 = arith.maximumf %137, %138 : vector<1x128xf32>
    %140 = arith.truncf %139 : vector<1x128xf32> to vector<1x128xbf16>
    %c25 = arith.constant 25 : index
    %c0_88 = arith.constant 0 : index
    %141 = vector.load %arg12[%c25, %c0_88] : memref<36x128xbf16, #tpu.memory_space<vmem>>, vector<1x128xbf16>
    tpu.vector_store %arg12[%c25, %c0_88], %140 {strides = array<i32>} : memref<36x128xbf16, #tpu.memory_space<vmem>>, vector<1x128xbf16>,
    %142 = vector.extract_strided_slice %136 {offsets = [2, 0], sizes = [1, 128], strides = [1, 1]} : vector<8x128xf32> to vector<1x128xf32>
    %143 = vector.extract_strided_slice %136 {offsets = [3, 0], sizes = [1, 128], strides = [1, 1]} : vector<8x128xf32> to vector<1x128xf32>
    %144 = arith.maximumf %142, %143 : vector<1x128xf32>
    %145 = arith.truncf %144 : vector<1x128xf32> to vector<1x128xbf16>
    %c26 = arith.constant 26 : index
    %c0_89 = arith.constant 0 : index
    %146 = vector.load %arg12[%c26, %c0_89] : memref<36x128xbf16, #tpu.memory_space<vmem>>, vector<1x128xbf16>
    tpu.vector_store %arg12[%c26, %c0_89], %145 {strides = array<i32>} : memref<36x128xbf16, #tpu.memory_space<vmem>>, vector<1x128xbf16>,
    %147 = vector.extract_strided_slice %136 {offsets = [4, 0], sizes = [1, 128], strides = [1, 1]} : vector<8x128xf32> to vector<1x128xf32>
    %148 = vector.extract_strided_slice %136 {offsets = [5, 0], sizes = [1, 128], strides = [1, 1]} : vector<8x128xf32> to vector<1x128xf32>
    %149 = arith.maximumf %147, %148 : vector<1x128xf32>
    %150 = arith.truncf %149 : vector<1x128xf32> to vector<1x128xbf16>
    %c27 = arith.constant 27 : index
    %c0_90 = arith.constant 0 : index
    %151 = vector.load %arg12[%c27, %c0_90] : memref<36x128xbf16, #tpu.memory_space<vmem>>, vector<1x128xbf16>
    tpu.vector_store %arg12[%c27, %c0_90], %150 {strides = array<i32>} : memref<36x128xbf16, #tpu.memory_space<vmem>>, vector<1x128xbf16>,
    %152 = vector.extract_strided_slice %136 {offsets = [6, 0], sizes = [1, 128], strides = [1, 1]} : vector<8x128xf32> to vector<1x128xf32>
    %153 = vector.extract_strided_slice %136 {offsets = [7, 0], sizes = [1, 128], strides = [1, 1]} : vector<8x128xf32> to vector<1x128xf32>
    %154 = arith.maximumf %152, %153 : vector<1x128xf32>
    %155 = arith.truncf %154 : vector<1x128xf32> to vector<1x128xbf16>
    %c28 = arith.constant 28 : index
    %c0_91 = arith.constant 0 : index
    %156 = vector.load %arg12[%c28, %c0_91] : memref<36x128xbf16, #tpu.memory_space<vmem>>, vector<1x128xbf16>
    tpu.vector_store %arg12[%c28, %c0_91], %155 {strides = array<i32>} : memref<36x128xbf16, #tpu.memory_space<vmem>>, vector<1x128xbf16>,
    %cst_92 = arith.constant 0.000000e+00 : f32
    %157 = vector.broadcast %cst_92 : f32 to vector<22x128xf32>
    %c0_93 = arith.constant 0 : index
    %c0_94 = arith.constant 0 : index
    %158 = vector.load %arg12[%c0_93, %c0_94] : memref<36x128xbf16, #tpu.memory_space<vmem>>, vector<22x128xbf16>
    %c0_95 = arith.constant 0 : index
    %c0_96 = arith.constant 0 : index
    %c0_97 = arith.constant 0 : index
    %159 = vector.load %arg4[%c0_95, %c0_96, %c0_97] : memref<9x128x128xbf16, #tpu.memory_space<vmem>>, vector<1x128x128xbf16>
    %160 = vector.shape_cast %159 : vector<1x128x128xbf16> to vector<128x128xbf16>
    %cst_98 = arith.constant dense<0.000000e+00> : vector<22x128xf32>
    %161 = tpu.matmul %158, %160, %cst_98 {dimension_numbers = #tpu.dot_dimension_numbers<[1], [0], [0], [1], [0, 0, 1, 1], [], []>} : vector<22x128xbf16>, vector<128x128xbf16>, vector<22x128xf32> -> vector<22x128xf32>
    %162 = arith.addf %157, %161 : vector<22x128xf32>
    %c1_99 = arith.constant 1 : index
    %c0_100 = arith.constant 0 : index
    %163 = vector.load %arg12[%c1_99, %c0_100] : memref<36x128xbf16, #tpu.memory_space<vmem>>, vector<22x128xbf16>
    %c1_101 = arith.constant 1 : index
    %c0_102 = arith.constant 0 : index
    %c0_103 = arith.constant 0 : index
    %164 = vector.load %arg4[%c1_101, %c0_102, %c0_103] : memref<9x128x128xbf16, #tpu.memory_space<vmem>>, vector<1x128x128xbf16>
    %165 = vector.shape_cast %164 : vector<1x128x128xbf16> to vector<128x128xbf16>
    %cst_104 = arith.constant dense<0.000000e+00> : vector<22x128xf32>
    %166 = tpu.matmul %163, %165, %cst_104 {dimension_numbers = #tpu.dot_dimension_numbers<[1], [0], [0], [1], [0, 0, 1, 1], [], []>} : vector<22x128xbf16>, vector<128x128xbf16>, vector<22x128xf32> -> vector<22x128xf32>
    %167 = arith.addf %162, %166 : vector<22x128xf32>
    %c2_105 = arith.constant 2 : index
    %c0_106 = arith.constant 0 : index
    %168 = vector.load %arg12[%c2_105, %c0_106] : memref<36x128xbf16, #tpu.memory_space<vmem>>, vector<22x128xbf16>
    %c2_107 = arith.constant 2 : index
    %c0_108 = arith.constant 0 : index
    %c0_109 = arith.constant 0 : index
    %169 = vector.load %arg4[%c2_107, %c0_108, %c0_109] : memref<9x128x128xbf16, #tpu.memory_space<vmem>>, vector<1x128x128xbf16>
    %170 = vector.shape_cast %169 : vector<1x128x128xbf16> to vector<128x128xbf16>
    %cst_110 = arith.constant dense<0.000000e+00> : vector<22x128xf32>
    %171 = tpu.matmul %168, %170, %cst_110 {dimension_numbers = #tpu.dot_dimension_numbers<[1], [0], [0], [1], [0, 0, 1, 1], [], []>} : vector<22x128xbf16>, vector<128x128xbf16>, vector<22x128xf32> -> vector<22x128xf32>
    %172 = arith.addf %167, %171 : vector<22x128xf32>
    %c6_111 = arith.constant 6 : index
    %c0_112 = arith.constant 0 : index
    %173 = vector.load %arg12[%c6_111, %c0_112] : memref<36x128xbf16, #tpu.memory_space<vmem>>, vector<22x128xbf16>
    %c3_113 = arith.constant 3 : index
    %c0_114 = arith.constant 0 : index
    %c0_115 = arith.constant 0 : index
    %174 = vector.load %arg4[%c3_113, %c0_114, %c0_115] : memref<9x128x128xbf16, #tpu.memory_space<vmem>>, vector<1x128x128xbf16>
    %175 = vector.shape_cast %174 : vector<1x128x128xbf16> to vector<128x128xbf16>
    %cst_116 = arith.constant dense<0.000000e+00> : vector<22x128xf32>
    %176 = tpu.matmul %173, %175, %cst_116 {dimension_numbers = #tpu.dot_dimension_numbers<[1], [0], [0], [1], [0, 0, 1, 1], [], []>} : vector<22x128xbf16>, vector<128x128xbf16>, vector<22x128xf32> -> vector<22x128xf32>
    %177 = arith.addf %172, %176 : vector<22x128xf32>
    %c7_117 = arith.constant 7 : index
    %c0_118 = arith.constant 0 : index
    %178 = vector.load %arg12[%c7_117, %c0_118] : memref<36x128xbf16, #tpu.memory_space<vmem>>, vector<22x128xbf16>
    %c4_119 = arith.constant 4 : index
    %c0_120 = arith.constant 0 : index
    %c0_121 = arith.constant 0 : index
    %179 = vector.load %arg4[%c4_119, %c0_120, %c0_121] : memref<9x128x128xbf16, #tpu.memory_space<vmem>>, vector<1x128x128xbf16>
    %180 = vector.shape_cast %179 : vector<1x128x128xbf16> to vector<128x128xbf16>
    %cst_122 = arith.constant dense<0.000000e+00> : vector<22x128xf32>
    %181 = tpu.matmul %178, %180, %cst_122 {dimension_numbers = #tpu.dot_dimension_numbers<[1], [0], [0], [1], [0, 0, 1, 1], [], []>} : vector<22x128xbf16>, vector<128x128xbf16>, vector<22x128xf32> -> vector<22x128xf32>
    %182 = arith.addf %177, %181 : vector<22x128xf32>
    %c8_123 = arith.constant 8 : index
    %c0_124 = arith.constant 0 : index
    %183 = vector.load %arg12[%c8_123, %c0_124] : memref<36x128xbf16, #tpu.memory_space<vmem>>, vector<22x128xbf16>
    %c5_125 = arith.constant 5 : index
    %c0_126 = arith.constant 0 : index
    %c0_127 = arith.constant 0 : index
    %184 = vector.load %arg4[%c5_125, %c0_126, %c0_127] : memref<9x128x128xbf16, #tpu.memory_space<vmem>>, vector<1x128x128xbf16>
    %185 = vector.shape_cast %184 : vector<1x128x128xbf16> to vector<128x128xbf16>
    %cst_128 = arith.constant dense<0.000000e+00> : vector<22x128xf32>
    %186 = tpu.matmul %183, %185, %cst_128 {dimension_numbers = #tpu.dot_dimension_numbers<[1], [0], [0], [1], [0, 0, 1, 1], [], []>} : vector<22x128xbf16>, vector<128x128xbf16>, vector<22x128xf32> -> vector<22x128xf32>
    %187 = arith.addf %182, %186 : vector<22x128xf32>
    %c12_129 = arith.constant 12 : index
    %c0_130 = arith.constant 0 : index
    %188 = vector.load %arg12[%c12_129, %c0_130] : memref<36x128xbf16, #tpu.memory_space<vmem>>, vector<22x128xbf16>
    %c6_131 = arith.constant 6 : index
    %c0_132 = arith.constant 0 : index
    %c0_133 = arith.constant 0 : index
    %189 = vector.load %arg4[%c6_131, %c0_132, %c0_133] : memref<9x128x128xbf16, #tpu.memory_space<vmem>>, vector<1x128x128xbf16>
    %190 = vector.shape_cast %189 : vector<1x128x128xbf16> to vector<128x128xbf16>
    %cst_134 = arith.constant dense<0.000000e+00> : vector<22x128xf32>
    %191 = tpu.matmul %188, %190, %cst_134 {dimension_numbers = #tpu.dot_dimension_numbers<[1], [0], [0], [1], [0, 0, 1, 1], [], []>} : vector<22x128xbf16>, vector<128x128xbf16>, vector<22x128xf32> -> vector<22x128xf32>
    %192 = arith.addf %187, %191 : vector<22x128xf32>
    %c13_135 = arith.constant 13 : index
    %c0_136 = arith.constant 0 : index
    %193 = vector.load %arg12[%c13_135, %c0_136] : memref<36x128xbf16, #tpu.memory_space<vmem>>, vector<22x128xbf16>
    %c7_137 = arith.constant 7 : index
    %c0_138 = arith.constant 0 : index
    %c0_139 = arith.constant 0 : index
    %194 = vector.load %arg4[%c7_137, %c0_138, %c0_139] : memref<9x128x128xbf16, #tpu.memory_space<vmem>>, vector<1x128x128xbf16>
    %195 = vector.shape_cast %194 : vector<1x128x128xbf16> to vector<128x128xbf16>
    %cst_140 = arith.constant dense<0.000000e+00> : vector<22x128xf32>
    %196 = tpu.matmul %193, %195, %cst_140 {dimension_numbers = #tpu.dot_dimension_numbers<[1], [0], [0], [1], [0, 0, 1, 1], [], []>} : vector<22x128xbf16>, vector<128x128xbf16>, vector<22x128xf32> -> vector<22x128xf32>
    %197 = arith.addf %192, %196 : vector<22x128xf32>
    %c14_141 = arith.constant 14 : index
    %c0_142 = arith.constant 0 : index
    %198 = vector.load %arg12[%c14_141, %c0_142] : memref<36x128xbf16, #tpu.memory_space<vmem>>, vector<22x128xbf16>
    %c8_143 = arith.constant 8 : index
    %c0_144 = arith.constant 0 : index
    %c0_145 = arith.constant 0 : index
    %199 = vector.load %arg4[%c8_143, %c0_144, %c0_145] : memref<9x128x128xbf16, #tpu.memory_space<vmem>>, vector<1x128x128xbf16>
    %200 = vector.shape_cast %199 : vector<1x128x128xbf16> to vector<128x128xbf16>
    %cst_146 = arith.constant dense<0.000000e+00> : vector<22x128xf32>
    %201 = tpu.matmul %198, %200, %cst_146 {dimension_numbers = #tpu.dot_dimension_numbers<[1], [0], [0], [1], [0, 0, 1, 1], [], []>} : vector<22x128xbf16>, vector<128x128xbf16>, vector<22x128xf32> -> vector<22x128xf32>
    %202 = arith.addf %197, %201 : vector<22x128xf32>
    %c0_147 = arith.constant 0 : index
    %c0_148 = arith.constant 0 : index
    %203 = vector.load %arg5[%c0_147, %c0_148] : memref<1x128xf32, #tpu.memory_space<vmem>>, vector<1x128xf32>
    %204 = vector.broadcast %203 : vector<1x128xf32> to vector<22x128xf32>
    %205 = arith.addf %202, %204 : vector<22x128xf32>
    %cst_149 = arith.constant 0.000000e+00 : f32
    %206 = vector.broadcast %cst_149 : f32 to vector<22x128xf32>
    %207 = arith.maximumf %205, %206 : vector<22x128xf32>
    %c0_150 = arith.constant 0 : index
    %c0_151 = arith.constant 0 : index
    %208 = vector.load %arg11[%c0_150, %c0_151] : memref<78x128xf32, #tpu.memory_space<vmem>>, vector<22x128xf32>
    tpu.vector_store %arg11[%c0_150, %c0_151], %207 {strides = array<i32>} : memref<78x128xf32, #tpu.memory_space<vmem>>, vector<22x128xf32>,
    %c0_152 = arith.constant 0 : index
    %c0_153 = arith.constant 0 : index
    %209 = vector.load %arg11[%c0_152, %c0_153] : memref<78x128xf32, #tpu.memory_space<vmem>>, vector<4x128xf32>
    %c6_154 = arith.constant 6 : index
    %c0_155 = arith.constant 0 : index
    %210 = vector.load %arg11[%c6_154, %c0_155] : memref<78x128xf32, #tpu.memory_space<vmem>>, vector<4x128xf32>
    %211 = arith.maximumf %209, %210 : vector<4x128xf32>
    %212 = vector.extract_strided_slice %211 {offsets = [0, 0], sizes = [1, 128], strides = [1, 1]} : vector<4x128xf32> to vector<1x128xf32>
    %213 = vector.extract_strided_slice %211 {offsets = [1, 0], sizes = [1, 128], strides = [1, 1]} : vector<4x128xf32> to vector<1x128xf32>
    %214 = arith.maximumf %212, %213 : vector<1x128xf32>
    %215 = arith.truncf %214 : vector<1x128xf32> to vector<1x128xbf16>
    %c5_156 = arith.constant 5 : index
    %c0_157 = arith.constant 0 : index
    %216 = vector.load %arg13[%c5_156, %c0_157] : memref<16x128xbf16, #tpu.memory_space<vmem>>, vector<1x128xbf16>
    tpu.vector_store %arg13[%c5_156, %c0_157], %215 {strides = array<i32>} : memref<16x128xbf16, #tpu.memory_space<vmem>>, vector<1x128xbf16>,
    %217 = vector.extract_strided_slice %211 {offsets = [2, 0], sizes = [1, 128], strides = [1, 1]} : vector<4x128xf32> to vector<1x128xf32>
    %218 = vector.extract_strided_slice %211 {offsets = [3, 0], sizes = [1, 128], strides = [1, 1]} : vector<4x128xf32> to vector<1x128xf32>
    %219 = arith.maximumf %217, %218 : vector<1x128xf32>
    %220 = arith.truncf %219 : vector<1x128xf32> to vector<1x128xbf16>
    %c6_158 = arith.constant 6 : index
    %c0_159 = arith.constant 0 : index
    %221 = vector.load %arg13[%c6_158, %c0_159] : memref<16x128xbf16, #tpu.memory_space<vmem>>, vector<1x128xbf16>
    tpu.vector_store %arg13[%c6_158, %c0_159], %220 {strides = array<i32>} : memref<16x128xbf16, #tpu.memory_space<vmem>>, vector<1x128xbf16>,
    %c12_160 = arith.constant 12 : index
    %c0_161 = arith.constant 0 : index
    %222 = vector.load %arg11[%c12_160, %c0_161] : memref<78x128xf32, #tpu.memory_space<vmem>>, vector<4x128xf32>
    %c18 = arith.constant 18 : index
    %c0_162 = arith.constant 0 : index
    %223 = vector.load %arg11[%c18, %c0_162] : memref<78x128xf32, #tpu.memory_space<vmem>>, vector<4x128xf32>
    %224 = arith.maximumf %222, %223 : vector<4x128xf32>
    %225 = vector.extract_strided_slice %224 {offsets = [0, 0], sizes = [1, 128], strides = [1, 1]} : vector<4x128xf32> to vector<1x128xf32>
    %226 = vector.extract_strided_slice %224 {offsets = [1, 0], sizes = [1, 128], strides = [1, 1]} : vector<4x128xf32> to vector<1x128xf32>
    %227 = arith.maximumf %225, %226 : vector<1x128xf32>
    %228 = arith.truncf %227 : vector<1x128xf32> to vector<1x128xbf16>
    %c9_163 = arith.constant 9 : index
    %c0_164 = arith.constant 0 : index
    %229 = vector.load %arg13[%c9_163, %c0_164] : memref<16x128xbf16, #tpu.memory_space<vmem>>, vector<1x128xbf16>
    tpu.vector_store %arg13[%c9_163, %c0_164], %228 {strides = array<i32>} : memref<16x128xbf16, #tpu.memory_space<vmem>>, vector<1x128xbf16>,
    %230 = vector.extract_strided_slice %224 {offsets = [2, 0], sizes = [1, 128], strides = [1, 1]} : vector<4x128xf32> to vector<1x128xf32>
    %231 = vector.extract_strided_slice %224 {offsets = [3, 0], sizes = [1, 128], strides = [1, 1]} : vector<4x128xf32> to vector<1x128xf32>
    %232 = arith.maximumf %230, %231 : vector<1x128xf32>
    %233 = arith.truncf %232 : vector<1x128xf32> to vector<1x128xbf16>
    %c10_165 = arith.constant 10 : index
    %c0_166 = arith.constant 0 : index
    %234 = vector.load %arg13[%c10_165, %c0_166] : memref<16x128xbf16, #tpu.memory_space<vmem>>, vector<1x128xbf16>
    tpu.vector_store %arg13[%c10_165, %c0_166], %233 {strides = array<i32>} : memref<16x128xbf16, #tpu.memory_space<vmem>>, vector<1x128xbf16>,
    %cst_167 = arith.constant 0.000000e+00 : f32
    %235 = vector.broadcast %cst_167 : f32 to vector<6x128xf32>
    %c0_168 = arith.constant 0 : index
    %c0_169 = arith.constant 0 : index
    %236 = vector.load %arg13[%c0_168, %c0_169] : memref<16x128xbf16, #tpu.memory_space<vmem>>, vector<6x128xbf16>
    %c0_170 = arith.constant 0 : index
    %c0_171 = arith.constant 0 : index
    %c0_172 = arith.constant 0 : index
    %237 = vector.load %arg6[%c0_170, %c0_171, %c0_172] : memref<9x128x128xbf16, #tpu.memory_space<vmem>>, vector<1x128x128xbf16>
    %238 = vector.shape_cast %237 : vector<1x128x128xbf16> to vector<128x128xbf16>
    %cst_173 = arith.constant dense<0.000000e+00> : vector<6x128xf32>
    %239 = tpu.matmul %236, %238, %cst_173 {dimension_numbers = #tpu.dot_dimension_numbers<[1], [0], [0], [1], [0, 0, 1, 1], [], []>} : vector<6x128xbf16>, vector<128x128xbf16>, vector<6x128xf32> -> vector<6x128xf32>
    %240 = arith.addf %235, %239 : vector<6x128xf32>
    %c1_174 = arith.constant 1 : index
    %c0_175 = arith.constant 0 : index
    %241 = vector.load %arg13[%c1_174, %c0_175] : memref<16x128xbf16, #tpu.memory_space<vmem>>, vector<6x128xbf16>
    %c1_176 = arith.constant 1 : index
    %c0_177 = arith.constant 0 : index
    %c0_178 = arith.constant 0 : index
    %242 = vector.load %arg6[%c1_176, %c0_177, %c0_178] : memref<9x128x128xbf16, #tpu.memory_space<vmem>>, vector<1x128x128xbf16>
    %243 = vector.shape_cast %242 : vector<1x128x128xbf16> to vector<128x128xbf16>
    %cst_179 = arith.constant dense<0.000000e+00> : vector<6x128xf32>
    %244 = tpu.matmul %241, %243, %cst_179 {dimension_numbers = #tpu.dot_dimension_numbers<[1], [0], [0], [1], [0, 0, 1, 1], [], []>} : vector<6x128xbf16>, vector<128x128xbf16>, vector<6x128xf32> -> vector<6x128xf32>
    %245 = arith.addf %240, %244 : vector<6x128xf32>
    %c2_180 = arith.constant 2 : index
    %c0_181 = arith.constant 0 : index
    %246 = vector.load %arg13[%c2_180, %c0_181] : memref<16x128xbf16, #tpu.memory_space<vmem>>, vector<6x128xbf16>
    %c2_182 = arith.constant 2 : index
    %c0_183 = arith.constant 0 : index
    %c0_184 = arith.constant 0 : index
    %247 = vector.load %arg6[%c2_182, %c0_183, %c0_184] : memref<9x128x128xbf16, #tpu.memory_space<vmem>>, vector<1x128x128xbf16>
    %248 = vector.shape_cast %247 : vector<1x128x128xbf16> to vector<128x128xbf16>
    %cst_185 = arith.constant dense<0.000000e+00> : vector<6x128xf32>
    %249 = tpu.matmul %246, %248, %cst_185 {dimension_numbers = #tpu.dot_dimension_numbers<[1], [0], [0], [1], [0, 0, 1, 1], [], []>} : vector<6x128xbf16>, vector<128x128xbf16>, vector<6x128xf32> -> vector<6x128xf32>
    %250 = arith.addf %245, %249 : vector<6x128xf32>
    %c4_186 = arith.constant 4 : index
    %c0_187 = arith.constant 0 : index
    %251 = vector.load %arg13[%c4_186, %c0_187] : memref<16x128xbf16, #tpu.memory_space<vmem>>, vector<6x128xbf16>
    %c3_188 = arith.constant 3 : index
    %c0_189 = arith.constant 0 : index
    %c0_190 = arith.constant 0 : index
    %252 = vector.load %arg6[%c3_188, %c0_189, %c0_190] : memref<9x128x128xbf16, #tpu.memory_space<vmem>>, vector<1x128x128xbf16>
    %253 = vector.shape_cast %252 : vector<1x128x128xbf16> to vector<128x128xbf16>
    %cst_191 = arith.constant dense<0.000000e+00> : vector<6x128xf32>
    %254 = tpu.matmul %251, %253, %cst_191 {dimension_numbers = #tpu.dot_dimension_numbers<[1], [0], [0], [1], [0, 0, 1, 1], [], []>} : vector<6x128xbf16>, vector<128x128xbf16>, vector<6x128xf32> -> vector<6x128xf32>
    %255 = arith.addf %250, %254 : vector<6x128xf32>
    %c5_192 = arith.constant 5 : index
    %c0_193 = arith.constant 0 : index
    %256 = vector.load %arg13[%c5_192, %c0_193] : memref<16x128xbf16, #tpu.memory_space<vmem>>, vector<6x128xbf16>
    %c4_194 = arith.constant 4 : index
    %c0_195 = arith.constant 0 : index
    %c0_196 = arith.constant 0 : index
    %257 = vector.load %arg6[%c4_194, %c0_195, %c0_196] : memref<9x128x128xbf16, #tpu.memory_space<vmem>>, vector<1x128x128xbf16>
    %258 = vector.shape_cast %257 : vector<1x128x128xbf16> to vector<128x128xbf16>
    %cst_197 = arith.constant dense<0.000000e+00> : vector<6x128xf32>
    %259 = tpu.matmul %256, %258, %cst_197 {dimension_numbers = #tpu.dot_dimension_numbers<[1], [0], [0], [1], [0, 0, 1, 1], [], []>} : vector<6x128xbf16>, vector<128x128xbf16>, vector<6x128xf32> -> vector<6x128xf32>
    %260 = arith.addf %255, %259 : vector<6x128xf32>
    %c6_198 = arith.constant 6 : index
    %c0_199 = arith.constant 0 : index
    %261 = vector.load %arg13[%c6_198, %c0_199] : memref<16x128xbf16, #tpu.memory_space<vmem>>, vector<6x128xbf16>
    %c5_200 = arith.constant 5 : index
    %c0_201 = arith.constant 0 : index
    %c0_202 = arith.constant 0 : index
    %262 = vector.load %arg6[%c5_200, %c0_201, %c0_202] : memref<9x128x128xbf16, #tpu.memory_space<vmem>>, vector<1x128x128xbf16>
    %263 = vector.shape_cast %262 : vector<1x128x128xbf16> to vector<128x128xbf16>
    %cst_203 = arith.constant dense<0.000000e+00> : vector<6x128xf32>
    %264 = tpu.matmul %261, %263, %cst_203 {dimension_numbers = #tpu.dot_dimension_numbers<[1], [0], [0], [1], [0, 0, 1, 1], [], []>} : vector<6x128xbf16>, vector<128x128xbf16>, vector<6x128xf32> -> vector<6x128xf32>
    %265 = arith.addf %260, %264 : vector<6x128xf32>
    %c8_204 = arith.constant 8 : index
    %c0_205 = arith.constant 0 : index
    %266 = vector.load %arg13[%c8_204, %c0_205] : memref<16x128xbf16, #tpu.memory_space<vmem>>, vector<6x128xbf16>
    %c6_206 = arith.constant 6 : index
    %c0_207 = arith.constant 0 : index
    %c0_208 = arith.constant 0 : index
    %267 = vector.load %arg6[%c6_206, %c0_207, %c0_208] : memref<9x128x128xbf16, #tpu.memory_space<vmem>>, vector<1x128x128xbf16>
    %268 = vector.shape_cast %267 : vector<1x128x128xbf16> to vector<128x128xbf16>
    %cst_209 = arith.constant dense<0.000000e+00> : vector<6x128xf32>
    %269 = tpu.matmul %266, %268, %cst_209 {dimension_numbers = #tpu.dot_dimension_numbers<[1], [0], [0], [1], [0, 0, 1, 1], [], []>} : vector<6x128xbf16>, vector<128x128xbf16>, vector<6x128xf32> -> vector<6x128xf32>
    %270 = arith.addf %265, %269 : vector<6x128xf32>
    %c9_210 = arith.constant 9 : index
    %c0_211 = arith.constant 0 : index
    %271 = vector.load %arg13[%c9_210, %c0_211] : memref<16x128xbf16, #tpu.memory_space<vmem>>, vector<6x128xbf16>
    %c7_212 = arith.constant 7 : index
    %c0_213 = arith.constant 0 : index
    %c0_214 = arith.constant 0 : index
    %272 = vector.load %arg6[%c7_212, %c0_213, %c0_214] : memref<9x128x128xbf16, #tpu.memory_space<vmem>>, vector<1x128x128xbf16>
    %273 = vector.shape_cast %272 : vector<1x128x128xbf16> to vector<128x128xbf16>
    %cst_215 = arith.constant dense<0.000000e+00> : vector<6x128xf32>
    %274 = tpu.matmul %271, %273, %cst_215 {dimension_numbers = #tpu.dot_dimension_numbers<[1], [0], [0], [1], [0, 0, 1, 1], [], []>} : vector<6x128xbf16>, vector<128x128xbf16>, vector<6x128xf32> -> vector<6x128xf32>
    %275 = arith.addf %270, %274 : vector<6x128xf32>
    %c10_216 = arith.constant 10 : index
    %c0_217 = arith.constant 0 : index
    %276 = vector.load %arg13[%c10_216, %c0_217] : memref<16x128xbf16, #tpu.memory_space<vmem>>, vector<6x128xbf16>
    %c8_218 = arith.constant 8 : index
    %c0_219 = arith.constant 0 : index
    %c0_220 = arith.constant 0 : index
    %277 = vector.load %arg6[%c8_218, %c0_219, %c0_220] : memref<9x128x128xbf16, #tpu.memory_space<vmem>>, vector<1x128x128xbf16>
    %278 = vector.shape_cast %277 : vector<1x128x128xbf16> to vector<128x128xbf16>
    %cst_221 = arith.constant dense<0.000000e+00> : vector<6x128xf32>
    %279 = tpu.matmul %276, %278, %cst_221 {dimension_numbers = #tpu.dot_dimension_numbers<[1], [0], [0], [1], [0, 0, 1, 1], [], []>} : vector<6x128xbf16>, vector<128x128xbf16>, vector<6x128xf32> -> vector<6x128xf32>
    %280 = arith.addf %275, %279 : vector<6x128xf32>
    %c0_222 = arith.constant 0 : index
    %c0_223 = arith.constant 0 : index
    %281 = vector.load %arg7[%c0_222, %c0_223] : memref<1x128xf32, #tpu.memory_space<vmem>>, vector<1x128xf32>
    %282 = vector.broadcast %281 : vector<1x128xf32> to vector<6x128xf32>
    %283 = arith.addf %280, %282 : vector<6x128xf32>
    %cst_224 = arith.constant 0.000000e+00 : f32
    %284 = vector.broadcast %cst_224 : f32 to vector<6x128xf32>
    %285 = arith.maximumf %283, %284 : vector<6x128xf32>
    %c0_225 = arith.constant 0 : index
    %c0_226 = arith.constant 0 : index
    %286 = vector.load %arg11[%c0_225, %c0_226] : memref<78x128xf32, #tpu.memory_space<vmem>>, vector<6x128xf32>
    tpu.vector_store %arg11[%c0_225, %c0_226], %285 {strides = array<i32>} : memref<78x128xf32, #tpu.memory_space<vmem>>, vector<6x128xf32>,
    %c0_227 = arith.constant 0 : index
    %c0_228 = arith.constant 0 : index
    %287 = vector.load %arg11[%c0_227, %c0_228] : memref<78x128xf32, #tpu.memory_space<vmem>>, vector<2x128xf32>
    %c4_229 = arith.constant 4 : index
    %c0_230 = arith.constant 0 : index
    %288 = vector.load %arg11[%c4_229, %c0_230] : memref<78x128xf32, #tpu.memory_space<vmem>>, vector<2x128xf32>
    %289 = arith.maximumf %287, %288 : vector<2x128xf32>
    %290 = vector.extract_strided_slice %289 {offsets = [0, 0], sizes = [1, 128], strides = [1, 1]} : vector<2x128xf32> to vector<1x128xf32>
    %291 = vector.extract_strided_slice %289 {offsets = [1, 0], sizes = [1, 128], strides = [1, 1]} : vector<2x128xf32> to vector<1x128xf32>
    %292 = arith.maximumf %290, %291 : vector<1x128xf32>
    %c0_231 = arith.constant 0 : index
    %c0_232 = arith.constant 0 : index
    %293 = vector.load %arg8[%c0_231, %c0_232] : memref<128x128xf32, #tpu.memory_space<vmem>>, vector<128x128xf32>
    %cst_233 = arith.constant dense<0.000000e+00> : vector<1x128xf32>
    %294 = tpu.matmul %292, %293, %cst_233 {dimension_numbers = #tpu.dot_dimension_numbers<[1], [0], [0], [1], [0, 0, 1, 1], [], []>} : vector<1x128xf32>, vector<128x128xf32>, vector<1x128xf32> -> vector<1x128xf32>
    %c0_234 = arith.constant 0 : index
    %c0_235 = arith.constant 0 : index
    %295 = vector.load %arg9[%c0_234, %c0_235] : memref<1x128xf32, #tpu.memory_space<vmem>>, vector<1x128xf32>
    %296 = arith.addf %294, %295 : vector<1x128xf32>
    %c0_236 = arith.constant 0 : index
    %c0_237 = arith.constant 0 : index
    %c0_238 = arith.constant 0 : index
    %297 = vector.load %arg10[%c0_236, %c0_237, %c0_238] : memref<1x1x128xf32, #tpu.memory_space<vmem>>, vector<1x1x128xf32>
    %298 = vector.shape_cast %297 : vector<1x1x128xf32> to vector<1x128xf32>
    %299 = vector.shape_cast %296 : vector<1x128xf32> to vector<1x1x128xf32>
    tpu.vector_store %arg10[%c0_236, %c0_237, %c0_238], %299 {strides = array<i32>} : memref<1x1x128xf32, #tpu.memory_space<vmem>>, vector<1x1x128xf32>,
    return
  }
  func.func @transform_0(%arg0: i32) -> (i32, i32, i32) {
    %c0_i32 = arith.constant 0 : i32
    %c0_i32_0 = arith.constant 0 : i32
    %c0_i32_1 = arith.constant 0 : i32
    return %arg0, %c0_i32, %c0_i32_0 : i32, i32, i32
  }
  func.func @transform_1(%arg0: i32) -> (i32, i32, i32) {
    %c0_i32 = arith.constant 0 : i32
    %c0_i32_0 = arith.constant 0 : i32
    %c0_i32_1 = arith.constant 0 : i32
    %c0_i32_2 = arith.constant 0 : i32
    return %c0_i32, %c0_i32_0, %c0_i32_1 : i32, i32, i32
  }
  func.func @transform_2(%arg0: i32) -> (i32, i32) {
    %c0_i32 = arith.constant 0 : i32
    %c0_i32_0 = arith.constant 0 : i32
    %c0_i32_1 = arith.constant 0 : i32
    return %c0_i32, %c0_i32_0 : i32, i32
  }
  func.func @transform_3(%arg0: i32) -> (i32, i32, i32) {
    %c0_i32 = arith.constant 0 : i32
    %c0_i32_0 = arith.constant 0 : i32
    %c0_i32_1 = arith.constant 0 : i32
    %c0_i32_2 = arith.constant 0 : i32
    return %c0_i32, %c0_i32_0, %c0_i32_1 : i32, i32, i32
  }
  func.func @transform_4(%arg0: i32) -> (i32, i32) {
    %c0_i32 = arith.constant 0 : i32
    %c0_i32_0 = arith.constant 0 : i32
    %c0_i32_1 = arith.constant 0 : i32
    return %c0_i32, %c0_i32_0 : i32, i32
  }
  func.func @transform_5(%arg0: i32) -> (i32, i32, i32) {
    %c0_i32 = arith.constant 0 : i32
    %c0_i32_0 = arith.constant 0 : i32
    %c0_i32_1 = arith.constant 0 : i32
    %c0_i32_2 = arith.constant 0 : i32
    return %c0_i32, %c0_i32_0, %c0_i32_1 : i32, i32, i32
  }
  func.func @transform_6(%arg0: i32) -> (i32, i32) {
    %c0_i32 = arith.constant 0 : i32
    %c0_i32_0 = arith.constant 0 : i32
    %c0_i32_1 = arith.constant 0 : i32
    return %c0_i32, %c0_i32_0 : i32, i32
  }
  func.func @transform_7(%arg0: i32) -> (i32, i32) {
    %c0_i32 = arith.constant 0 : i32
    %c0_i32_0 = arith.constant 0 : i32
    %c0_i32_1 = arith.constant 0 : i32
    return %c0_i32, %c0_i32_0 : i32, i32
  }
  func.func @transform_8(%arg0: i32) -> (i32, i32) {
    %c0_i32 = arith.constant 0 : i32
    %c0_i32_0 = arith.constant 0 : i32
    %c0_i32_1 = arith.constant 0 : i32
    return %c0_i32, %c0_i32_0 : i32, i32
  }
  func.func @transform_9(%arg0: i32) -> (i32, i32, i32) {
    %c0_i32 = arith.constant 0 : i32
    %c0_i32_0 = arith.constant 0 : i32
    %c0_i32_1 = arith.constant 0 : i32
    return %arg0, %c0_i32, %c0_i32_0 : i32, i32, i32
  }
}

</mosaic_0001>

<bundles_post_ra>
// kernel: _lambda_.1
= control target key start
LH: loop header
LB: loop body
LE: loop exit
PB: predicated region body
PF: predicated region fallthrough
CT: control target
= control target key end

     0   :  { %s5871_s0 = inlined_call_operand.vmem [shape: bf16[2,100,128], index: 0, kind: input, shape index: {}]   ;;  %s5872_s1 = inlined_call_operand.hbm [shape: bf16[9,128,128], index: 1, kind: input, shape index: {}]   ;;  %s5873_s2 = inlined_call_operand.vmem [shape: f32[1,128], index: 2, kind: input, shape index: {}]   ;;  %s5874_s3 = inlined_call_operand.hbm [shape: bf16[9,128,128], index: 3, kind: input, shape index: {}]   ;;  %s5875_s4 = inlined_call_operand.vmem [shape: f32[1,128], index: 4, kind: input, shape index: {}]   ;;  %s5876_s5 = inlined_call_operand.hbm [shape: bf16[9,128,128], index: 5, kind: input, shape index: {}]   ;;  %s5877_s6 = inlined_call_operand.vmem [shape: f32[1,128], index: 6, kind: input, shape index: {}]   ;;  %s5878_s7 = inlined_call_operand.vmem [shape: f32[128,128], index: 7, kind: input, shape index: {}]   ;;  %s5879_s8 = inlined_call_operand.vmem [shape: f32[1,128], index: 8, kind: input, shape index: {}]   ;;  %s5880_s9 = inlined_call_operand.hbm [shape: f32[2,1,128], index: 9, kind: output, shape index: {}]  }
   0x1   :  { %5881 = sst [smem:[#allocation16_spill]] %s5872_s1 }
   0x2   :  { %5882 = sst [smem:[#allocation17_spill]] %s5874_s3 }
   0x3   :  { %14 = vsyncpa [#allocation6], 0 }
   0x4   :  { %15 = vsyncpa [#allocation9], 0 }
   0x5   :  { %16 = vsyncpa [#allocation7], 0 }
   0x6   :  { %18 = vsyncpa [#allocation7 + $0x1], 0  ;;  %s5325_s30 = smov 0   ;;  %s5327_s10 = smov 0  }
   0x7   :  { %s5329_s11 = smov 0   ;;  %s5331_s12 = smov 0  }
   0x8 LB: > { %s5346_s13 = sadd.s32 4294967295, %s5267_s12   ;;  %s3827_s14 = sadd.s32 4294967294, %s5267_s12   ;;  %s5267_s12 = sphi %s5331_s12, %s5910_s12   ;;  %s5263_s11 = sphi %s5329_s11, %s5909_s11   ;;  %s5259_s10 = sphi %s5327_s10, %s5908_s10   ;;  %s5255_s30 = sphi %s5325_s30, %s5907_s30  }
   0x9   : > { %s5350_s15 = sadd.s32 1, %s5267_s12   ;;  %s225_s16 = sadd.s32 1, %s5263_s11 }
   0xa   : > { %s222_s17 = ssub.s32 %s5267_s12, %s5350_s15  ;;  %p235_p0 = scmp.ne.s32.totalorder %s5263_s11, %s5259_s10 }
   0xb   : > { %p223_p1 = scmp.eq.s32.totalorder %s222_s17, 0  ;;  %p236_p2 = scmp.eq.s32.totalorder %s5346_s13, 1 }
   0xc   : > { %p241_p3 = scmp.ne.s32.totalorder %s5259_s10, %s5255_s30  ;;  %p242_p4 = scmp.eq.s32.totalorder %s3827_s14, 1 }
   0xd   : > { %s5361_s18 = scalar_select %p223_p1, %s5263_s11, %s225_s16  }
   0xe   : > { %p5363_p5 = por %p236_p2, %p235_p0  ;;  %p5367_p6 = por %p242_p4, %p241_p3 }
   0xf   : > { %5883 = sst [smem:[#allocation15_spill]] %s5361_s18  ;;  %p3828_p7 = scmp.ge.s32.totalorder %s5267_s12, 1 }
  0x10   : > { %p249_p8 = scmp.lt.s32.totalorder %s5267_s12, 3  ;;  %p5054_p9 = scmp.eq.s32.totalorder %s5346_s13, 0 }
  0x11   : > { %s5887_s3 = sld [smem:[#allocation17_spill]]  ;;  %s5269_s29 = smov [#allocation8]  }
  0x12   : > { %p5374_p10 = pnand %p3828_p7, %p249_p8  ;;  %s5888_s1 = sld [smem:[#allocation16_spill]] }
  0x13   : > { %s279_s14 = sshll.u32 %s5269_s29, 4  ;;  %s5270_s16 = smov 64   ;;  %s280_s14 = int_to_ptr.vmem [resolvable:$true] %s279_s14 }
  0x14   : > { %p5040_p11 = pneg %p5374_p10  ;;  %s5271_s17 = smov 4  }
  0x15   : > { %s5272_s22 = smov [#allocation5]  }
  0x16   : > { %p5388_p12 = pnand %p5054_p9, %p5040_p11  ;;  %s262_s23 = sshll.u32 %s5272_s22, 4  ;;  %s263_s23 = int_to_ptr.vmem [resolvable:$true] %s262_s23 }
  0x17   : > { %s277_s24 = sshll.u32 %s5887_s3, 4  ;;  %s5273_s3 = smov [#allocation10]   ;;  %s278_s24 = int_to_ptr.hbm [resolvable:$true] %s277_s24 }
  0x18   : > { %s260_s27 = sshll.u32 %s5888_s1, 4  ;;  %s294_s1 = sshll.u32 %s5876_s5, 4  ;;  %s261_s27 = int_to_ptr.hbm [resolvable:$true] %s260_s27  ;;  %s295_s1 = int_to_ptr.hbm [resolvable:$true] %s294_s1 }
  0x19   : > { %5046 = dma.hbm_to_vmem [thread:$0]  (!%p5388_p12), %s278_s24, 9216, %s280_s14, [#allocation9], %s5270_s16, %s5270_s16, %s5271_s17  }
  0x1a   : > { %5043 = dma.hbm_to_vmem [thread:$0]  (!%p5388_p12), %s261_s27, 9216, %s263_s23, [#allocation6], %s5270_s16, %s5270_s16, %s5271_s17  }
  0x1b   : > { %s296_s18 = sshll.u32 %s5273_s3, 4  ;;  %329 = sbr.rel (%p5374_p10) target bundleno = 1019 (0x3fb), region = 56  ;;  %s297_s18 = int_to_ptr.vmem [resolvable:$true] %s296_s18 }
  0x1c   : > { %5049 = dma.hbm_to_vmem [thread:$0]  (!%p5388_p12), %s295_s1, 9216, %s297_s18, [#allocation9], %s5270_s16, %s5270_s16, %s5271_s17  }
  0x20   : > { %5241 = dma.done.wait (%p5054_p9), [#allocation6], 9216  }
  0x21   : > { %5243 = vsyncadd (%p5054_p9), [#allocation6], 4294958080 }
  0x22   : > { %5245 = dma.done.wait (%p5054_p9), [#allocation9], 18432  }
  0x23   : > { %5247 = vsyncadd (%p5054_p9), [#allocation9], 4294948864  ;;  %v4792_v0 = vld [vmem:[#allocation5 + $0x78] sm:$0xff]  ;;  %p375_p13 = scmp.lt.s32.totalorder %s5346_s13, 1  ;;  %v4791_v4 = vld [vmem:[#allocation5 + $0x70] sm:$0xff]  ;;  %vm695_vm1 = vcmask 1046528  }
  0x24   : > { %v4784_v1 = vld [vmem:[#allocation5 + $0x38] sm:$0xff]  ;;  %550 = vmatpush.bf16.msra.mxu0 %v4792_v0  ;;  %v4783_v5 = vld [vmem:[#allocation5 + $0x30] sm:$0xff]  ;;  %v4790_v8 = vld [vmem:[#allocation5 + $0x68] sm:$0xff]  ;;  %vm457_vm0 = vsmask.f32 7424  ;;  %vm1184_vm3 = vcmask 1045504  }
  0x25   : > { %v4800_v2 = vld [vmem:[#allocation5 + $0xb8] sm:$0xff]  ;;  %640 = vmatpush.bf16.msra.mxu1 %v4784_v1  ;;  %v4799_v6 = vld [vmem:[#allocation5 + $0xb0] sm:$0xff]  ;;  %s376_s1 = scalar_select %p375_p13, %s5346_s13, 1  ;;  %v4782_v9 = vld [vmem:[#allocation5 + $0x28] sm:$0xff]  ;;  %vm1016_vm2 = vsmask.f32 6400 }
  0x26   : > { %v4813_v3 = vld [vmem:[#allocation5 + $0xf8] sm:$0xff]  ;;  %758 = vmatpush.bf16.msra.mxu2 %v4800_v2  ;;  %v4812_v7 = vld [vmem:[#allocation5 + $0xf0] sm:$0xff]  ;;  %v4798_v10 = vld [vmem:[#allocation5 + $0xa8] sm:$0xff]  ;;  %vm1478_vm4 = vsmask.f32 5376  ;;  %vm1650_vm5 = vcmask 1044480  }
  0x27   : > { %916 = vmatpush.bf16.msra.mxu3 %v4813_v3  ;;  %v4811_v11 = vld [vmem:[#allocation5 + $0xe8] sm:$0xff]  ;;  %s5025_s3 = smul.u32 52, %s376_s1  ;;  %v4789_v12 = vld [vmem:[#allocation5 + $0x60] sm:$0xff]  ;;  %v4788_v16 = vld [vmem:[#allocation5 + $0x58] sm:$0xff]  ;;  %vm1816_vm6 = vcmask 1040384   ;;  %vm1833_vm8 = vcmask 1041409  }
  0x28   : > { %551 = vmatpush.bf16.msra.mxu0 %v4791_v4  ;;  %v4781_v13 = vld [vmem:[#allocation5 + $0x20] sm:$0xff]  ;;  %v4780_v17 = vld [vmem:[#allocation5 + $0x18] sm:$0xff]  ;;  %v4787_v21 = vld [vmem:[#allocation5 + $0x50] sm:$0xff]  ;;  %vm1817_vm7 = vsmask.f32 256  ;;  %vm1806_vm10 = vcmask 1043459  }
  0x29   : > { %641 = vmatpush.bf16.msra.mxu1 %v4783_v5  ;;  %v4797_v14 = vld [vmem:[#allocation5 + $0xa0] sm:$0xff]  ;;  %s5416_s24 = scalar_lea.vmem %s5871_s0, %s5025_s3  ;;  %v4796_v18 = vld [vmem:[#allocation5 + $0x98] sm:$0xff]  ;;  %v4779_v22 = vld [vmem:[#allocation5 + $0x10] sm:$0xff]  ;;  %vm1834_vm9 = vsmask.f32 1280  ;;  %s373_s25 = sand.u32 1, %s5259_s10  }
  0x2a   : > { %759 = vmatpush.bf16.msra.mxu2 %v4799_v6  ;;  %v4810_v15 = vld [vmem:[#allocation5 + $0xe0] sm:$0xff]  ;;  %v4809_v19 = vld [vmem:[#allocation5 + $0xd8] sm:$0xff]  ;;  %v4795_v25 = vld [vmem:[#allocation5 + $0x90] sm:$0xff]  ;;  %vm1807_vm11 = vsmask.f32 7950  ;;  %s3737_s3 = scalar_lea.hbm %s5880_s9, %s5346_s13  ;;  %s3729_s29 = scalar_lea.sflag [#allocation7], %s373_s25 }
  0x2b   : > { %917 = vmatpush.bf16.msra.mxu3 %v4812_v7  ;;  %v5007_v20 = vld [vmem:[%s5416_s24] sm:$0xff]   ;;  %v5420_v23 = vld [vmem:[%s5416_s24 + $0x8] sm:$0xff]  ;;  %v4786_v31 = vld [vmem:[#allocation5 + $0x48] sm:$0xff]  ;;  %vm1825_vm15 = vsmask.f32 7938  ;;  %s3741_s28 = sshll.u32 %s3737_s3, 4  ;;  %s3742_s28 = int_to_ptr.hbm [resolvable:$true] %s3741_s28 }
  0x2c   : > { %552 = vmatpush.bf16.msra.mxu0 %v4790_v8  ;;  %v461_v24 = vshll.u32 %v5007_v20, 16  ;;  %v4808_v26 = vld [vmem:[#allocation5 + $0xd0] sm:$0xff]  ;;  %v5018_v27 = vld [vmem:[%s5416_s24] sm:$0xf0]  ;;  %v4801_v30 = vld [vmem:[%s5416_s24 + $0x4] sm:$0xf0] }
  0x2d   : > { %642 = vmatpush.bf16.msra.mxu1 %v4782_v9  ;;  %v5019_v28 = vld [vmem:[%s5416_s24] sm:$0xe]  ;;  %v3948_v29 = vld [vmem:[%s5416_s24 + $0x4] sm:$0xe]  ;;  %v4778_v32 = vld [vmem:[#allocation5 + $0x8] sm:$0xff]  ;;  %v459_v33 = vshrl.u32 %v5007_v20, 16 }
  0x2e   : > { %760 = vmatpush.bf16.msra.mxu2 %v4798_v10  ;;  %v463_v34 = vrot.slane %v461_v24, 1  ;;  %v466_v35 = vshll.u32 %v5420_v23, 16  ;;  %v4794_v36 = vld [vmem:[#allocation5 + $0x88] sm:$0xff]  ;;  %v5020_v38 = vor.u32 %v5019_v28, %v5018_v27  ;;  %v4802_v39 = vld [vmem:[%s5416_s24 + $0xc] sm:$0xff]  ;;  %v3949_v40 = vor.u32 %v4801_v30, %v3948_v29  ;;  %v4825_v51 = vld [vmem:[#allocation5 + $0x138] sm:$0xff]  ;;  %s5210_s14 = sshra.s32 %s3742_s28, 4  ;;  %s5211_s14 = int_to_ptr.hbm [resolvable:$true] %s5210_s14 }
  0x2f   : > { %918 = vmatpush.bf16.msra.mxu3 %v4811_v11  ;;  %v4807_v37 = vld [vmem:[#allocation5 + $0xc8] sm:$0xff]  ;;  %v4785_v41 = vld [vmem:[#allocation5 + $0x40] sm:$0xff]  ;;  %v697_v48 = vrot.slane %v5420_v23, 1  ;;  %v855_v50 = vrot.slane %v4802_v39, 1  ;;  %v4824_v55 = vld [vmem:[#allocation5 + $0x130] sm:$0xff]  ;;  %v470_v58 = vshrl.u32 %v5420_v23, 16  ;;  %p5217_p3 = scmp.lt.s32.totalorder %s5211_s14, %s5880_s9 }
  0x30   : > { %553 = vmatpush.bf16.msra.mxu0 %v4789_v12  ;;  %v4777_v42 = vld [vmem:[#allocation5] sm:$0xff]  ;;  %v464_v43 = vor.u32 %v463_v34, %v459_v33  ;;  %v468_v44 = vrot.slane %v466_v35, 1  ;;  %v696_v47 = vrot.slane %v5020_v38, 1  ;;  %v854_v49 = vrot.slane %v3949_v40, 1  ;;  %v4823_v57 = vld [vmem:[#allocation5 + $0x128] sm:$0xff]  ;;  %v4821_v2 = vld [vmem:[#allocation5 + $0x118] sm:$0xff] }
  0x31   : > { %643 = vmatpush.bf16.msra.mxu1 %v4781_v13  ;;  %v4793_v45 = vld [vmem:[#allocation5 + $0x80] sm:$0xff]  ;;  %v4803_v60 = vld [vmem:[%s5416_s24 + $0x14] sm:$0xff]  ;;  %v4845_v7 = vld [vmem:[#allocation5 + $0x1b8] sm:$0xff]  ;;  %s5212_s16 = scalar_lea.hbm %s5211_s14, 1  ;;  %s5216_s22 = scalar_lea.hbm %s5880_s9, 2 }
  0x32   : > { %761 = vmatpush.bf16.msra.mxu2 %v4797_v14  ;;  %v4806_v46 = vld [vmem:[#allocation5 + $0xc0] sm:$0xff]  ;;  %v469_v52 = vsel %vm457_vm0, %v464_v43, %v468_v44  ;;  %v698_v53 = vsel %vm695_vm1, %v696_v47, %v697_v48  ;;  %v856_v54 = vsel %vm695_vm1, %v854_v49, %v855_v50  ;;  %v472_v62 = vor.u32 %v470_v58, %v468_v44  ;;  %v5440_v6 = vld [vmem:[%s5416_s24 + $0x18] sm:$0xff]  ;;  %v4833_v9 = vld [vmem:[#allocation5 + $0x178] sm:$0xff]  ;;  %p5213_p0 = scmp.ne.s32.totalorder %s5211_s14, %s5212_s16  ;;  %p5218_p4 = scmp.lt.s32.totalorder %s5216_s22, %s5212_s16 }
  0x33   : > { %919 = vmatpush.bf16.msra.mxu3 %v4810_v15  ;;  %v4775_v56 = vld [vmem:[%s5416_s24 + $0x10] sm:$0xff]  ;;  %v857_v1 = vrot.slane %v4803_v60, 1  ;;  %v4820_v8 = vld [vmem:[#allocation5 + $0x110] sm:$0xff]  ;;  %v4853_v10 = vld [vmem:[#allocation5 + $0x1f8] sm:$0xff]  ;;  %v486_v39 = vshrl.u32 %v5440_v6, 16 }
  0x34   : > { %554 = vmatpush.bf16.msra.mxu0 %v4788_v16  ;;  %v474_v59 = vshll.u32 %v4775_v56, 16  ;;  %v4822_v61 = vld [vmem:[#allocation5 + $0x120] sm:$0xff]  ;;  %v699_v0 = vrot.slane %v4775_v56, 1  ;;  %v4844_v11 = vld [vmem:[#allocation5 + $0x1b0] sm:$0xff]  ;;  %v4819_v14 = vld [vmem:[#allocation5 + $0x108] sm:$0xff]  ;;  %v478_v15 = vshrl.u32 %v4775_v56, 16  ;;  %p5214_p1 = pnand %p5213_p0, %p5363_p5  ;;  %p5219_p7 = por %p5218_p4, %p5217_p3 }
  0x35   : > { %644 = vmatpush.bf16.msra.mxu1 %v4780_v17  ;;  %v858_v5 = vsel %vm695_vm1, %v855_v50, %v857_v1  ;;  %v4832_v12 = vld [vmem:[#allocation5 + $0x170] sm:$0xff]  ;;  %v482_v16 = vshll.u32 %v5440_v6, 16  ;;  %v4842_v27 = vld [vmem:[#allocation5 + $0x1a0] sm:$0xff]  ;;  %v4841_v33 = vld [vmem:[#allocation5 + $0x198] sm:$0xff] }
  0x36   : > { %762 = vmatpush.bf16.msra.mxu2 %v4796_v18  ;;  %v476_v63 = vrot.slane %v474_v59, 1  ;;  %v700_v4 = vsel %vm695_vm1, %v697_v48, %v699_v0  ;;  %v4852_v13 = vld [vmem:[#allocation5 + $0x1f0] sm:$0xff]  ;;  %v4843_v18 = vld [vmem:[#allocation5 + $0x1a8] sm:$0xff]  ;;  %v4830_v28 = vld [vmem:[#allocation5 + $0x160] sm:$0xff]  ;;  %p5215_p2 = pneg %p5214_p1 }
  0x37   : > { %920 = vmatpush.bf16.msra.mxu3 %v4809_v19  ;;  %v4804_v17 = vld [vmem:[%s5416_s24 + $0x1c] sm:$0xff]  ;;  %v4831_v19 = vld [vmem:[#allocation5 + $0x168] sm:$0xff]  ;;  %v4829_v34 = vld [vmem:[#allocation5 + $0x158] sm:$0xff] }
  0x38   : > { %555 = vmatpush.bf16.msra.mxu0 %v4787_v21  ;;  %v477_v3 = vsel %vm457_vm0, %v472_v62, %v476_v63  ;;  %v480_v21 = vor.u32 %v478_v15, %v476_v63  ;;  %v859_v24 = vrot.slane %v4804_v17, 1  ;;  %v4849_v35 = vld [vmem:[#allocation5 + $0x1d8] sm:$0xff]  ;;  %v4828_v38 = vld [vmem:[#allocation5 + $0x150] sm:$0xff]  ;;  %v4839_v43 = vld [vmem:[#allocation5 + $0x188] sm:$0xff]  ;;  %p5220_p8 = pnand %p5219_p7, %p5215_p2 }
  0x39   : > { %645 = vmatpush.bf16.msra.mxu1 %v4779_v22  ;;  %v484_v22 = vrot.slane %v482_v16, 1  ;;  %v4827_v44 = vld [vmem:[#allocation5 + $0x148] sm:$0xff]  ;;  %v4838_v50 = vld [vmem:[#allocation5 + $0x180] sm:$0xff]  ;;  %v5252_v58 = vld [vmem:[%s5416_s24 + $0x20] sm:$0x70] }
  0x3a   : > { %763 = vmatpush.bf16.msra.mxu2 %v4795_v25  ;;  %v5446_v25 = vld [vmem:[%s5416_s24 + $0x20] sm:$0xff]   ;;  %v4847_v49 = vld [vmem:[#allocation5 + $0x1c8] sm:$0xff]  ;;  %v5465_v60 = vld [vmem:[%s5416_s24 + $0x8] sm:$0xff]  }
  0x3b   : > { %921 = vmatpush.bf16.msra.mxu3 %v4808_v26  ;;  %v5449_v26 = vld [vmem:[%s5416_s24 + $0x20] sm:$0xf]   ;;  %v485_v29 = vsel %vm457_vm0, %v480_v21, %v484_v22  ;;  %v490_v40 = vshll.u32 %v5446_v25, 16  ;;  %v703_v47 = vrot.slane %v5446_v25, 1  ;;  %v960_v59 = vld [vmem:[%s5416_s24 + $0x4] sm:$0xe]  ;;  %vm5618_vm12 = vmand %vm1816_vm6, %vm1817_vm7 }
  0x3c   : > { %556 = vmatpush.bf16.msra.mxu0 %v4786_v31  ;;  %v860_v31 = vsel %vm695_vm1, %v857_v1, %v859_v24  ;;  %v494_v62 = vshrl.u32 %v5446_v25, 16  ;;  %v999_v63 = vunpack.c.l.b16 %v960_v59  ;;  %v4859_v15 = vld [vmem:[#allocation5 + $0x228] sm:$0xff]  ;;  %v4816_v59 = vld [vmem:[%s5416_s24 + $0x1c] sm:$0xff]  ;;  %vm5624_vm13 = vmand %vm1833_vm8, %vm1834_vm9  ;;  %vm1852_vm7 = vcmask 1042434  }
  0x3d   : > { %646 = vmatpush.bf16.msra.mxu1 %v4778_v32  ;;  %v4850_v32 = vld [vmem:[#allocation5 + $0x1e0] sm:$0xff]  ;;  %vm5630_vm14 = vmand %vm1806_vm10, %vm1807_vm11  ;;  %vm1853_vm9 = vsmask.f32 7946 }
  0x3e   : > { %764 = vmatpush.bf16.msra.mxu2 %v4794_v36  ;;  %v4840_v36 = vld [vmem:[#allocation5 + $0x190] sm:$0xff] }
  0x3f   : > { %922 = vmatpush.bf16.msra.mxu3 %v4807_v37  ;;  %v4818_v37 = vld [vmem:[#allocation5 + $0x100] sm:$0xff] }
  0x40   : > { %557 = vmatpush.bf16.msra.mxu0 %v4785_v41  ;;  %v4805_v41 = vld [vmem:[%s5416_s24 + $0x24] sm:$0xff] }
  0x41   : > { %647 = vmatpush.bf16.msra.mxu1 %v4777_v42  ;;  %v4848_v42 = vld [vmem:[#allocation5 + $0x1d0] sm:$0xff]  ;;  %v861_v48 = vrot.slane %v4805_v41, 1 }
  0x42   : > { %765 = vmatpush.bf16.msra.mxu2 %v4793_v45  ;;  %v488_v45 = vor.u32 %v486_v39, %v484_v22 }
  0x43   : > { %923 = vmatpush.bf16.msra.mxu3 %v4806_v46  ;;  %558 = vmatmul.bf16.vlgmr.msra.gmra.mxu0 %v469_v52  ;;  %v492_v46 = vrot.slane %v490_v40, 1  ;;  %v4815_v40 = vld [vmem:[%s5416_s24 + $0x14] sm:$0xff] }
  0x44   : > { %1119 = vmatpush.bf16.msrb.mxu0 %v4825_v51  ;;  %648 = vmatmul.bf16.vlgmr.msra.gmra.mxu1 %v5007_v20  ;;  %v4851_v20 = vld [vmem:[#allocation5 + $0x1e8] sm:$0xff]  ;;  %v4826_v51 = vld [vmem:[#allocation5 + $0x140] sm:$0xff] }
  0x45   : > { %766 = vmatmul.bf16.vlgmr.msra.gmra.mxu2 %v698_v53  ;;  %1249 = vmatpush.bf16.msrb.mxu1 %v4833_v9  ;;  %v493_v52 = vsel %vm457_vm0, %v488_v45, %v492_v46  ;;  %v1163_v9 = vld [vmem:[%s5416_s24 + $0x4] sm:$0xc]  ;;  %v1038_v45 = vshll.u32 %v4815_v40, 16 }
  0x46   : > { %924 = vmatmul.bf16.vlgmr.msra.gmra.mxu3 %v856_v54  ;;  %1413 = vmatpush.bf16.msrb.mxu2 %v4845_v7  ;;  %v862_v54 = vsel %vm695_vm1, %v859_v24, %v861_v48  ;;  %v5476_v7 = vld [vmem:[%s5416_s24 + $0x10] sm:$0xff] }
  0x47   : > { %1585 = vmatpush.bf16.msrb.mxu3 %v4853_v10 }
  0x48   : > { %1120 = vmatpush.bf16.msrb.mxu0 %v4824_v55  ;;  %v4846_v55 = vld [vmem:[#allocation5 + $0x1c0] sm:$0xff] }
  0x49   : > { %1250 = vmatpush.bf16.msrb.mxu1 %v4832_v12 }
  0x4a   : > { %1414 = vmatpush.bf16.msrb.mxu2 %v4844_v11 }
  0x4b   : > { %1586 = vmatpush.bf16.msrb.mxu3 %v4852_v13 }
  0x4c   : > { %1121 = vmatpush.bf16.msrb.mxu0 %v4823_v57  ;;  %v4860_v57 = vld [vmem:[#allocation5 + $0x230] sm:$0xff] }
  0x4d   : > { %1251 = vmatpush.bf16.msrb.mxu1 %v4831_v19  ;;  %v1491_v19 = vshll.u32 %v5476_v7, 16 }
  0x4e   : > { %1415 = vmatpush.bf16.msrb.mxu2 %v4843_v18  ;;  %v1488_v18 = vshrl.u32 %v5476_v7, 16 }
  0x4f   : > { %1587 = vmatpush.bf16.msrb.mxu3 %v4851_v20  ;;  %v4858_v20 = vld [vmem:[#allocation5 + $0x220] sm:$0xff] }
  0x50   : > { %1122 = vmatpush.bf16.msrb.mxu0 %v4822_v61  ;;  %v1293_v61 = vld [vmem:[%s5416_s24 + $0x8] sm:$0xc] }
  0x51   : > { %1252 = vmatpush.bf16.msrb.mxu1 %v4830_v28  ;;  %v1332_v1 = vunpack.c.l.b16 %v1293_v61  ;;  %v1490_v28 = vrot.slane %v1488_v18, 2  ;;  %v4855_v18 = vld [vmem:[#allocation5 + $0x208] sm:$0xff] }
  0x52   : > { %1416 = vmatpush.bf16.msrb.mxu2 %v4842_v27 }
  0x53   : > { %563 = vmatmul.bf16.gmra.mxu0 %v477_v3  ;;  %1588 = vmatpush.bf16.msrb.mxu3 %v4850_v32  ;;  %v496_v3 = vor.u32 %v494_v62, %v492_v46  ;;  %v4857_v46 = vld [vmem:[#allocation5 + $0x218] sm:$0xff] }
  0x54   : > { %1123 = vmatpush.bf16.msrb.mxu0 %v4821_v2  ;;  %653 = vmatmul.bf16.gmra.mxu1 %v5420_v23  ;;  %v701_v23 = vrot.slane %v5440_v6, 1  ;;  %v1333_v2 = vunpack.c.h.b16 %v5465_v60 }
  0x55   : > { %771 = vmatmul.bf16.gmra.mxu2 %v700_v4  ;;  %1253 = vmatpush.bf16.msrb.mxu1 %v4829_v34  ;;  %v5105_v4 = vor.u32 %v5252_v58, %v5449_v26 }
  0x56   : > { %929 = vmatmul.bf16.gmra.mxu3 %v858_v5  ;;  %v702_v30 = vsel %vm695_vm1, %v699_v0, %v701_v23  ;;  %1417 = vmatpush.bf16.msrb.mxu2 %v4841_v33  ;;  %v704_v53 = vsel %vm695_vm1, %v701_v23, %v703_v47  ;;  %v1000_v0 = vunpack.c.l.b16 %v5465_v60  ;;  %v5473_v5 = vld [vmem:[%s5416_s24 + $0xc] sm:$0xff] }
  0x57   : > { %1589 = vmatpush.bf16.msrb.mxu3 %v4849_v35  ;;  %v1026_v10 = vshrl.u32 %v5473_v5, 16  ;;  %v1029_v13 = vshll.u32 %v5473_v5, 16  ;;  %v1186_v33 = vrot.slane %v5473_v5, 2  ;;  %v1350_v35 = vrot.slane %v5476_v7, 2 }
  0x58   : > { %1124 = vmatpush.bf16.msrb.mxu0 %v4820_v8  ;;  %v1343_v8 = vpack.c.b16 %v1333_v2, %v1332_v1  ;;  %v1047_v1 = vshll.u32 %v4816_v59, 16 }
  0x59   : > { %1254 = vmatpush.bf16.msrb.mxu1 %v4828_v38  ;;  %v1028_v21 = vrot.slane %v1026_v10, 1  ;;  %v1031_v24 = vrot.slane %v1029_v13, 2 }
  0x5a   : > { %1418 = vmatpush.bf16.msrb.mxu2 %v4840_v36  ;;  %v1480_v16 = vshrl.u32 %v1343_v8, 16  ;;  %v1483_v17 = vshll.u32 %v1343_v8, 16  ;;  %v1349_v34 = vrot.slane %v1343_v8, 2  ;;  %v1049_v8 = vrot.slane %v1047_v1, 2 }
  0x5b   : > { %1590 = vmatpush.bf16.msrb.mxu3 %v4848_v42 }
  0x5c   : > { %1125 = vmatpush.bf16.msrb.mxu0 %v4819_v14  ;;  %v1182_v14 = vunpack.c.l.b16 %v1163_v9  ;;  %v1482_v26 = vrot.slane %v1480_v16, 2  ;;  %v1485_v27 = vrot.slane %v1483_v17, 3  ;;  %v1351_v41 = vsel %vm1184_vm3, %v1349_v34, %v1350_v35  ;;  %v5512_v17 = vld [vmem:[%s5416_s24 + $0x24] sm:$0xff] }
  0x5d   : > { %1255 = vmatpush.bf16.msrb.mxu1 %v4827_v44  ;;  %v1035_v44 = vshrl.u32 %v4815_v40, 16 }
  0x5e   : > { %1419 = vmatpush.bf16.msrb.mxu2 %v4839_v43  ;;  %v1183_v25 = vpack.c.b16 %v1000_v0, %v1182_v14  ;;  %v1486_v36 = vor.u32 %v1485_v27, %v1482_v26  ;;  %v5493_v43 = vld [vmem:[%s5416_s24 + $0x18] sm:$0xff] }
  0x5f   : > { %1591 = vmatpush.bf16.msrb.mxu3 %v4847_v49  ;;  %v1037_v49 = vrot.slane %v1035_v44, 1 }
  0x60   : > { %1126 = vmatpush.bf16.msrb.mxu0 %v4818_v37  ;;  %v1185_v32 = vrot.slane %v1183_v25, 2 }
  0x61   : > { %1256 = vmatpush.bf16.msrb.mxu1 %v4826_v51 }
  0x62   : > { %1420 = vmatpush.bf16.msrb.mxu2 %v4838_v50  ;;  %v1187_v39 = vsel %vm1184_vm3, %v1185_v32, %v1186_v33  ;;  %v1040_v50 = vrot.slane %v1038_v45, 2 }
  0x63   : > { %568 = vmatmul.bf16.gmra.mxu0 %v485_v29  ;;  %1592 = vmatpush.bf16.msrb.mxu3 %v4846_v55  ;;  %v1493_v29 = vrot.slane %v1491_v19, 3  ;;  %v1352_v55 = vrot.slane %v5493_v43, 2 }
  0x64   : > { %658 = vmatmul.bf16.gmra.mxu1 %v4775_v56  ;;  %v4861_v56 = vld [vmem:[#allocation5 + $0x238] sm:$0xff] }
  0x65   : > { %776 = vmatmul.bf16.gmra.mxu2 %v702_v30  ;;  %1715 = vmatpush.bf16.msra.mxu0 %v4861_v56  ;;  %v1494_v37 = vor.u32 %v1493_v29, %v1490_v28  ;;  %v1353_v61 = vsel %vm1184_vm3, %v1350_v35, %v1352_v55 }
  0x66   : > { %934 = vmatmul.bf16.gmra.mxu3 %v860_v31  ;;  %v1032_v31 = vor.u32 %v1031_v24, %v1028_v21  ;;  %v5517_v21 = vld [vmem:[%s5416_s24 + $0x28] sm:$0xff] }
  0x67   : > { %v1495_v42 = vsel %vm1478_vm4, %v1486_v36, %v1494_v37  ;;  %v1515_v24 = vshrl.u32 %v5517_v21, 16  ;;  %v1518_v25 = vshll.u32 %v5517_v21, 16  ;;  %v1356_v34 = vrot.slane %v5517_v21, 2  ;;  %v970_v36 = vld [vmem:[%s5416_s24 + $0x2c] sm:$0x1] }
  0x69   : > { %1716 = vmatpush.bf16.msra.mxu0 %v4860_v57  ;;  %v1517_v28 = vrot.slane %v1515_v24, 2  ;;  %v1520_v29 = vrot.slane %v1518_v25, 3 }
  0x6b   : > { %v1521_v35 = vor.u32 %v1520_v29, %v1517_v28 }
  0x6d   : > { %1717 = vmatpush.bf16.msra.mxu0 %v4859_v15 }
  0x71   : > { %1718 = vmatpush.bf16.msra.mxu0 %v4858_v20 }
  0x73   : > { %573 = vmatmul.bf16.gmra.mxu0 %v493_v52 }
  0x74   : > { %663 = vmatmul.bf16.gmra.mxu1 %v5440_v6  ;;  %v1010_v6 = vpack.c.b16 %v1000_v0, %v999_v63  ;;  %v5504_v63 = vld [vmem:[%s5416_s24 + $0x20] sm:$0xff]  ;;  %v1044_v0 = vshrl.u32 %v4816_v59, 16 }
  0x75   : > { %781 = vmatmul.bf16.gmra.mxu2 %v704_v53  ;;  %1719 = vmatpush.bf16.msra.mxu0 %v4857_v46  ;;  %v1041_v53 = vor.u32 %v1040_v50, %v1037_v49  ;;  %v1509_v5 = vshll.u32 %v5504_v63, 16  ;;  %v1354_v13 = vrot.slane %v5504_v63, 2 }
  0x76   : > { %939 = vmatmul.bf16.gmra.mxu3 %v862_v54  ;;  %v1018_v11 = vshrl.u32 %v1010_v6, 16  ;;  %v1021_v12 = vshll.u32 %v1010_v6, 16  ;;  %v1188_v54 = vrot.slane %v4815_v40, 2  ;;  %v1046_v6 = vrot.slane %v1044_v0, 1 }
  0x77   : > { %v1042_v57 = vsel %vm1016_vm2, %v1032_v31, %v1041_v53  ;;  %v1511_v10 = vrot.slane %v1509_v5, 3  ;;  %v1355_v19 = vsel %vm1184_vm3, %v1352_v55, %v1354_v13  ;;  %v1357_v45 = vsel %vm1184_vm3, %v1354_v13, %v1356_v34 }
  0x78   : > { %v1020_v22 = vrot.slane %v1018_v11, 1  ;;  %v1023_v23 = vrot.slane %v1021_v12, 2  ;;  %v1189_v58 = vsel %vm1184_vm3, %v1186_v33, %v1188_v54  ;;  %v1050_v11 = vor.u32 %v1049_v8, %v1046_v6 }
  0x79   : > { %v1190_v12 = vrot.slane %v4816_v59, 2  ;;  %v1192_v33 = vrot.slane %v5512_v17, 2 }
  0x7a   : > { %v1024_v30 = vor.u32 %v1023_v23, %v1020_v22  ;;  %v1051_v15 = vsel %vm1016_vm2, %v1041_v53, %v1050_v11  ;;  %v1053_v22 = vshrl.u32 %v5512_v17, 16  ;;  %v1056_v23 = vshll.u32 %v5512_v17, 16 }
  0x7b   : > { %v1191_v16 = vsel %vm1184_vm3, %v1188_v54, %v1190_v12 }
  0x7c   : > { %v1033_v38 = vsel %vm1016_vm2, %v1024_v30, %v1032_v31  ;;  %v1055_v26 = vrot.slane %v1053_v22, 1  ;;  %v1058_v27 = vrot.slane %v1056_v23, 2  ;;  %v1457_v30 = vld [vmem:[%s5416_s24 + $0x30] sm:$0x3] }
  0x7d   : > { %v4854_v31 = vld [vmem:[#allocation5 + $0x200] sm:$0xff] }
  0x7e   : > { %v1059_v32 = vor.u32 %v1058_v27, %v1055_v26  ;;  %v1652_v27 = vrot.slane %v5476_v7, 3 }
  0x80   : > { %v1060_v40 = vsel %vm1016_vm2, %v1050_v11, %v1059_v32 }
  0x83   : > { %578 = vmatmul.bf16.gmra.mxu0 %v496_v3  ;;  %v4856_v3 = vld [vmem:[#allocation5 + $0x210] sm:$0xff] }
  0x84   : > { %668 = vmatmul.bf16.gmra.mxu1 %v5105_v4  ;;  %v1506_v4 = vshrl.u32 %v5504_v63, 16  ;;  %1720 = vmatpush.bf16.msra.mxu0 %v4856_v3 }
  0x85   : > { %786 = vmatmul.bf16.gmra.mxu2 %v703_v47  ;;  %v1497_v47 = vshrl.u32 %v5493_v43, 16 }
  0x86   : > { %944 = vmatmul.bf16.gmra.mxu3 %v861_v48  ;;  %v1500_v48 = vshll.u32 %v5493_v43, 16  ;;  %v1508_v9 = vrot.slane %v1506_v4, 2 }
  0x87   : > { %v1499_v51 = vrot.slane %v1497_v47, 2 }
  0x88   : > { %v1502_v52 = vrot.slane %v1500_v48, 3  ;;  %v1512_v14 = vor.u32 %v1511_v10, %v1508_v9  ;;  %1721 = vmatpush.bf16.msra.mxu0 %v4855_v18  ;;  %v1303_v48 = vld [vmem:[%s5416_s24 + $0x30] sm:$0x1] }
  0x89   : > { %v1342_v50 = vunpack.c.l.b16 %v1303_v48 }
  0x8a   : > { %v1503_v56 = vor.u32 %v1502_v52, %v1499_v51  ;;  %v1522_v46 = vsel %vm1478_vm4, %v1512_v14, %v1521_v35 }
  0x8b   : > { %v1348_v59 = vpack.c.b16 %v1342_v50, %v1342_v50 }
  0x8c   : > { %v1504_v62 = vsel %vm1478_vm4, %v1494_v37, %v1503_v56  ;;  %v1513_v20 = vsel %vm1478_vm4, %v1503_v56, %v1512_v14  ;;  %1722 = vmatpush.bf16.msra.mxu0 %v4854_v31  ;;  %v1476_v37 = vunpack.c.l.b16 %v1457_v30 }
  0x8d   : > { %v1358_v4 = vrot.slane %v1348_v59, 2 }
  0x8e   : > { %v5531_v47 = vpack.c.b16 %v1476_v37, %v1476_v37 }
  0x8f   : > { %v1359_v14 = vsel %vm1184_vm3, %v1356_v34, %v1358_v4 }
  0x90   : > { %v1524_v51 = vshrl.u32 %v5531_v47, 16  ;;  %v1527_v52 = vshll.u32 %v5531_v47, 16 }
  0x93   : > { %1127 = vmatmul.bf16.vlgmr.msrb.gmra.mxu0 %v1033_v38 }
  0x94   : > { %1257 = vmatmul.bf16.vlgmr.msrb.gmra.mxu1 %v1187_v39 }
  0x95   : > { %1421 = vmatmul.bf16.vlgmr.msrb.gmra.mxu2 %v1351_v41  ;;  %v1193_v41 = vsel %vm1184_vm3, %v1190_v12, %v1192_v33 }
  0x96   : > { %1593 = vmatmul.bf16.vlgmr.msrb.gmra.mxu3 %v1495_v42  ;;  %v1009_v42 = vunpack.c.l.b16 %v970_v36 }
  0x98   : > { %v1015_v49 = vpack.c.b16 %v1009_v42, %v1009_v42 }
  0x9a   : > { %v1194_v3 = vrot.slane %v1015_v49, 2 }
  0x9c   : > { %v1195_v12 = vsel %vm1184_vm3, %v1192_v33, %v1194_v3 }
  0xa3   : > { %1132 = vmatmul.bf16.gmra.mxu0 %v1042_v57 }
  0xa4   : > { %1262 = vmatmul.bf16.gmra.mxu1 %v1189_v58  ;;  %v1062_v58 = vshll.u32 %v1015_v49, 16 }
  0xa5   : > { %1426 = vmatmul.bf16.gmra.mxu2 %v1353_v61  ;;  %v1526_v61 = vrot.slane %v1524_v51, 2 }
  0xa6   : > { %1598 = vmatmul.bf16.gmra.mxu3 %v1504_v62  ;;  %v1529_v62 = vrot.slane %v1527_v52, 3  ;;  %v1064_v1 = vrot.slane %v1062_v58, 2  ;;  %v1656_v52 = vrot.slane %v5504_v63, 3 }
  0xa8   : > { %v1530_v5 = vor.u32 %v1529_v62, %v1526_v61  ;;  %v1065_v11 = vsel %vm1016_vm2, %v1059_v32, %v1064_v1  ;;  %vm5648_vm2 = vmand %vm1816_vm6, %vm1825_vm15  ;;  %vm1861_vm6 = vsmask.f32 3328 }
  0xa9   : > { %vm5659_vm11 = vmand %vm1806_vm10, %vm1861_vm6  ;;  %vm1898_vm10 = vsmask.f32 2304 }
  0xaa   : > { %vm5664_vm15 = vmand %vm1852_vm7, %vm1853_vm9 }
  0xb3   : > { %1137 = vmatmul.bf16.gmra.mxu0 %v1051_v15  ;;  %v1531_v15 = vsel %vm1478_vm4, %v1521_v35, %v1530_v5  ;;  %v1658_v5 = vrot.slane %v5517_v21, 3 }
  0xb4   : > { %1267 = vmatmul.bf16.gmra.mxu1 %v1191_v16  ;;  %v1629_v16 = vld [vmem:[%s5416_s24 + $0x8] sm:$0x8]  ;;  %s374_s24 = scalar_lea.vmem [#allocation11], %s373_s25 }
  0xb5   : > { %1431 = vmatmul.bf16.gmra.mxu2 %v1355_v19  ;;  %v1648_v17 = vunpack.c.l.b16 %v1629_v16  ;;  %v1659_v63 = vsel %vm1650_vm5, %v1656_v52, %v1658_v5  ;;  %s3739_s27 = sshll.u32 %s374_s24, 4  ;;  %s3740_s27 = int_to_ptr.vmem [resolvable:$true] %s3739_s27 }
  0xb6   : > { %1603 = vmatmul.bf16.gmra.mxu3 %v1513_v20 }
  0xb7   : > { %v1649_v24 = vpack.c.b16 %v1333_v2, %v1648_v17  ;;  %v1654_v2 = vrot.slane %v5493_v43, 3 }
  0xb9   : > { %v1651_v26 = vrot.slane %v1649_v24, 3  ;;  %v1655_v42 = vsel %vm1650_vm5, %v1652_v27, %v1654_v2  ;;  %v1657_v58 = vsel %vm1650_vm5, %v1654_v2, %v1656_v52  ;;  %v5274_v52 = vmov 0  }
  0xba   : > { %381 = vst [vmem:[#allocation3] sm:$0xf] %v5274_v52 }
  0xbb   : > { %v1653_v32 = vsel %vm1650_vm5, %v1651_v26, %v1652_v27  ;;  %382 = vst [vmem:[#allocation3 + $0x4] sm:$0xf] %v5274_v52 }
  0xbc   : > { %383 = vst [vmem:[#allocation3 + $0x8] sm:$0xf] %v5274_v52 }
  0xbd   : > { %384 = vst [vmem:[#allocation3 + $0xc] sm:$0xf] %v5274_v52 }
  0xbe   : > { %385 = vst [vmem:[#allocation3 + $0x10] sm:$0x3] %v5274_v52 }
  0xbf   : > { %386 = vst [vmem:[#allocation4] sm:$0xf] %v5274_v52 }
  0xc0   : > { %v559_v38 = vpop.f32.mrf.mxu0  ;;  %387 = vst [vmem:[#allocation4 + $0x4] sm:$0xf] %v5274_v52 }
  0xc1   : > { %v649_v39 = vpop.f32.mrf.mxu1 }
  0xc2   : > { %v650_v44 = vadd.f32 %v649_v39, %v559_v38 }
  0xc3   : > { %1142 = vmatmul.bf16.gmra.mxu0 %v1060_v40 }
  0xc4   : > { %1272 = vmatmul.bf16.gmra.mxu1 %v1193_v41 }
  0xc5   : > { %1436 = vmatmul.bf16.gmra.mxu2 %v1357_v45 }
  0xc6   : > { %1608 = vmatmul.bf16.gmra.mxu3 %v1522_v46 }
  0xc8   : > { %v767_v53 = vpop.f32.mrf.mxu2  ;;  %v5536_v56 = vpop.f32.mrf.mxu0 }
  0xc9   : > { %v925_v54 = vpop.f32.mrf.mxu3  ;;  %v792_v55 = vadd.f32 %v767_v53, %v650_v44  ;;  %v5538_v57 = vpop.f32.mrf.mxu1 }
  0xca   : > { %v652_v2 = vadd.f32 %v5538_v57, %v5536_v56  ;;  %v4869_v57 = vld [vmem:[#allocation8 + $0x38] sm:$0xff] }
  0xcb   : > { %v5540_v0 = vadd.f32 %v925_v54, %v792_v55  ;;  %2122 = vmatpush.bf16.msra.mxu2 %v4869_v57 }
  0xd0   : > { %v5542_v6 = vpop.f32.mrf.mxu2  ;;  %v564_v9 = vpop.f32.mrf.mxu0 }
  0xd1   : > { %v5544_v8 = vpop.f32.mrf.mxu3  ;;  %v654_v10 = vpop.f32.mrf.mxu1 }
  0xd2   : > { %v655_v13 = vadd.f32 %v654_v10, %v564_v9 }
  0xd3   : > { %1147 = vmatmul.bf16.gmra.mxu0 %v1065_v11 }
  0xd4   : > { %1277 = vmatmul.bf16.gmra.mxu1 %v1195_v12  ;;  %v1660_v12 = vrot.slane %v5531_v47, 3 }
  0xd5   : > { %1441 = vmatmul.bf16.gmra.mxu2 %v1359_v14 }
  0xd6   : > { %1613 = vmatmul.bf16.gmra.mxu3 %v1531_v15  ;;  %v1661_v14 = vsel %vm1650_vm5, %v1658_v5, %v1660_v12 }
  0xd8   : > { %v772_v18 = vpop.f32.mrf.mxu2  ;;  %v566_v22 = vpop.f32.mrf.mxu0 }
  0xd9   : > { %v930_v19 = vpop.f32.mrf.mxu3  ;;  %v794_v20 = vadd.f32 %v772_v18, %v655_v13  ;;  %v656_v23 = vpop.f32.mrf.mxu1 }
  0xda   : > { %v657_v15 = vadd.f32 %v656_v23, %v566_v22 }
  0xdb   : > { %v952_v25 = vadd.f32 %v930_v19, %v794_v20 }
  0xe0   : > { %v774_v28 = vpop.f32.mrf.mxu2  ;;  %v569_v30 = vpop.f32.mrf.mxu0 }
  0xe1   : > { %v932_v29 = vpop.f32.mrf.mxu3  ;;  %v659_v31 = vpop.f32.mrf.mxu1  ;;  %v795_v17 = vadd.f32 %v774_v28, %v657_v15  ;;  %v4868_v15 = vld [vmem:[#allocation8 + $0x30] sm:$0xff] }
  0xe2   : > { %v660_v33 = vadd.f32 %v659_v31, %v569_v30  ;;  %2123 = vmatpush.bf16.msra.mxu2 %v4868_v15 }
  0xe3   : > { %1723 = vmatmul.bf16.vlgmr.msra.gmra.mxu0 %v1653_v32  ;;  %v953_v18 = vadd.f32 %v932_v29, %v795_v17 }
  0xe8   : > { %v777_v34 = vpop.f32.mrf.mxu2  ;;  %v571_v37 = vpop.f32.mrf.mxu0 }
  0xe9   : > { %v935_v35 = vpop.f32.mrf.mxu3  ;;  %v796_v36 = vadd.f32 %v777_v34, %v660_v33  ;;  %v661_v38 = vpop.f32.mrf.mxu1 }
  0xea   : > { %v662_v24 = vadd.f32 %v661_v38, %v571_v37 }
  0xeb   : > { %v954_v60 = vadd.f32 %v935_v35, %v796_v36 }
  0xf0   : > { %v779_v39 = vpop.f32.mrf.mxu2  ;;  %v574_v7 = vpop.f32.mrf.mxu0 }
  0xf1   : > { %v937_v40 = vpop.f32.mrf.mxu3  ;;  %v664_v41 = vpop.f32.mrf.mxu1 }
  0xf2   : > { %v665_v44 = vadd.f32 %v664_v41, %v574_v7 }
  0xf3   : > { %1728 = vmatmul.bf16.gmra.mxu0 %v1655_v42 }
  0xf8   : > { %v782_v45 = vpop.f32.mrf.mxu2  ;;  %v5557_v49 = vpop.f32.mrf.mxu0 }
  0xf9   : > { %v940_v46 = vpop.f32.mrf.mxu3  ;;  %v798_v48 = vadd.f32 %v782_v45, %v665_v44  ;;  %v5559_v50 = vpop.f32.mrf.mxu1 }
  0xfb   : > { %v956_v51 = vadd.f32 %v940_v46, %v798_v48 }
 0x100   : > { %v5562_v53 = vpop.f32.mrf.mxu2  ;;  %v579_v54 = vpop.f32.mrf.mxu0 }
 0x101   : > { %v5564_v43 = vpop.f32.mrf.mxu3  ;;  %v669_v55 = vpop.f32.mrf.mxu1 }
 0x102   : > { %v670_v59 = vadd.f32 %v669_v55, %v579_v54 }
 0x103   : > { %1733 = vmatmul.bf16.gmra.mxu0 %v1657_v58  ;;  %v4877_v58 = vld [vmem:[#allocation8 + $0x78] sm:$0xff] }
 0x104   : > { %2051 = vmatpush.bf16.msra.mxu1 %v4877_v58 }
 0x108   : > { %v787_v61 = vpop.f32.mrf.mxu2  ;;  %v5567_v3 = vpop.f32.mrf.mxu0 }
 0x109   : > { %v945_v62 = vpop.f32.mrf.mxu3  ;;  %v800_v1 = vadd.f32 %v787_v61, %v670_v59  ;;  %v5582_v47 = vpop.f32.mrf.mxu1 }
 0x10b   : > { %v958_v4 = vadd.f32 %v945_v62, %v800_v1  ;;  %v5603_v62 = vld [vmem:[%s5873_s2] ss:$0 sm:$0xff] }
 0x110   : > { %v1128_v9 = vpop.f32.mrf.mxu0  ;;  %v5584_v32 = vpop.f32.mrf.mxu2 }
 0x111   : > { %v5572_v10 = vadd.f32 %v1128_v9, %v5540_v0  ;;  %v797_v0 = vadd.f32 %v779_v39, %v662_v24  ;;  %v5586_v22 = vpop.f32.mrf.mxu3  ;;  %v1258_v28 = vpop.f32.mrf.mxu1  ;;  %v793_v39 = vadd.f32 %v5542_v6, %v652_v2  ;;  %v4885_v6 = vld [vmem:[#allocation8 + $0xb8] sm:$0xff] }
 0x112   : > { %2214 = vmatpush.bf16.msra.mxu3 %v4885_v6 }
 0x113   : > { %1738 = vmatmul.bf16.gmra.mxu0 %v1659_v63  ;;  %v955_v27 = vadd.f32 %v937_v40, %v797_v0  ;;  %v951_v42 = vadd.f32 %v5544_v8, %v793_v39  ;;  %v1283_v63 = vadd.f32 %v1258_v28, %v5572_v10  ;;  %v4883_v39 = vld [vmem:[#allocation8 + $0xa8] sm:$0xff] }
 0x118   : > { %v1130_v11 = vpop.f32.mrf.mxu0  ;;  %v1422_v29 = vpop.f32.mrf.mxu2 }
 0x119   : > { %v1594_v34 = vpop.f32.mrf.mxu3  ;;  %v1260_v35 = vpop.f32.mrf.mxu1  ;;  %v1154_v44 = vadd.f32 %v1130_v11, %v951_v42 }
 0x11b   : > { %v1284_v48 = vadd.f32 %v1260_v35, %v1154_v44  ;;  %v4876_v35 = vld [vmem:[#allocation8 + $0x70] sm:$0xff]  ;;  %v4865_v44 = vld [vmem:[#allocation8 + $0x18] sm:$0xff] }
 0x11c   : > { %2052 = vmatpush.bf16.msra.mxu1 %v4876_v35 }
 0x120   : > { %v1133_v13 = vpop.f32.mrf.mxu0  ;;  %v1424_v36 = vpop.f32.mrf.mxu2 }
 0x121   : > { %v1155_v16 = vadd.f32 %v1133_v13, %v952_v25  ;;  %v1263_v40 = vpop.f32.mrf.mxu1  ;;  %v1448_v54 = vadd.f32 %v1424_v36, %v1284_v48  ;;  %v1447_v13 = vadd.f32 %v1422_v29, %v1283_v63  ;;  %v4884_v29 = vld [vmem:[#allocation8 + $0xb0] sm:$0xff] }
 0x122   : > { %2215 = vmatpush.bf16.msra.mxu3 %v4884_v29 }
 0x123   : > { %1743 = vmatmul.bf16.gmra.mxu0 %v1661_v14  ;;  %v1285_v61 = vadd.f32 %v1263_v40, %v1155_v16  ;;  %v4875_v40 = vld [vmem:[#allocation8 + $0x68] sm:$0xff] }
 0x124   : > { %2053 = vmatpush.bf16.msra.mxu1 %v4875_v40  ;;  %v4874_v40 = vld [vmem:[#allocation8 + $0x60] sm:$0xff] }
 0x126   : > { %2216 = vmatpush.bf16.msra.mxu3 %v4883_v39 }
 0x128   : > { %v1135_v19 = vpop.f32.mrf.mxu0  ;;  %v1427_v41 = vpop.f32.mrf.mxu2  ;;  %2054 = vmatpush.bf16.msra.mxu1 %v4874_v40  ;;  %v4871_v40 = vld [vmem:[#allocation8 + $0x48] sm:$0xff] }
 0x129   : > { %v5576_v21 = vadd.f32 %v1135_v19, %v953_v18 }
 0x130   : > { %v1138_v20 = vpop.f32.mrf.mxu0  ;;  %v1429_v55 = vpop.f32.mrf.mxu2 }
 0x131   : > { %v5578_v26 = vadd.f32 %v1138_v20, %v954_v60  ;;  %v1596_v60 = vpop.f32.mrf.mxu3  ;;  %v1619_v20 = vadd.f32 %v1594_v34, %v1447_v13  ;;  %v1819_v13 = vld [vmem:[#allocation3 + $0x4] sm:$0x1] }
 0x132   : > { %v1620_v56 = vadd.f32 %v1596_v60, %v1448_v54  ;;  %v4866_v60 = vld [vmem:[#allocation8 + $0x20] sm:$0xff]  ;;  %v4864_v54 = vld [vmem:[#allocation8 + $0x10] sm:$0xff] }
 0x138   : > { %v1140_v30 = vpop.f32.mrf.mxu0  ;;  %v1432_v12 = vpop.f32.mrf.mxu2 }
 0x139   : > { %v5580_v31 = vadd.f32 %v1140_v30, %v955_v27  ;;  %v1599_v45 = vpop.f32.mrf.mxu3  ;;  %v4867_v27 = vld [vmem:[#allocation8 + $0x28] sm:$0xff] }
 0x13a   : > { %2124 = vmatpush.bf16.msra.mxu2 %v4867_v27 }
 0x13e   : > { %2125 = vmatpush.bf16.msra.mxu2 %v4866_v60 }
 0x140   : > { %v1143_v23 = vpop.f32.mrf.mxu0  ;;  %v1434_v36 = vpop.f32.mrf.mxu2 }
 0x141   : > { %v5588_v25 = vadd.f32 %v1143_v23, %v956_v51  ;;  %v1265_v51 = vpop.f32.mrf.mxu1  ;;  %v1601_v59 = vpop.f32.mrf.mxu3 }
 0x142   : > { %v1286_v17 = vadd.f32 %v1265_v51, %v5576_v21  ;;  %2126 = vmatpush.bf16.msra.mxu2 %v4865_v44 }
 0x144   : > { %v1450_v24 = vadd.f32 %v1429_v55, %v1286_v17 }
 0x146   : > { %v1622_v28 = vadd.f32 %v1601_v59, %v1450_v24  ;;  %2127 = vmatpush.bf16.msra.mxu2 %v4864_v54 }
 0x148   : > { %v5590_v33 = vpop.f32.mrf.mxu0 }
 0x149   : > { %v1268_v9 = vpop.f32.mrf.mxu1  ;;  %v1604_v19 = vpop.f32.mrf.mxu3 }
 0x14a   : > { %v1287_v21 = vadd.f32 %v1268_v9, %v5578_v26 }
 0x150   : > { %v1148_v37 = vpop.f32.mrf.mxu0 }
 0x151   : > { %v5592_v38 = vadd.f32 %v1148_v37, %v958_v4  ;;  %v1449_v4 = vadd.f32 %v1427_v41, %v1285_v61  ;;  %v1270_v10 = vpop.f32.mrf.mxu1  ;;  %v1451_v41 = vadd.f32 %v1432_v12, %v1287_v21 }
 0x152   : > { %v1288_v55 = vadd.f32 %v1270_v10, %v5580_v31 }
 0x153   : > { %v1621_v14 = vadd.f32 %v1599_v45, %v1449_v4  ;;  %v1606_v45 = vpop.f32.mrf.mxu3  ;;  %v1623_v26 = vadd.f32 %v1604_v19, %v1451_v41  ;;  %v4863_v4 = vld [vmem:[#allocation8 + $0x8] sm:$0xff] }
 0x154   : > { %v1452_v59 = vadd.f32 %v1434_v36, %v1288_v55  ;;  %2128 = vmatpush.bf16.msra.mxu2 %v4863_v4 }
 0x156   : > { %v1624_v15 = vadd.f32 %v1606_v45, %v1452_v59 }
 0x158   : > { %v5597_v7 = vpop.f32.mrf.mxu0 }
 0x160   : > { %v1724_v46 = vpop.f32.mrf.mxu0 }
 0x161   : > { %v1749_v30 = vadd.f32 %v1724_v46, %v1619_v20  ;;  %v1809_v20 = vld [vmem:[#allocation3] sm:$0x8] }
 0x163   : > { %v1763_v2 = vadd.f32 %v5603_v62, %v1749_v30 }
 0x165   : > { %v1773_v46 = vmax.f32 %v1763_v2, 0.0 }
 0x168   : > { %v1726_v8 = vpop.f32.mrf.mxu0 }
 0x169   : > { %v1750_v1 = vadd.f32 %v1726_v8, %v1620_v56  ;;  %v1273_v56 = vpop.f32.mrf.mxu1  ;;  %v1437_v8 = vpop.f32.mrf.mxu2 }
 0x16a   : > { %v1289_v24 = vadd.f32 %v1273_v56, %v5588_v25 }
 0x16b   : > { %v1764_v5 = vadd.f32 %v5603_v62, %v1750_v1 }
 0x16c   : > { %v1453_v29 = vadd.f32 %v1437_v8, %v1289_v24 }
 0x16d   : > { %v1774_v11 = vmax.f32 %v1764_v5, 0.0  ;;  %v667_v5 = vadd.f32 %v5559_v50, %v5557_v49  ;;  %v4862_v49 = vld [vmem:[#allocation8] sm:$0xff] }
 0x16e   : > { %2129 = vmatpush.bf16.msra.mxu2 %v4862_v49 }
 0x16f   : > { %1784 = vst [vmem:[#allocation2 + $0x8] sm:$0xff] %v1774_v11  ;;  %v799_v63 = vadd.f32 %v5562_v53, %v667_v5  ;;  %v1609_v11 = vpop.f32.mrf.mxu3  ;;  %v1863_v5 = vld [vmem:[#allocation3 + $0x4] sm:$0x8] }
 0x170   : > { %v1729_v16 = vpop.f32.mrf.mxu0 }
 0x171   : > { %v1751_v18 = vadd.f32 %v1729_v16, %v1621_v14  ;;  %v1836_v14 = vld [vmem:[#allocation3 + $0x4] sm:$0x2]  ;;  %v1439_v36 = vpop.f32.mrf.mxu2 }
 0x173   : > { %v1765_v0 = vadd.f32 %v5603_v62, %v1751_v18 }
 0x175   : > { %v1775_v23 = vmax.f32 %v1765_v0, 0.0 }
 0x177   : > { %1785 = vst [vmem:[#allocation2 + $0x10] sm:$0xff] %v1775_v23  ;;  %v1275_v23 = vpop.f32.mrf.mxu1 }
 0x178   : > { %v1731_v37 = vpop.f32.mrf.mxu0 }
 0x179   : > { %v1752_v34 = vadd.f32 %v1731_v37, %v1622_v28  ;;  %v957_v28 = vadd.f32 %v5564_v43, %v799_v63  ;;  %v4882_v43 = vld [vmem:[#allocation8 + $0xa0] sm:$0xff] }
 0x17a   : > { %2217 = vmatpush.bf16.msra.mxu3 %v4882_v43 }
 0x17b   : > { %v1766_v42 = vadd.f32 %v5603_v62, %v1752_v34  ;;  %v1160_v37 = vadd.f32 %v5590_v33, %v957_v28  ;;  %v1625_v34 = vadd.f32 %v1609_v11, %v1453_v29  ;;  %v4881_v33 = vld [vmem:[#allocation8 + $0x98] sm:$0xff] }
 0x17d   : > { %v1776_v48 = vmax.f32 %v1766_v42, 0.0  ;;  %v1611_v42 = vpop.f32.mrf.mxu3 }
 0x17e   : > { %v1794_v51 = vld [vmem:[#allocation2 + $0xa] sm:$0xff]  ;;  %2218 = vmatpush.bf16.msra.mxu3 %v4881_v33 }
 0x17f   : > { %v1795_v52 = vmax.f32 %v1773_v46, %v1794_v51  ;;  %1786 = vst [vmem:[#allocation2 + $0x18] sm:$0xff] %v1776_v48  ;;  %v1290_v46 = vadd.f32 %v1275_v23, %v1160_v37 }
 0x180   : > { %v1734_v57 = vpop.f32.mrf.mxu0 }
 0x181   : > { %v1797_v6 = vrot.slane %v1795_v52, 1  ;;  %v1753_v58 = vadd.f32 %v1734_v57, %v1623_v26  ;;  %v4873_v26 = vld [vmem:[#allocation8 + $0x58] sm:$0xff]  ;;  %v1454_v55 = vadd.f32 %v1439_v36, %v1290_v46  ;;  %v4900_v36 = vld [vmem:[#allocation8 + $0x130] sm:$0xff] }
 0x182   : > { %2055 = vmatpush.bf16.msra.mxu1 %v4873_v26 }
 0x183   : > { %v1799_v61 = vmax.f32 %v1795_v52, %v1797_v6  ;;  %v1767_v1 = vadd.f32 %v5603_v62, %v1753_v58  ;;  %v672_v6 = vadd.f32 %v5582_v47, %v5567_v3  ;;  %v1278_v58 = vpop.f32.mrf.mxu1  ;;  %v1874_v47 = vld [vmem:[#allocation3 + $0x8] sm:$0x1] }
 0x185   : > { %v1800_v9 = vpack.c.bf16 %v1799_v61, %v1799_v61  ;;  %v1777_v31 = vmax.f32 %v1767_v1, 0.0  ;;  %v801_v61 = vadd.f32 %v5584_v32, %v672_v6  ;;  %v1442_v1 = vpop.f32.mrf.mxu2  ;;  %v1855_v32 = vld [vmem:[#allocation3 + $0x4] sm:$0x4] }
 0x186   : > { %v1839_v21 = vld [vmem:[#allocation2 + $0x14] sm:$0xff] }
 0x187   : > { %v4190_v16 = vrot.slane %v1800_v9, 9  ;;  %1787 = vst [vmem:[#allocation2 + $0x20] sm:$0xff] %v1777_v31  ;;  %v1802_v50 = vshll.u32 %v1800_v9, 16  ;;  %v4192_v17 = vrot.slane %v1800_v9, 10  ;;  %v1626_v9 = vadd.f32 %v1611_v42, %v1454_v55 }
 0x188   : > { %v1736_v53 = vpop.f32.mrf.mxu0 }
 0x189   : > { %v1754_v0 = vadd.f32 %v1736_v53, %v1624_v15  ;;  %v1804_v27 = vrot.slane %v1802_v50, 5  ;;  %v1820_v30 = vsel %vm5618_vm12, %v4190_v16, %v1819_v13  ;;  %v1837_v10 = vsel %vm5624_vm13, %v4192_v17, %v1836_v14 }
 0x18a   : > { %1821 = vst [vmem:[#allocation3 + $0x4] sm:$0x1] %v1820_v30  ;;  %v4191_v45 = vrot.slane %v1802_v50, 10  ;;  %v1291_v14 = vadd.f32 %v1278_v58, %v5592_v38  ;;  %v1614_v50 = vpop.f32.mrf.mxu3  ;;  %v959_v53 = vadd.f32 %v5586_v22, %v801_v61  ;;  %v4901_v38 = vld [vmem:[#allocation8 + $0x138] sm:$0xff] }
 0x18b   : > { %v5641_v35 = vadd.f32 %v5603_v62, %v1754_v0  ;;  %v1810_v25 = vsel %vm5630_vm14, %v1804_v27, %v1809_v20  ;;  %1838 = vst [vmem:[#allocation3 + $0x4] sm:$0x2] %v1837_v10  ;;  %v1280_v23 = vpop.f32.mrf.mxu1  ;;  %v4880_v10 = vld [vmem:[#allocation8 + $0x90] sm:$0xff]  ;;  %2429 = vmatpush.bf16.msrb.mxu2 %v4901_v38  ;;  %v4894_v38 = vld [vmem:[#allocation8 + $0x100] sm:$0xff] }
 0x18c   : > { %1811 = vst [vmem:[#allocation3] sm:$0x8] %v1810_v25  ;;  %v1455_v20 = vadd.f32 %v1442_v1, %v1291_v14  ;;  %v1162_v27 = vadd.f32 %v5597_v7, %v959_v53  ;;  %2219 = vmatpush.bf16.msra.mxu3 %v4880_v10  ;;  %v4872_v25 = vld [vmem:[#allocation8 + $0x50] sm:$0xff]  ;;  %v4879_v7 = vld [vmem:[#allocation8 + $0x88] sm:$0xff]  ;;  %v4906_v53 = vld [vmem:[#allocation8 + $0x160] sm:$0xff] }
 0x18d   : > { %v1778_v60 = vmax.f32 %v5641_v35, 0.0  ;;  %v1444_v12 = vpop.f32.mrf.mxu2  ;;  %2056 = vmatpush.bf16.msra.mxu1 %v4872_v25  ;;  %v4893_v35 = vld [vmem:[#allocation8 + $0xf8] sm:$0xff]  ;;  %v4907_v14 = vld [vmem:[#allocation8 + $0x168] sm:$0xff] }
 0x18e   : > { %v1840_v2 = vld [vmem:[#allocation2 + $0x1e] sm:$0xff]  ;;  %v1627_v28 = vadd.f32 %v1614_v50, %v1455_v20  ;;  %v1292_v37 = vadd.f32 %v1280_v23, %v1162_v27  ;;  %v4895_v50 = vld [vmem:[#allocation8 + $0x108] sm:$0xff] }
 0x18f   : > { %v1841_v39 = vmax.f32 %v1839_v21, %v1840_v2  ;;  %2430 = vmatpush.bf16.msrb.mxu2 %v4900_v36  ;;  %v4925_v25 = vld [vmem:[#allocation8 + $0x1f8] sm:$0xff]  ;;  %v4904_v36 = vld [vmem:[#allocation8 + $0x150] sm:$0xff] }
 0x190   : > { %v1739_v44 = vpop.f32.mrf.mxu0  ;;  %2220 = vmatpush.bf16.msra.mxu3 %v4879_v7  ;;  %v4924_v7 = vld [vmem:[#allocation8 + $0x1f0] sm:$0xff] }
 0x191   : > { %v1843_v48 = vrot.slane %v1841_v39, 1  ;;  %v1755_v51 = vadd.f32 %v1739_v44, %v1625_v34  ;;  %v1827_v52 = vld [vmem:[#allocation3 + $0x4] sm:$0x1]  ;;  %v4878_v44 = vld [vmem:[#allocation8 + $0x80] sm:$0xff]  ;;  %2057 = vmatpush.bf16.msra.mxu1 %v4871_v40 }
 0x192   : > { %v1828_v54 = vsel %vm5648_vm2, %v4191_v45, %v1827_v52  ;;  %v1616_v42 = vpop.f32.mrf.mxu3  ;;  %v4899_v45 = vld [vmem:[#allocation8 + $0x128] sm:$0xff]  ;;  %v4898_v52 = vld [vmem:[#allocation8 + $0x120] sm:$0xff] }
 0x193   : > { %v1845_v56 = vmax.f32 %v1841_v39, %v1843_v48  ;;  %v1769_v57 = vadd.f32 %v5603_v62, %v1755_v51  ;;  %1829 = vst [vmem:[#allocation3 + $0x4] sm:$0x1] %v1828_v54  ;;  %v1456_v39 = vadd.f32 %v1444_v12, %v1292_v37  ;;  %v4870_v51 = vld [vmem:[#allocation8 + $0x40] sm:$0xff]  ;;  %2431 = vmatpush.bf16.msrb.mxu2 %v4899_v45 }
 0x194   : > { %2221 = vmatpush.bf16.msra.mxu3 %v4878_v44  ;;  %v4903_v44 = vld [vmem:[#allocation8 + $0x148] sm:$0xff] }
 0x195   : > { %v1846_v59 = vpack.c.bf16 %v1845_v56, %v1845_v56  ;;  %v1779_v8 = vmax.f32 %v1769_v57, 0.0  ;;  %v1628_v33 = vadd.f32 %v1616_v42, %v1456_v39  ;;  %2058 = vmatpush.bf16.msra.mxu1 %v4870_v51  ;;  %v4909_v57 = vld [vmem:[#allocation8 + $0x178] sm:$0xff]  ;;  %v5022_v51 = vld [vmem:[#allocation3] sm:$0xe] }
 0x197   : > { %v1848_v31 = vshll.u32 %v1846_v59, 16  ;;  %v1859_v63 = vrot.slane %v1846_v59, 6  ;;  %1789 = vst [vmem:[#allocation2 + $0x30] sm:$0xff] %v1779_v8  ;;  %v4193_v3 = vrot.slane %v1846_v59, 11  ;;  %2432 = vmatpush.bf16.msrb.mxu2 %v4898_v52  ;;  %v1907_v59 = vld [vmem:[#allocation3 + $0x8] sm:$0x8] }
 0x198   : > { %v1741_v11 = vpop.f32.mrf.mxu0  ;;  %2519 = vmatpush.bf16.msrb.mxu3 %v4909_v57  ;;  %v4908_v8 = vld [vmem:[#allocation8 + $0x170] sm:$0xff]  ;;  %v4923_v52 = vld [vmem:[#allocation8 + $0x1e8] sm:$0xff] }
 0x199   : > { %v1756_v15 = vadd.f32 %v1741_v11, %v1626_v9  ;;  %v1850_v16 = vrot.slane %v1848_v31, 6  ;;  %v1864_v49 = vsel %vm5659_vm11, %v1859_v63, %v1863_v5  ;;  %v1875_v17 = vsel %vm5618_vm12, %v4193_v3, %v1874_v47  ;;  %vm5689_vm12 = vmand %vm1852_vm7, %vm1898_vm10  ;;  %v1900_v9 = vld [vmem:[#allocation3 + $0x8] sm:$0x4]  ;;  %2319 = vmatpush.bf16.msrb.mxu1 %v4893_v35  ;;  %v4917_v11 = vld [vmem:[#allocation8 + $0x1b8] sm:$0xff] }
 0x19a   : > { %1865 = vst [vmem:[#allocation3 + $0x4] sm:$0x8] %v1864_v49  ;;  %v1866_v22 = vrot.slane %v1848_v31, 7  ;;  %v4896_v31 = vld [vmem:[#allocation8 + $0x110] sm:$0xff]  ;;  %v4891_v49 = vld [vmem:[#allocation8 + $0xe8] sm:$0xff] }
 0x19b   : > { %v1770_v24 = vadd.f32 %v5603_v62, %v1756_v15  ;;  %v1856_v0 = vsel %vm5664_vm15, %v1850_v16, %v1855_v32  ;;  %1876 = vst [vmem:[#allocation3 + $0x8] sm:$0x1] %v1875_v17  ;;  %v1892_v32 = vld [vmem:[#allocation3 + $0x8] sm:$0x2] }
 0x19c   : > { %1857 = vst [vmem:[#allocation3 + $0x4] sm:$0x4] %v1856_v0  ;;  %2520 = vmatpush.bf16.msrb.mxu3 %v4908_v8  ;;  %v4890_v0 = vld [vmem:[#allocation8 + $0xe0] sm:$0xff] }
 0x19d   : > { %v1780_v30 = vmax.f32 %v1770_v24, 0.0 }
 0x19f   : > { %1790 = vst [vmem:[#allocation2 + $0x38] sm:$0xff] %v1780_v30 }
 0x1a0   : > { %v1744_v29 = vpop.f32.mrf.mxu0  ;;  %2521 = vmatpush.bf16.msrb.mxu3 %v4907_v14 }
 0x1a1   : > { %v1757_v21 = vadd.f32 %v1744_v29, %v1627_v28  ;;  %v1868_v2 = vld [vmem:[#allocation3 + $0x4] sm:$0x8]  ;;  %v4905_v28 = vld [vmem:[#allocation8 + $0x158] sm:$0xff]  ;;  %v1925_v29 = vld [vmem:[#allocation3 + $0xc] sm:$0x2] }
 0x1a2   : > { %v1869_v34 = vsel %vm5630_vm14, %v1866_v22, %v1868_v2  ;;  %vm1890_vm14 = vsmask.f32 7942  ;;  %v4889_v22 = vld [vmem:[#allocation8 + $0xd8] sm:$0xff]  ;;  %v1938_v2 = vld [vmem:[#allocation3 + $0xc] sm:$0x4] }
 0x1a3   : > { %v1771_v43 = vadd.f32 %v5603_v62, %v1757_v21  ;;  %1870 = vst [vmem:[#allocation3 + $0x4] sm:$0x8] %v1869_v34  ;;  %vm5696_vm6 = vmand %vm1833_vm8, %vm1890_vm14  ;;  %v1922_v21 = vld [vmem:[#allocation3 + $0xc] sm:$0x1] }
 0x1a4   : > { %2522 = vmatpush.bf16.msrb.mxu3 %v4906_v53  ;;  %v4888_v34 = vld [vmem:[#allocation8 + $0xd0] sm:$0xff] }
 0x1a5   : > { %v1781_v46 = vmax.f32 %v1771_v43, 0.0 }
 0x1a6   : > { %v1878_v48 = vld [vmem:[#allocation2 + $0x32] sm:$0xff] }
 0x1a7   : > { %v1879_v19 = vmax.f32 %v1778_v60, %v1878_v48  ;;  %1791 = vst [vmem:[#allocation2 + $0x40] sm:$0xff] %v1781_v46  ;;  %v4897_v60 = vld [vmem:[#allocation8 + $0x118] sm:$0xff] }
 0x1a8   : > { %v1746_v26 = vpop.f32.mrf.mxu0  ;;  %2433 = vmatpush.bf16.msrb.mxu2 %v4897_v60  ;;  %2523 = vmatpush.bf16.msrb.mxu3 %v4905_v28 }
 0x1a9   : > { %v1881_v54 = vrot.slane %v1879_v19, 1  ;;  %v1758_v55 = vadd.f32 %v1746_v26, %v1628_v33  ;;  %v4887_v33 = vld [vmem:[#allocation8 + $0xc8] sm:$0xff] }
 0x1aa   : > { %v5683_v56 = vld [vmem:[#allocation3] sm:$0xff]  }
 0x1ab   : > { %v1883_v6 = vmax.f32 %v1879_v19, %v1881_v54  ;;  %v1772_v58 = vadd.f32 %v5603_v62, %v1758_v55  ;;  %2130 = vmatmul.bf16.vlgmr.msra.gmra.mxu2 %v5683_v56  ;;  %v4892_v62 = vld [vmem:[#allocation8 + $0xf0] sm:$0xff]  ;;  %v5021_v42 = vld [vmem:[#allocation3] sm:$0xf0]  ;;  %v1989_v48 = vshll.u32 %v5683_v56, 16  ;;  %v1987_v8 = vshrl.u32 %v5683_v56, 16 }
 0x1ac   : > { %2320 = vmatpush.bf16.msrb.mxu1 %v4892_v62  ;;  %2434 = vmatpush.bf16.msrb.mxu2 %v4896_v31  ;;  %v5023_v57 = vor.u32 %v5022_v51, %v5021_v42  ;;  %v4922_v31 = vld [vmem:[#allocation8 + $0x1e0] sm:$0xff] }
 0x1ad   : > { %v1884_v61 = vpack.c.bf16 %v1883_v6, %v1883_v6  ;;  %v1782_v1 = vmax.f32 %v1772_v58, 0.0  ;;  %2524 = vmatpush.bf16.msrb.mxu3 %v4904_v36  ;;  %v4902_v6 = vld [vmem:[#allocation8 + $0x140] sm:$0xff]  ;;  %v1991_v58 = vrot.slane %v1989_v48, 1 }
 0x1ae   : > { %v1910_v20 = vld [vmem:[#allocation2 + $0x3c] sm:$0xff]  ;;  %v2161_v5 = vrot.slane %v5023_v57, 1  ;;  %v4911_v57 = vld [vmem:[#allocation8 + $0x188] sm:$0xff] }
 0x1af   : > { %v1896_v63 = vrot.slane %v1884_v61, 7  ;;  %1792 = vst [vmem:[#allocation2 + $0x48] sm:$0x3f] %v1782_v1  ;;  %v1908_v3 = vsel %vm5659_vm11, %v1884_v61, %v1907_v59  ;;  %v1886_v47 = vshll.u32 %v1884_v61, 16  ;;  %v4886_v61 = vld [vmem:[#allocation8 + $0xc0] sm:$0xff] }
 0x1b0   : > { %1909 = vst [vmem:[#allocation3 + $0x8] sm:$0x8] %v1908_v3  ;;  %2321 = vmatpush.bf16.msrb.mxu1 %v4891_v49  ;;  %2435 = vmatpush.bf16.msrb.mxu2 %v4895_v50  ;;  %v2235_v3 = vld [vmem:[#allocation3] sm:$0x8]  ;;  %v4921_v50 = vld [vmem:[#allocation8 + $0x1d8] sm:$0xff] }
 0x1b1   : > { %v1888_v15 = vrot.slane %v1886_v47, 7  ;;  %v1901_v16 = vsel %vm5689_vm12, %v1896_v63, %v1900_v9  ;;  %2525 = vmatpush.bf16.msrb.mxu3 %v4903_v44  ;;  %v2260_v49 = vunpack.c.l.b16 %v2235_v3 }
 0x1b2   : > { %1902 = vst [vmem:[#allocation3 + $0x8] sm:$0x4] %v1901_v16 }
 0x1b3   : > { %v1893_v17 = vsel %vm5696_vm6, %v1888_v15, %v1892_v32  ;;  %v4933_v15 = vld [vmem:[#allocation8 + $0x238] sm:$0xff] }
 0x1b4   : > { %1894 = vst [vmem:[#allocation3 + $0x8] sm:$0x2] %v1893_v17  ;;  %2322 = vmatpush.bf16.msrb.mxu1 %v4890_v0  ;;  %2436 = vmatpush.bf16.msrb.mxu2 %v4894_v38  ;;  %v4932_v17 = vld [vmem:[#allocation8 + $0x230] sm:$0xff] }
 0x1b5   : > { %2526 = vmatpush.bf16.msrb.mxu3 %v4902_v6  ;;  %v4920_v0 = vld [vmem:[#allocation8 + $0x1d0] sm:$0xff] }
 0x1b6   : > { %v1911_v24 = vld [vmem:[#allocation2 + $0x46] sm:$0xff] }
 0x1b7   : > { %v1912_v27 = vmax.f32 %v1910_v20, %v1911_v24  ;;  %v4916_v24 = vld [vmem:[#allocation8 + $0x1b0] sm:$0xff] }
 0x1b8   : > { %2323 = vmatpush.bf16.msrb.mxu1 %v4889_v22  ;;  %2733 = vmatpush.bf16.msra.mxu2 %v4925_v25  ;;  %v4919_v22 = vld [vmem:[#allocation8 + $0x1c8] sm:$0xff]  ;;  %v4930_v25 = vld [vmem:[#allocation8 + $0x220] sm:$0xff] }
 0x1b9   : > { %v1914_v30 = vrot.slane %v1912_v27, 1  ;;  %v1904_v23 = vld [vmem:[#allocation3 + $0x8] sm:$0x4] }
 0x1ba   : > { %v1905_v10 = vsel %vm5664_vm15, %v1886_v47, %v1904_v23  ;;  %v1992_v47 = vor.u32 %v1991_v58, %v1987_v8  ;;  %v4910_v8 = vld [vmem:[#allocation8 + $0x180] sm:$0xff] }
 0x1bb   : > { %v1916_v12 = vmax.f32 %v1912_v27, %v1914_v30  ;;  %1906 = vst [vmem:[#allocation3 + $0x8] sm:$0x4] %v1905_v10  ;;  %v4931_v27 = vld [vmem:[#allocation8 + $0x228] sm:$0xff] }
 0x1bc   : > { %2324 = vmatpush.bf16.msrb.mxu1 %v4888_v34  ;;  %2734 = vmatpush.bf16.msra.mxu2 %v4924_v7  ;;  %v4914_v34 = vld [vmem:[#allocation8 + $0x1a0] sm:$0xff] }
 0x1bd   : > { %v1917_v37 = vpack.c.bf16 %v1916_v12, %v1916_v12  ;;  %v4915_v12 = vld [vmem:[#allocation8 + $0x1a8] sm:$0xff] }
 0x1bf   : > { %v1919_v39 = vshll.u32 %v1917_v37, 16  ;;  %v4195_v43 = vrot.slane %v1917_v37, 9  ;;  %v1926_v40 = vsel %vm5624_vm13, %v1917_v37, %v1925_v29 }
 0x1c0   : > { %1927 = vst [vmem:[#allocation3 + $0xc] sm:$0x2] %v1926_v40  ;;  %2325 = vmatpush.bf16.msrb.mxu1 %v4887_v33  ;;  %2735 = vmatpush.bf16.msra.mxu2 %v4923_v52  ;;  %v4913_v33 = vld [vmem:[#allocation8 + $0x198] sm:$0xff]  ;;  %v4912_v52 = vld [vmem:[#allocation8 + $0x190] sm:$0xff] }
 0x1c1   : > { %v1923_v45 = vsel %vm5648_vm2, %v1919_v39, %v1922_v21  ;;  %v1939_v46 = vsel %vm5689_vm12, %v4195_v43, %v1938_v2  ;;  %v4194_v60 = vrot.slane %v1919_v39, 9  ;;  %v4918_v43 = vld [vmem:[#allocation8 + $0x1c0] sm:$0xff] }
 0x1c2   : > { %1924 = vst [vmem:[#allocation3 + $0xc] sm:$0x1] %v1923_v45  ;;  %v1943_v19 = vld [vmem:[#allocation3 + $0x8] sm:$0x7] }
 0x1c3   : > { %v5713_v26 = vld [vmem:[#allocation3 + $0x4] sm:$0xff]   ;;  %1940 = vst [vmem:[#allocation3 + $0xc] sm:$0x4] %v1939_v46  ;;  %v2070_v54 = vunpack.c.l.b16 %v1943_v19  ;;  %v4929_v46 = vld [vmem:[#allocation8 + $0x218] sm:$0xff]  ;;  %v4928_v19 = vld [vmem:[#allocation8 + $0x210] sm:$0xff] }
 0x1c4   : > { %v1983_v55 = vunpack.c.h.b16 %v5713_v26  ;;  %v2261_v14 = vunpack.c.l.b16 %v5713_v26  ;;  %2326 = vmatpush.bf16.msrb.mxu1 %v4886_v61  ;;  %2736 = vmatpush.bf16.msra.mxu2 %v4922_v31  ;;  %v2237_v20 = vld [vmem:[#allocation3 + $0x8] sm:$0xf] }
 0x1c5   : > { %v2071_v59 = vpack.c.b16 %v2070_v54, %v2070_v54  ;;  %v2262_v30 = vunpack.c.l.b16 %v2237_v20 }
 0x1c6   : > { %v5716_v35 = vpack.c.b16 %v1983_v55, %v1983_v55  ;;  %v5728_v53 = vpack.c.b16 %v2261_v14, %v2260_v49  ;;  %v4927_v55 = vld [vmem:[#allocation8 + $0x208] sm:$0xff] }
 0x1c7   : > { %v1931_v1 = vld [vmem:[#allocation3 + $0xc] sm:$0x2]  ;;  %2135 = vmatmul.bf16.gmra.mxu2 %v2071_v59  ;;  %v2645_v59 = vld [vmem:[#allocation3 + $0x10] sm:$0x3] }
 0x1c8   : > { %v2162_v9 = vrot.slane %v5716_v35, 1  ;;  %v1994_v62 = vshll.u32 %v5716_v35, 16  ;;  %v1932_v63 = vsel %vm5696_vm6, %v4194_v60, %v1931_v1  ;;  %2737 = vmatpush.bf16.msra.mxu2 %v4921_v50  ;;  %v2363_v10 = vshrl.u32 %v5728_v53, 16  ;;  %v2540_v60 = vld [vmem:[#allocation3 + $0x4] sm:$0xc] }
 0x1c9   : > { %1933 = vst [vmem:[#allocation3 + $0xc] sm:$0x2] %v1932_v63  ;;  %v2366_v28 = vshll.u32 %v5728_v53, 16  ;;  %v1998_v40 = vshrl.u32 %v5716_v35, 16  ;;  %v4926_v35 = vld [vmem:[#allocation8 + $0x200] sm:$0xff]  ;;  %v2266_v31 = vrot.slane %v5728_v53, 3  ;;  %v2565_v63 = vunpack.c.l.b16 %v2540_v60 }
 0x1ca   : > { %v2163_v56 = vsel %vm695_vm1, %v2161_v5, %v2162_v9  ;;  %v1996_v32 = vrot.slane %v1994_v62, 1  ;;  %v2365_v36 = vrot.slane %v2363_v10, 3  ;;  %v2467_v62 = vpack.c.b16 %v2262_v30, %v2261_v14  ;;  %v4957_v60 = vld [vmem:[#allocation10 + $0xb8] sm:$0xff] }
 0x1cb   : > { %2222 = vmatmul.bf16.vlgmr.msra.gmra.mxu3 %v2163_v56  ;;  %v2368_v37 = vrot.slane %v2366_v28, 4 }
 0x1cc   : > { %v1997_v16 = vsel %vm457_vm0, %v1992_v47, %v1996_v32  ;;  %2828 = vmatpush.bf16.msra.mxu3 %v4933_v15  ;;  %2738 = vmatpush.bf16.msra.mxu2 %v4920_v0  ;;  %vm2361_vm0 = vsmask.f32 4352  ;;  %v2000_v45 = vor.u32 %v1998_v40, %v1996_v32  ;;  %v2754_v0 = vld [vmem:[#allocation3 + $0x4] sm:$0x8]  ;;  %v4949_v40 = vld [vmem:[#allocation10 + $0x78] sm:$0xff] }
 0x1cd   : > { %2059 = vmatmul.bf16.vlgmr.msra.gmra.mxu1 %v1997_v16  ;;  %v2369_v42 = vor.u32 %v2368_v37, %v2365_v36  ;;  %2996 = vmatpush.bf16.msrb.mxu0 %v4949_v40 }
 0x1ce   : > { %2624 = vmatpush.bf16.msra.mxu1 %v4917_v11 }
 0x1d0   : > { %v2340_v38 = vld [vmem:[#allocation3 + $0xc] sm:$0x7]  ;;  %2829 = vmatpush.bf16.msra.mxu3 %v4932_v17  ;;  %2739 = vmatpush.bf16.msra.mxu2 %v4919_v22 }
 0x1d1   : > { %v5730_v23 = vunpack.c.l.b16 %v2340_v38  ;;  %v2238_v51 = vld [vmem:[#allocation3 + $0xc] sm:$0x3]  ;;  %v2543_v38 = vld [vmem:[#allocation3 + $0x10] sm:$0x1] }
 0x1d2   : > { %2625 = vmatpush.bf16.msra.mxu1 %v4916_v24  ;;  %v2263_v54 = vunpack.c.l.b16 %v2238_v51  ;;  %v5024_v58 = vld [vmem:[#allocation3 + $0x8] sm:$0xff]  }
 0x1d3   : > { %v2360_v29 = vpack.c.b16 %v5730_v23, %v2262_v30  ;;  %v5016_v1 = vunpack.c.l.b16 %v5024_v58  ;;  %v5017_v5 = vunpack.c.h.b16 %v5024_v58  ;;  %v2468_v20 = vpack.c.b16 %v5730_v23, %v5730_v23 }
 0x1d4   : > { %2830 = vmatpush.bf16.msra.mxu3 %v4931_v27  ;;  %2740 = vmatpush.bf16.msra.mxu2 %v4918_v43  ;;  %v2265_v6 = vpack.c.b16 %v2263_v54, %v2262_v30  ;;  %v2773_v27 = vunpack.c.l.b16 %v2754_v0  ;;  %v2568_v30 = vunpack.c.l.b16 %v2543_v38  ;;  %v4943_v0 = vld [vmem:[#allocation10 + $0x48] sm:$0xff] }
 0x1d5   : > { %v2371_v21 = vshrl.u32 %v2360_v29, 16  ;;  %v2374_v2 = vshll.u32 %v2360_v29, 16  ;;  %v2569_v47 = vpack.c.b16 %v5016_v1, %v2565_v63 }
 0x1d6   : > { %2626 = vmatpush.bf16.msra.mxu1 %v4915_v12  ;;  %v2267_v61 = vrot.slane %v2265_v6, 3  ;;  %v2774_v10 = vpack.c.b16 %v5016_v1, %v2773_v27  ;;  %v2570_v28 = vpack.c.b16 %v2568_v30, %v5017_v5  ;;  %v4941_v6 = vld [vmem:[#allocation10 + $0x38] sm:$0xff]  ;;  %v4946_v1 = vld [vmem:[#allocation10 + $0x60] sm:$0xff] }
 0x1d7   : > { %v2373_v7 = vrot.slane %v2371_v21, 3  ;;  %v2376_v39 = vrot.slane %v2374_v2, 4  ;;  %v2667_v32 = vshrl.u32 %v2569_v47, 16  ;;  %v2670_v15 = vshll.u32 %v2569_v47, 16  ;;  %v4953_v27 = vld [vmem:[#allocation10 + $0x98] sm:$0xff] }
 0x1d8   : > { %2831 = vmatpush.bf16.msra.mxu3 %v4930_v25  ;;  %v2268_v3 = vsel %vm1650_vm5, %v2266_v31, %v2267_v61  ;;  %v2775_v12 = vrot.slane %v2774_v10, 3  ;;  %v2571_v22 = vrot.slane %v2569_v47, 2  ;;  %v2572_v25 = vrot.slane %v2570_v28, 2  ;;  %v4965_v31 = vld [vmem:[#allocation10 + $0xf8] sm:$0xff]  ;;  %v4935_v28 = vld [vmem:[#allocation10 + $0x8] sm:$0xff] }
 0x1d9   : > { %v2377_v44 = vor.u32 %v2376_v39, %v2373_v7  ;;  %v2669_v11 = vrot.slane %v2667_v32, 2  ;;  %v2672_v50 = vrot.slane %v2670_v15, 3 }
 0x1da   : > { %2627 = vmatpush.bf16.msra.mxu1 %v4914_v34  ;;  %v2573_v23 = vsel %vm1184_vm3, %v2571_v22, %v2572_v25 }
 0x1db   : > { %2227 = vmatmul.bf16.gmra.mxu3 %v2162_v9  ;;  %v2378_v48 = vsel %vm2361_vm0, %v2369_v42, %v2377_v44  ;;  %v2664_v9 = vunpack.c.l.b16 %v2645_v59  ;;  %v2673_v17 = vor.u32 %v2672_v50, %v2669_v11  ;;  %v4940_v59 = vld [vmem:[#allocation10 + $0x30] sm:$0xff] }
 0x1dc   : > { %2437 = vmatmul.bf16.vlgmr.msrb.gmra.mxu2 %v2378_v48  ;;  %2832 = vmatpush.bf16.msra.mxu3 %v4929_v46  ;;  %v4948_v46 = vld [vmem:[#allocation10 + $0x70] sm:$0xff] }
 0x1dd   : > { %2064 = vmatmul.bf16.gmra.mxu1 %v2000_v45  ;;  %v2665_v56 = vpack.c.b16 %v2664_v9, %v5017_v5  ;;  %2997 = vmatpush.bf16.msrb.mxu0 %v4948_v46  ;;  %v4956_v9 = vld [vmem:[#allocation10 + $0xb0] sm:$0xff]  ;;  %v4981_v46 = vld [vmem:[#allocation10 + $0x178] sm:$0xff] }
 0x1de   : > { %2628 = vmatpush.bf16.msra.mxu1 %v4913_v33  ;;  %3141 = vmatpush.bf16.msrb.mxu2 %v4957_v60  ;;  %v4944_v50 = vld [vmem:[#allocation10 + $0x50] sm:$0xff]  ;;  %v4950_v60 = vld [vmem:[#allocation10 + $0x80] sm:$0xff] }
 0x1df   : > { %v2675_v16 = vshrl.u32 %v2665_v56, 16  ;;  %v2678_v49 = vshll.u32 %v2665_v56, 16  ;;  %v2776_v29 = vrot.slane %v2665_v56, 3  ;;  %v4955_v56 = vld [vmem:[#allocation10 + $0xa8] sm:$0xff] }
 0x1e0   : > { %2833 = vmatpush.bf16.msra.mxu3 %v4928_v19 }
 0x1e1   : > { %v2677_v26 = vrot.slane %v2675_v16, 2  ;;  %v2680_v14 = vrot.slane %v2678_v49, 3  ;;  %v2777_v36 = vsel %vm1650_vm5, %v2775_v12, %v2776_v29  ;;  %v4937_v16 = vld [vmem:[#allocation10 + $0x18] sm:$0xff]  ;;  %v4964_v49 = vld [vmem:[#allocation10 + $0xf0] sm:$0xff]  ;;  %v4962_v12 = vld [vmem:[#allocation10 + $0xe0] sm:$0xff] }
 0x1e2   : > { %2629 = vmatpush.bf16.msra.mxu1 %v4912_v52  ;;  %v4947_v52 = vld [vmem:[#allocation10 + $0x68] sm:$0xff]  ;;  %3142 = vmatpush.bf16.msrb.mxu2 %v4956_v9 }
 0x1e3   : > { %v2681_v53 = vor.u32 %v2680_v14, %v2677_v26  ;;  %2998 = vmatpush.bf16.msrb.mxu0 %v4947_v52  ;;  %v4954_v14 = vld [vmem:[#allocation10 + $0xa0] sm:$0xff]  ;;  %v4959_v9 = vld [vmem:[#allocation10 + $0xc8] sm:$0xff] }
 0x1e4   : > { %2834 = vmatpush.bf16.msra.mxu3 %v4927_v55 }
 0x1e5   : > { %v2682_v24 = vsel %vm1478_vm4, %v2673_v17, %v2681_v53  ;;  %v4936_v17 = vld [vmem:[#allocation10 + $0x10] sm:$0xff] }
 0x1e6   : > { %2630 = vmatpush.bf16.msra.mxu1 %v4911_v57  ;;  %3143 = vmatpush.bf16.msrb.mxu2 %v4955_v56  ;;  %v4958_v56 = vld [vmem:[#allocation10 + $0xc0] sm:$0xff] }
 0x1e7   : > { %2999 = vmatpush.bf16.msrb.mxu0 %v4946_v1 }
 0x1e8   : > { %2835 = vmatpush.bf16.msra.mxu3 %v4926_v35 }
 0x1ea   : > { %2631 = vmatpush.bf16.msra.mxu1 %v4910_v8  ;;  %3144 = vmatpush.bf16.msrb.mxu2 %v4954_v14 }
 0x1eb   : > { %2527 = vmatmul.bf16.vlgmr.msrb.gmra.mxu3 %v2467_v62  ;;  %v4938_v62 = vld [vmem:[#allocation10 + $0x20] sm:$0xff] }
 0x1ec   : > { %2442 = vmatmul.bf16.gmra.mxu2 %v2377_v44  ;;  %3229 = vmatpush.bf16.msrb.mxu3 %v4965_v31  ;;  %v4970_v31 = vld [vmem:[#allocation10 + $0x120] sm:$0xff] }
 0x1ed   : > { %2327 = vmatmul.bf16.vlgmr.msrb.gmra.mxu1 %v2268_v3  ;;  %v4945_v3 = vld [vmem:[#allocation10 + $0x58] sm:$0xff] }
 0x1ee   : > { %3057 = vmatpush.bf16.msrb.mxu1 %v4941_v6  ;;  %3000 = vmatpush.bf16.msrb.mxu0 %v4945_v3 }
 0x1ef   : > { %3145 = vmatpush.bf16.msrb.mxu2 %v4953_v27  ;;  %v4986_v27 = vld [vmem:[#allocation10 + $0x1a0] sm:$0xff] }
 0x1f0   : > { %3230 = vmatpush.bf16.msrb.mxu3 %v4964_v49 }
 0x1f2   : > { %3058 = vmatpush.bf16.msrb.mxu1 %v4940_v59  ;;  %3001 = vmatpush.bf16.msrb.mxu0 %v4944_v50 }
 0x1f6   : > { %3002 = vmatpush.bf16.msrb.mxu0 %v4943_v0  ;;  %v4968_v0 = vld [vmem:[#allocation10 + $0x110] sm:$0xff] }
 0x1fb   : > { %2532 = vmatmul.bf16.gmra.mxu3 %v2468_v20 }
 0x1fc   : > { %2741 = vmatmul.bf16.vlgmr.msra.gmra.mxu2 %v2682_v24 }
 0x1fd   : > { %2332 = vmatmul.bf16.gmra.mxu1 %v2267_v61  ;;  %v4939_v61 = vld [vmem:[#allocation10 + $0x28] sm:$0xff] }
 0x1fe   : > { %3059 = vmatpush.bf16.msrb.mxu1 %v4939_v61 }
 0x202   : > { %3060 = vmatpush.bf16.msrb.mxu1 %v4938_v62 }
 0x206   : > { %3061 = vmatpush.bf16.msrb.mxu1 %v4937_v16  ;;  %v4997_v16 = vld [vmem:[#allocation10 + $0x1f8] sm:$0xff] }
 0x20a   : > { %3062 = vmatpush.bf16.msrb.mxu1 %v4936_v17 }
 0x20b   : > { %2836 = vmatmul.bf16.vlgmr.msra.gmra.mxu3 %v2777_v36 }
 0x20c   : > { %2746 = vmatmul.bf16.gmra.mxu2 %v2681_v53  ;;  %v4963_v53 = vld [vmem:[#allocation10 + $0xe8] sm:$0xff] }
 0x20d   : > { %2632 = vmatmul.bf16.vlgmr.msra.gmra.mxu1 %v2573_v23  ;;  %3231 = vmatpush.bf16.msrb.mxu3 %v4963_v53  ;;  %v4952_v23 = vld [vmem:[#allocation10 + $0x90] sm:$0xff] }
 0x20e   : > { %3063 = vmatpush.bf16.msrb.mxu1 %v4935_v28  ;;  %3146 = vmatpush.bf16.msrb.mxu2 %v4952_v23  ;;  %v4995_v28 = vld [vmem:[#allocation10 + $0x1e8] sm:$0xff] }
 0x20f   : > { %v4975_v23 = vld [vmem:[#allocation10 + $0x148] sm:$0xff] }
 0x211   : > { %3232 = vmatpush.bf16.msrb.mxu3 %v4962_v12  ;;  %v4967_v12 = vld [vmem:[#allocation10 + $0x108] sm:$0xff] }
 0x21b   : > { %2841 = vmatmul.bf16.gmra.mxu3 %v2776_v29 }
 0x21d   : > { %2637 = vmatmul.bf16.gmra.mxu1 %v2572_v25  ;;  %v4942_v25 = vld [vmem:[#allocation10 + $0x40] sm:$0xff] }
 0x21e   : > { %3003 = vmatpush.bf16.msrb.mxu0 %v4942_v25 }
 0x22e   : > { %v2131_v37 = vpop.f32.mrf.mxu2 }
 0x236   : > { %v2133_v21 = vpop.f32.mrf.mxu2 }
 0x24a   : > { %v2060_v2 = vpop.f32.mrf.mxu1  ;;  %v5745_v34 = vpop.f32.mrf.mxu2 }
 0x24b   : > { %v2132_v63 = vadd.f32 %v2131_v37, %v2060_v2  ;;  %v4973_v37 = vld [vmem:[#allocation10 + $0x138] sm:$0xff]  ;;  %v4934_v2 = vld [vmem:[#allocation10] sm:$0xff] }
 0x24c   : > { %3321 = vmatpush.bf16.msra.mxu0 %v4973_v37  ;;  %3064 = vmatpush.bf16.msrb.mxu1 %v4934_v2  ;;  %v4994_v37 = vld [vmem:[#allocation10 + $0x1e0] sm:$0xff] }
 0x24e   : > { %v2223_v7 = vpop.f32.mrf.mxu3 }
 0x24f   : > { %v2232_v32 = vadd.f32 %v2223_v7, %v2132_v63  ;;  %v4961_v7 = vld [vmem:[#allocation10 + $0xd8] sm:$0xff]  ;;  %v4988_v63 = vld [vmem:[#allocation10 + $0x1b0] sm:$0xff] }
 0x250   : > { %3233 = vmatpush.bf16.msrb.mxu3 %v4961_v7  ;;  %3406 = vmatpush.bf16.msra.mxu1 %v4981_v46  ;;  %v4966_v7 = vld [vmem:[#allocation10 + $0x100] sm:$0xff] }
 0x252   : > { %v2062_v39 = vpop.f32.mrf.mxu1  ;;  %v2138_v43 = vpop.f32.mrf.mxu2 }
 0x253   : > { %v2134_v20 = vadd.f32 %v2133_v21, %v2062_v39 }
 0x256   : > { %v2225_v42 = vpop.f32.mrf.mxu3 }
 0x257   : > { %v2233_v30 = vadd.f32 %v2225_v42, %v2134_v20  ;;  %v5767_v42 = vld [vmem:[%s5875_s4] ss:$0 sm:$0xff]  ;;  %v4977_v20 = vld [vmem:[#allocation10 + $0x158] sm:$0xff] }
 0x25a   : > { %v5747_v44 = vpop.f32.mrf.mxu1 }
 0x25b   : > { %v2137_v39 = vadd.f32 %v5745_v34, %v5747_v44  ;;  %v4960_v34 = vld [vmem:[#allocation10 + $0xd0] sm:$0xff] }
 0x25c   : > { %3234 = vmatpush.bf16.msrb.mxu3 %v4960_v34 }
 0x25e   : > { %v5749_v45 = vpop.f32.mrf.mxu3 }
 0x25f   : > { %v2438_v48 = vpop.f32.mrf.mxu2  ;;  %v2234_v52 = vadd.f32 %v5749_v45, %v2137_v39  ;;  %v4989_v45 = vld [vmem:[#allocation10 + $0x1b8] sm:$0xff] }
 0x260   : > { %3235 = vmatpush.bf16.msrb.mxu3 %v4959_v9 }
 0x262   : > { %v2067_v51 = vpop.f32.mrf.mxu1 }
 0x263   : > { %v4951_v51 = vld [vmem:[#allocation10 + $0x88] sm:$0xff] }
 0x264   : > { %3147 = vmatpush.bf16.msrb.mxu2 %v4951_v51  ;;  %3236 = vmatpush.bf16.msrb.mxu3 %v4958_v56 }
 0x266   : > { %v2230_v33 = vpop.f32.mrf.mxu3 }
 0x267   : > { %v5751_v19 = vpop.f32.mrf.mxu2  ;;  %v4972_v33 = vld [vmem:[#allocation10 + $0x130] sm:$0xff] }
 0x268   : > { %3322 = vmatpush.bf16.msra.mxu0 %v4972_v33  ;;  %3148 = vmatpush.bf16.msrb.mxu2 %v4950_v60  ;;  %v4983_v33 = vld [vmem:[#allocation10 + $0x188] sm:$0xff]  ;;  %v2875_v60 = vld [vmem:[#allocation4] sm:$0x4] }
 0x269   : > { %3577 = vmatpush.bf16.msra.mxu3 %v4997_v16 }
 0x26a   : > { %v2328_v54 = vpop.f32.mrf.mxu1 }
 0x26b   : > { %v2337_v11 = vadd.f32 %v2328_v54, %v2232_v32 }
 0x26c   : > { %3486 = vmatpush.bf16.msra.mxu2 %v4989_v45  ;;  %v4991_v45 = vld [vmem:[#allocation10 + $0x1c8] sm:$0xff] }
 0x26d   : > { %v2447_v24 = vadd.f32 %v2438_v48, %v2337_v11  ;;  %v4969_v11 = vld [vmem:[#allocation10 + $0x118] sm:$0xff] }
 0x26e   : > { %v2528_v55 = vpop.f32.mrf.mxu3 }
 0x26f   : > { %v5753_v57 = vpop.f32.mrf.mxu2  ;;  %v2537_v29 = vadd.f32 %v2528_v55, %v2447_v24  ;;  %v4996_v24 = vld [vmem:[#allocation10 + $0x1f0] sm:$0xff] }
 0x270   : > { %3487 = vmatpush.bf16.msra.mxu2 %v4988_v63  ;;  %3578 = vmatpush.bf16.msra.mxu3 %v4996_v24  ;;  %v2896_v63 = vld [vmem:[#allocation4 + $0x4] sm:$0x1] }
 0x272   : > { %v2330_v58 = vpop.f32.mrf.mxu1 }
 0x273   : > { %v2338_v22 = vadd.f32 %v2330_v58, %v2233_v30  ;;  %v4980_v58 = vld [vmem:[#allocation10 + $0x170] sm:$0xff] }
 0x274   : > { %3407 = vmatpush.bf16.msra.mxu1 %v4980_v58  ;;  %3579 = vmatpush.bf16.msra.mxu3 %v4995_v28 }
 0x275   : > { %v2448_v43 = vadd.f32 %v5751_v19, %v2338_v22  ;;  %v4985_v22 = vld [vmem:[#allocation10 + $0x198] sm:$0xff] }
 0x276   : > { %v5755_v35 = vpop.f32.mrf.mxu3 }
 0x277   : > { %v2445_v8 = vpop.f32.mrf.mxu2  ;;  %v2538_v44 = vadd.f32 %v5755_v35, %v2448_v43  ;;  %v4984_v43 = vld [vmem:[#allocation10 + $0x190] sm:$0xff] }
 0x278   : > { %v4971_v8 = vld [vmem:[#allocation10 + $0x128] sm:$0xff]  ;;  %3580 = vmatpush.bf16.msra.mxu3 %v4994_v37 }
 0x279   : > { %3323 = vmatpush.bf16.msra.mxu0 %v4971_v8 }
 0x27a   : > { %v5757_v5 = vpop.f32.mrf.mxu1 }
 0x27b   : > { %v2339_v19 = vadd.f32 %v5757_v5, %v2234_v52  ;;  %v4979_v5 = vld [vmem:[#allocation10 + $0x168] sm:$0xff] }
 0x27c   : > { %3408 = vmatpush.bf16.msra.mxu1 %v4979_v5 }
 0x27d   : > { %v2449_v62 = vadd.f32 %v5753_v57, %v2339_v19  ;;  %3324 = vmatpush.bf16.msra.mxu0 %v4970_v31  ;;  %v4990_v31 = vld [vmem:[#allocation10 + $0x1c0] sm:$0xff] }
 0x27e   : > { %v5759_v47 = vpop.f32.mrf.mxu3 }
 0x27f   : > { %v2742_v15 = vpop.f32.mrf.mxu2  ;;  %v2539_v50 = vadd.f32 %v5759_v47, %v2449_v62 }
 0x281   : > { %3325 = vmatpush.bf16.msra.mxu0 %v4969_v11 }
 0x282   : > { %v2335_v26 = vpop.f32.mrf.mxu1 }
 0x283   : > { %v4987_v26 = vld [vmem:[#allocation10 + $0x1a8] sm:$0xff] }
 0x284   : > { %3488 = vmatpush.bf16.msra.mxu2 %v4987_v26 }
 0x285   : > { %3326 = vmatpush.bf16.msra.mxu0 %v4968_v0 }
 0x286   : > { %v2535_v38 = vpop.f32.mrf.mxu3 }
 0x287   : > { %v2744_v10 = vpop.f32.mrf.mxu2 }
 0x288   : > { %3489 = vmatpush.bf16.msra.mxu2 %v4986_v27  ;;  %v5005_v27 = vld [vmem:[#allocation10 + $0x238] sm:$0xff] }
 0x289   : > { %3327 = vmatpush.bf16.msra.mxu0 %v4967_v12 }
 0x28a   : > { %v2633_v36 = vpop.f32.mrf.mxu1 }
 0x28b   : > { %v2642_v21 = vadd.f32 %v2633_v36, %v2537_v29 }
 0x28c   : > { %3490 = vmatpush.bf16.msra.mxu2 %v4985_v22 }
 0x28d   : > { %v2751_v40 = vadd.f32 %v2742_v15, %v2642_v21  ;;  %v4978_v15 = vld [vmem:[#allocation10 + $0x160] sm:$0xff]  ;;  %3328 = vmatpush.bf16.msra.mxu0 %v4966_v7 }
 0x28e   : > { %v2837_v48 = vpop.f32.mrf.mxu3  ;;  %3409 = vmatpush.bf16.msra.mxu1 %v4978_v15 }
 0x28f   : > { %v2846_v54 = vadd.f32 %v2837_v48, %v2751_v40  ;;  %v2747_v55 = vpop.f32.mrf.mxu2  ;;  %v4993_v48 = vld [vmem:[#allocation10 + $0x1d8] sm:$0xff] }
 0x290   : > { %3491 = vmatpush.bf16.msra.mxu2 %v4984_v43  ;;  %3581 = vmatpush.bf16.msra.mxu3 %v4993_v48  ;;  %v5002_v43 = vld [vmem:[#allocation10 + $0x220] sm:$0xff] }
 0x291   : > { %v2853_v6 = vadd.f32 %v5767_v42, %v2846_v54  ;;  %v4992_v54 = vld [vmem:[#allocation10 + $0x1d0] sm:$0xff] }
 0x292   : > { %v2635_v59 = vpop.f32.mrf.mxu1  ;;  %3410 = vmatpush.bf16.msra.mxu1 %v4977_v20 }
 0x293   : > { %v2856_v61 = vmax.f32 %v2853_v6, 0.0  ;;  %v2643_v1 = vadd.f32 %v2635_v59, %v2538_v44  ;;  %v2881_v44 = vld [vmem:[#allocation4] sm:$0x8]  ;;  %v4982_v59 = vld [vmem:[#allocation10 + $0x180] sm:$0xff] }
 0x294   : > { %3492 = vmatpush.bf16.msra.mxu2 %v4983_v33  ;;  %3582 = vmatpush.bf16.msra.mxu3 %v4992_v54 }
 0x295   : > { %2859 = vst [vmem:[#allocation2] sm:$0xff] %v2856_v61  ;;  %v2752_v35 = vadd.f32 %v2744_v10, %v2643_v1  ;;  %v4976_v10 = vld [vmem:[#allocation10 + $0x150] sm:$0xff] }
 0x296   : > { %v2839_v3 = vpop.f32.mrf.mxu3  ;;  %3411 = vmatpush.bf16.msra.mxu1 %v4976_v10 }
 0x297   : > { %v2847_v32 = vadd.f32 %v2839_v3, %v2752_v35  ;;  %v2749_v49 = vpop.f32.mrf.mxu2  ;;  %v2899_v35 = vld [vmem:[#allocation4 + $0x4] sm:$0x2] }
 0x298   : > { %3493 = vmatpush.bf16.msra.mxu2 %v4982_v59  ;;  %3583 = vmatpush.bf16.msra.mxu3 %v4991_v45  ;;  %v3702_v45 = vld [vmem:[%s5878_s7 + $0x60] sm:$0xff] }
 0x299   : > { %v2854_v57 = vadd.f32 %v5767_v42, %v2847_v32 }
 0x29a   : > { %v2638_v14 = vpop.f32.mrf.mxu1  ;;  %3412 = vmatpush.bf16.msra.mxu1 %v4975_v23 }
 0x29b   : > { %v2857_v17 = vmax.f32 %v2854_v57, 0.0  ;;  %v2644_v53 = vadd.f32 %v2638_v14, %v2539_v50 }
 0x29c   : > { %v2862_v21 = vld [vmem:[#allocation2] sm:$0xf]  ;;  %3584 = vmatpush.bf16.msra.mxu3 %v4990_v31  ;;  %v3700_v31 = vld [vmem:[%s5878_s7 + $0x50] sm:$0xff] }
 0x29d   : > { %2860 = vst [vmem:[#allocation2 + $0x8] sm:$0xff] %v2857_v17  ;;  %v2753_v38 = vadd.f32 %v2747_v55, %v2644_v53 }
 0x29e   : > { %v2842_v30 = vpop.f32.mrf.mxu3 }
 0x29f   : > { %v2848_v47 = vadd.f32 %v2842_v30, %v2753_v38 }
 0x2a1   : > { %v2855_v29 = vadd.f32 %v5767_v42, %v2848_v47  ;;  %v4974_v42 = vld [vmem:[#allocation10 + $0x140] sm:$0xff] }
 0x2a2   : > { %v2640_v25 = vpop.f32.mrf.mxu1  ;;  %3413 = vmatpush.bf16.msra.mxu1 %v4974_v42 }
 0x2a3   : > { %v2858_v36 = vmax.f32 %v2855_v29, 0.0  ;;  %v5004_v25 = vld [vmem:[#allocation10 + $0x230] sm:$0xff] }
 0x2a4   : > { %v2863_v2 = vld [vmem:[#allocation2 + $0x6] sm:$0xf]  ;;  %v2884_v55 = vld [vmem:[#allocation2 + $0xc] sm:$0xf] }
 0x2a5   : > { %v2864_v39 = vmax.f32 %v2862_v21, %v2863_v2  ;;  %2861 = vst [vmem:[#allocation2 + $0x10] sm:$0x3f] %v2858_v36  ;;  %v5003_v21 = vld [vmem:[#allocation10 + $0x228] sm:$0xff] }
 0x2a6   : > { %v2844_v40 = vpop.f32.mrf.mxu3 }
 0x2a7   : > { %v2866_v46 = vrot.slane %v2864_v39, 1 }
 0x2a9   : > { %v2868_v51 = vmax.f32 %v2864_v39, %v2866_v46 }
 0x2ab   : > { %v2869_v52 = vpack.c.bf16 %v2868_v51, %v2868_v51  ;;  %v5001_v51 = vld [vmem:[#allocation10 + $0x218] sm:$0xff] }
 0x2ac   : > { %v2885_v34 = vld [vmem:[#allocation2 + $0x12] sm:$0xf] }
 0x2ad   : > { %v2879_v19 = vrot.slane %v2869_v52, 6  ;;  %v2886_v6 = vmax.f32 %v2884_v55, %v2885_v34  ;;  %v2871_v58 = vshll.u32 %v2869_v52, 16  ;;  %v5000_v55 = vld [vmem:[#allocation10 + $0x210] sm:$0xff] }
 0x2af   : > { %v2888_v8 = vrot.slane %v2886_v6, 1  ;;  %v2873_v61 = vrot.slane %v2871_v58, 6  ;;  %v2882_v1 = vsel %vm5659_vm11, %v2879_v19, %v2881_v44  ;;  %v4999_v44 = vld [vmem:[#allocation10 + $0x208] sm:$0xff] }
 0x2b0   : > { %2883 = vst [vmem:[#allocation4] sm:$0x8] %v2882_v1  ;;  %v3703_v1 = vld [vmem:[%s5878_s7 + $0x68] sm:$0xff] }
 0x2b1   : > { %v2890_v9 = vmax.f32 %v2886_v6, %v2888_v8  ;;  %v2876_v62 = vsel %vm5664_vm15, %v2873_v61, %v2875_v60  ;;  %v4998_v6 = vld [vmem:[#allocation10 + $0x200] sm:$0xff]  ;;  %v3705_v60 = vld [vmem:[%s5878_s7 + $0x78] sm:$0xff] }
 0x2b2   : > { %2877 = vst [vmem:[#allocation4] sm:$0x4] %v2876_v62  ;;  %v3704_v61 = vld [vmem:[%s5878_s7 + $0x70] sm:$0xff] }
 0x2b3   : > { %v2891_v5 = vpack.c.bf16 %v2890_v9, %v2890_v9  ;;  %v3701_v9 = vld [vmem:[%s5878_s7 + $0x58] sm:$0xff] }
 0x2b5   : > { %v2893_v3 = vshll.u32 %v2891_v5, 16  ;;  %v2900_v56 = vsel %vm5624_vm13, %v2891_v5, %v2899_v35 }
 0x2b6   : > { %2901 = vst [vmem:[#allocation4 + $0x4] sm:$0x2] %v2900_v56  ;;  %v3698_v56 = vld [vmem:[%s5878_s7 + $0x40] sm:$0xff] }
 0x2b7   : > { %v2897_v4 = vsel %vm5648_vm2, %v2893_v3, %v2896_v63  ;;  %v3335_v20 = vld [vmem:[#allocation4] sm:$0x8]  ;;  %v3699_v63 = vld [vmem:[%s5878_s7 + $0x48] sm:$0xff] }
 0x2b8   : > { %2898 = vst [vmem:[#allocation4 + $0x4] sm:$0x1] %v2897_v4  ;;  %v3354_v28 = vunpack.c.l.b16 %v3335_v20  ;;  %v3697_v4 = vld [vmem:[%s5878_s7 + $0x38] sm:$0xff] }
 0x2b9   : > { %v2902_v32 = vld [vmem:[#allocation4] sm:$0x7] }
 0x2ba   : > { %v3070_v13 = vld [vmem:[#allocation4] sm:$0xe]  ;;  %3065 = vmatmul.bf16.vlgmr.msrb.gmra.mxu1 %v2902_v32 }
 0x2bb   : > { %v2919_v15 = vld [vmem:[#allocation4] sm:$0xf]  ;;  %v3089_v16 = vunpack.c.l.b16 %v3070_v13  ;;  %3707 = vmatpush.msrb.mxu1 %v3705_v60 }
 0x2bc   : > { %v2938_v49 = vunpack.c.l.b16 %v2919_v15  ;;  %v3155_v57 = vld [vmem:[#allocation4] sm:$0xc]  ;;  %v3696_v15 = vld [vmem:[%s5878_s7 + $0x30] sm:$0xff] }
 0x2bd   : > { %v3090_v11 = vpack.c.b16 %v3089_v16, %v3089_v16  ;;  %v3176_v18 = vunpack.c.l.b16 %v3155_v57  ;;  %v3591_v34 = vld [vmem:[#allocation4 + $0x4] sm:$0xe]  ;;  %3708 = vmatpush.msrb.mxu1 %v3704_v61 }
 0x2be   : > { %v2939_v50 = vpack.c.b16 %v2938_v49, %v2938_v49  ;;  %v3610_v19 = vunpack.c.l.b16 %v3591_v34  ;;  %v3695_v49 = vld [vmem:[%s5878_s7 + $0x28] sm:$0xff] }
 0x2bf   : > { %v3091_v26 = vrot.slane %v3090_v11, 1  ;;  %v3156_v17 = vld [vmem:[#allocation4 + $0x4] sm:$0x1]  ;;  %3709 = vmatpush.msrb.mxu1 %v3703_v1 }
 0x2c0   : > { %v2943_v14 = vshll.u32 %v2939_v50, 16  ;;  %v3243_v53 = vld [vmem:[#allocation4 + $0x4] sm:$0x3]  ;;  %v2941_v41 = vshrl.u32 %v2939_v50, 16  ;;  %v3177_v0 = vunpack.c.l.b16 %v3156_v17  ;;  %v3611_v58 = vpack.c.b16 %v3610_v19, %v3610_v19  ;;  %v3694_v50 = vld [vmem:[%s5878_s7 + $0x20] sm:$0xff] }
 0x2c1   : > { %3149 = vmatmul.bf16.vlgmr.msrb.gmra.mxu2 %v3091_v26  ;;  %v3262_v38 = vunpack.c.l.b16 %v3243_v53  ;;  %v3500_v30 = vld [vmem:[#allocation4 + $0x4] sm:$0xf]  ;;  %3710 = vmatpush.msrb.mxu1 %v3702_v45  ;;  %v3693_v26 = vld [vmem:[%s5878_s7 + $0x18] sm:$0xff]  ;;  %v3692_v53 = vld [vmem:[%s5878_s7 + $0x10] sm:$0xff] }
 0x2c2   : > { %v2945_v24 = vrot.slane %v2943_v14, 1  ;;  %v3178_v10 = vpack.c.b16 %v3177_v0, %v3176_v18  ;;  %v3519_v22 = vunpack.c.l.b16 %v3500_v30  ;;  %v3420_v42 = vld [vmem:[#allocation4 + $0x4] sm:$0x7]  ;;  %v3612_v59 = vrot.slane %v3611_v58, 1 }
 0x2c3   : > { %v3355_v29 = vpack.c.b16 %v3262_v38, %v3354_v28  ;;  %v3263_v36 = vpack.c.b16 %v3262_v38, %v3176_v18  ;;  %3711 = vmatpush.msrb.mxu1 %v3701_v9  ;;  %v3690_v38 = vld [vmem:[%s5878_s7] sm:$0xff] }
 0x2c4   : > { %v2946_v47 = vor.u32 %v2945_v24, %v2941_v41  ;;  %v3179_v12 = vrot.slane %v3178_v10, 2  ;;  %v3520_v37 = vpack.c.b16 %v3519_v22, %v3519_v22  ;;  %v3691_v24 = vld [vmem:[%s5878_s7 + $0x8] sm:$0xff] }
 0x2c5   : > { %v3356_v23 = vrot.slane %v3355_v29, 3  ;;  %v3265_v2 = vshrl.u32 %v3263_v36, 16  ;;  %v3268_v7 = vshll.u32 %v3263_v36, 16  ;;  %3712 = vmatpush.msrb.mxu1 %v3700_v31  ;;  %v5101_v29 = vld [vmem:[%s5877_s6] ss:$0 sm:$0xff] }
 0x2c6   : > { %3004 = vmatmul.bf16.vlgmr.msrb.gmra.mxu0 %v2946_v47  ;;  %3237 = vmatmul.bf16.vlgmr.msrb.gmra.mxu3 %v3179_v12  ;;  %v3524_v39 = vshll.u32 %v3520_v37, 16  ;;  %v3522_v52 = vshrl.u32 %v3520_v37, 16 }
 0x2c7   : > { %3662 = vmatpush.bf16.msrb.mxu0 %v5005_v27  ;;  %v3267_v40 = vrot.slane %v3265_v2, 2  ;;  %v3270_v46 = vrot.slane %v3268_v7, 3  ;;  %3713 = vmatpush.msrb.mxu1 %v3699_v63 }
 0x2c8   : > { %v3526_v48 = vrot.slane %v3524_v39, 1 }
 0x2c9   : > { %v3271_v33 = vor.u32 %v3270_v46, %v3267_v40  ;;  %3714 = vmatpush.msrb.mxu1 %v3698_v56  ;;  %v3706_v46 = vld [vmem:[%s5879_s8] sm:$0x1] }
 0x2ca   : > { %3414 = vmatmul.bf16.vlgmr.msra.gmra.mxu1 %v3356_v23  ;;  %v3527_v54 = vor.u32 %v3526_v48, %v3522_v52 }
 0x2cb   : > { %3663 = vmatpush.bf16.msrb.mxu0 %v5004_v25  ;;  %3715 = vmatpush.msrb.mxu1 %v3697_v4 }
 0x2cd   : > { %3716 = vmatpush.msrb.mxu1 %v3696_v15 }
 0x2cf   : > { %3664 = vmatpush.bf16.msrb.mxu0 %v5003_v21  ;;  %3717 = vmatpush.msrb.mxu1 %v3695_v49 }
 0x2d1   : > { %3494 = vmatmul.bf16.vlgmr.msra.gmra.mxu2 %v3420_v42  ;;  %3718 = vmatpush.msrb.mxu1 %v3694_v50 }
 0x2d3   : > { %3665 = vmatpush.bf16.msrb.mxu0 %v5002_v43  ;;  %3719 = vmatpush.msrb.mxu1 %v3693_v26 }
 0x2d5   : > { %3720 = vmatpush.msrb.mxu1 %v3692_v53 }
 0x2d6   : > { %3329 = vmatmul.bf16.vlgmr.msra.gmra.mxu0 %v3271_v33  ;;  %3585 = vmatmul.bf16.vlgmr.msra.gmra.mxu3 %v3527_v54 }
 0x2d7   : > { %3666 = vmatpush.bf16.msrb.mxu0 %v5001_v51  ;;  %3721 = vmatpush.msrb.mxu1 %v3691_v24 }
 0x2d9   : > { %3722 = vmatpush.msrb.mxu1 %v3690_v38 }
 0x2db   : > { %3667 = vmatpush.bf16.msrb.mxu0 %v5000_v55 }
 0x2df   : > { %3668 = vmatpush.bf16.msrb.mxu0 %v4999_v44 }
 0x2e3   : > { %3669 = vmatpush.bf16.msrb.mxu0 %v4998_v6 }
 0x2e6   : > { %3670 = vmatmul.bf16.vlgmr.msrb.gmra.mxu0 %v3612_v59 }
 0x337   : > { %v3066_v8 = vpop.f32.mrf.mxu1 }
 0x33f   : > { %v3068_v62 = vpop.f32.mrf.mxu1 }
 0x343   : > { %v3005_v35 = vpop.f32.mrf.mxu0 }
 0x344   : > { %v3150_v5 = vpop.f32.mrf.mxu2  ;;  %v3067_v11 = vadd.f32 %v3066_v8, %v3005_v35 }
 0x346   : > { %v3154_v18 = vadd.f32 %v3150_v5, %v3067_v11 }
 0x347   : > { %v3415_v3 = vpop.f32.mrf.mxu1 }
 0x349   : > { %v3238_v13 = vpop.f32.mrf.mxu3 }
 0x34a   : > { %v3242_v41 = vadd.f32 %v3238_v13, %v3154_v18 }
 0x34b   : > { %v3007_v32 = vpop.f32.mrf.mxu0 }
 0x34c   : > { %v3152_v16 = vpop.f32.mrf.mxu2 }
 0x34f   : > { %v3417_v57 = vpop.f32.mrf.mxu1 }
 0x351   : > { %v3240_v14 = vpop.f32.mrf.mxu3 }
 0x353   : > { %v3330_v17 = vpop.f32.mrf.mxu0 }
 0x354   : > { %v3495_v20 = vpop.f32.mrf.mxu2  ;;  %v3334_v0 = vadd.f32 %v3330_v17, %v3242_v41 }
 0x356   : > { %v3419_v47 = vadd.f32 %v3415_v3, %v3334_v0 }
 0x358   : > { %v3499_v28 = vadd.f32 %v3495_v20, %v3419_v47 }
 0x359   : > { %v3586_v30 = vpop.f32.mrf.mxu3 }
 0x35a   : > { %v3590_v12 = vadd.f32 %v3586_v30, %v3499_v28 }
 0x35b   : > { %v3332_v27 = vpop.f32.mrf.mxu0 }
 0x35c   : > { %v3497_v10 = vpop.f32.mrf.mxu2 }
 0x361   : > { %v3588_v22 = vpop.f32.mrf.mxu3 }
 0x363   : > { %v3671_v25 = vpop.f32.mrf.mxu0 }
 0x364   : > { %v3675_v36 = vadd.f32 %v3671_v25, %v3590_v12 }
 0x366   : > { %v3680_v23 = vadd.f32 %v5101_v29, %v3675_v36 }
 0x368   : > { %v3681_v37 = vmax.f32 %v3680_v23, 0.0 }
 0x36a   : > { %3682 = vst [vmem:[#allocation2] sm:$0x3f] %v3681_v37 }
 0x36b   : > { %v3673_v21 = vpop.f32.mrf.mxu0 }
 0x371   : > { %v3683_v2 = vld [vmem:[#allocation2] sm:$0x3]  ;;  %v3684_v7 = vld [vmem:[#allocation2 + $0x4] sm:$0x3] }
 0x372   : > { %v3685_v39 = vmax.f32 %v3683_v2, %v3684_v7 }
 0x374   : > { %v3687_v43 = vrot.slane %v3685_v39, 1 }
 0x376   : > { %v3689_v40 = vmax.f32 %v3685_v39, %v3687_v43 }
 0x378   : > { %3723 = vmatmul.f32.vlgmr.msrb.gmra.mxu1 %v3689_v40 }
 0x3f5   : > { %v3724_v42 = vpop.f32.mrf.mxu1 }
 0x3f6   : > { %v3725_v48 = vadd.f32 %v3724_v42, %v3706_v46 }
 0x3f8   : > { %3727 = vst [vmem:[%s374_s24] sm:$0x1] %v3725_v48 }
 0x3f9   : > { %5223 = shalt.err (!%p5220_p8)
}
 0x3fa   : > { %5038 = dma.vmem_to_hbm [thread:$0]  (%p5363_p5), %s3740_s27, 16, %s3742_s28, %s3729_s29  }
 0x3fb PF: > { %p5060_p9 = scmp.ge.s32.totalorder %s5267_s12, 2  ;;  %s3753_s25 = sand.u32 1, %s5255_s30  }
 0x3fc   : > { %s3754_s1 = scalar_lea.sflag [#allocation7], %s3753_s25 }
 0x3fd   : > { %p5051_p10 = pnand %p5060_p9, %p5367_p6 }
 0x3ff   : > { %p5052_p11 = pneg %p5051_p10 }
 0x401   : > { %5249 = dma.done.wait (%p5052_p11), %s3754_s1, 16  }
 0x402   : > { %5251 = vsyncadd (%p5052_p11), %s3754_s1, 4294967280  ;;  %s5906_s3 = sld [smem:[#allocation15_spill]]  ;;  %p21_p12 = scmp.ge.s32.totalorder %s5350_s15, 4  }
 0x403   : > { %s5907_s30 = smov %s5259_s10  ;;  %s5908_s10 = smov %s5263_s11 }
 0x404   : > { %s5910_s12 = smov %s5350_s15  ;;  %23 = sbr.rel (!%p21_p12) target bundleno = 8 (0x8), region = 128 }
 0x408   : > { %s5909_s11 = smov %s5906_s3 }
 0x409   :  { %3759 = vsyncpa [#allocation6], 1 }
 0x40a   :  { %3761 = vsyncpa [#allocation6 + $0x1], 1 }
 0x40b   :  { %3762 = vsyncpa [#allocation9], 1 }
 0x40c   :  { %3763 = vsyncpa [#allocation7], 1 }
 0x40d   :  { %3765 = vsyncpa [#allocation7 + $0x1], 1 }

</bundles_post_ra>
